<compile_context>
chip_gen: v5e
topology: v5e:2x2
jax: 0.10.0
libtpu: 0.0.40
codegen_flags: <defaults>
</compile_context>

<pallas_src>
import functools

import numpy as np

import jax
import jax.numpy as jnp
from jax.experimental import pallas as pl
from jax.experimental.pallas import tpu as pltpu


# -----------------------------------------------------------------------------
# The single whole-UNet kernel (one batch element per grid step)
# -----------------------------------------------------------------------------
def _unet_kernel(x_ref, bw_ref, vec_ref, gm_ref, sy_ref, sx_ref, uy_ref,
                 out_ref, *, layer_meta, final_off, lane, eps):
    f32 = jnp.float32
    bf16 = jnp.bfloat16
    half = lane // 2
    n_layers = len(layer_meta)

    def make_taps(a):
        """(H, W*C) -> (H, 3*W*C) bf16 taps: rows y-1 | y | y+1, zero padded."""
        a = a.astype(bf16)
        hs, wc = a.shape
        z = jnp.zeros((1, wc), bf16)
        apad = jnp.concatenate([z, a, z], axis=0)              # (hs+2, wc)
        return jnp.concatenate([apad[0:hs], a, apad[2:hs + 2]], axis=1)

    def conv_gn_relu(li, a_list):
        """Fused Conv3x3 (padding=1) + GroupNorm + ReLU, layer index `li`.

        a_list: one activation, or [up_branch(y-upsampled), skip] for decoder
        conv1 (the channel concat AND the x-interpolation are folded into the
        precomputed banded weight)."""
        off, k, gidx = layer_meta[li]

        taps = jnp.concatenate([make_taps(a) for a in a_list], axis=1)  # bf16
        b_band = bw_ref[off:off + k, :]                        # bf16 (k, lane)
        bias = vec_ref[3 * li + 0:3 * li + 1, :]               # f32 (1, lane)
        gamma = vec_ref[3 * li + 1:3 * li + 2, :]
        beta = vec_ref[3 * li + 2:3 * li + 3, :]

        # conv: ONE bf16 MXU matmul (K = 3*W*Cin), f32 accumulation
        y = jnp.dot(taps, b_band, preferred_element_type=f32) + bias

        # GroupNorm stats: sublane (XLU) column sums, then a single small
        # group-sum matmul (1/count already folded into gm_ref).
        s = jnp.sum(y, axis=0, keepdims=True)                  # (1, lane)
        ss = jnp.sum(y * y, axis=0, keepdims=True)             # (1, lane)
        stats = jnp.concatenate([s, ss], axis=0)               # (2, lane) f32
        g = jnp.dot(stats, gm_ref[gidx, :, :],
                    preferred_element_type=f32)                # (2, lane)
        mean = g[0:1, :]
        var = jnp.maximum(g[1:2, :] - mean * mean, 0.0)        # clamp >= 0

        yn = (y - mean) * jax.lax.rsqrt(var + eps)
        return jnp.maximum(yn * gamma + beta, 0.0)             # ReLU (f32)

    def maxpool(a, pidx):
        """2x2 max pool via two merged selection matmuls + free VPU/XLU max."""
        hs = a.shape[0]
        hh = hs // 2
        sy_m = sy_ref[pidx, :hs, :hs]                          # bf16 (hs, hs)
        rows2 = jnp.dot(sy_m, a.astype(bf16),
                        preferred_element_type=f32)            # (hs, lane)
        rows = jnp.maximum(rows2[:hh], rows2[hh:])             # y-pair max
        t = jnp.dot(rows.astype(bf16), sx_ref[pidx, :, :],
                    preferred_element_type=f32)                # (hh, lane)
        # x-pair max: left half = even-x picks, right half = odd-x picks
        t = jnp.maximum(t, pltpu.roll(t, shift=half, axis=1))
        return t[:, :half]                                     # (hh, lane//2)

    def upsample_y(a, uidx):
        """Bilinear 2x in y only; the x interpolation is folded into the
        decoder conv1 banded weight at pack time."""
        hb = a.shape[0]
        u_y = uy_ref[uidx, :2 * hb, :hb]                       # bf16 (2hb, hb)
        return jnp.dot(u_y, a.astype(bf16),
                       preferred_element_type=f32)             # (2hb, lane)

    a0 = x_ref[0, :, :]                                        # (H0, W0*Cin)

    # encoder
    e1 = conv_gn_relu(1, [conv_gn_relu(0, [a0])])
    e2 = conv_gn_relu(3, [conv_gn_relu(2, [maxpool(e1, 0)])])
    e3 = conv_gn_relu(5, [conv_gn_relu(4, [maxpool(e2, 1)])])
    bt = conv_gn_relu(7, [conv_gn_relu(6, [maxpool(e3, 2)])])

    # decoder: cat([upsampled, skip]) order matches torch.cat([d, e], dim=1)
    d3 = conv_gn_relu(9, [conv_gn_relu(8, [upsample_y(bt, 0), e3])])
    d2 = conv_gn_relu(11, [conv_gn_relu(10, [upsample_y(d3, 1), e2])])
    d1 = conv_gn_relu(13, [conv_gn_relu(12, [upsample_y(d2, 2), e1])])

    # final 1x1 conv (block-diagonal, padded to a full 128-lane store)
    wf = bw_ref[final_off:final_off + lane, :]                 # bf16 (lane, lane)
    bfin = vec_ref[3 * n_layers:3 * n_layers + 1, :]           # f32 (1, lane)
    out_ref[0, :, :] = (jnp.dot(d1.astype(bf16), wf,
                                preferred_element_type=f32) + bfin)


# -----------------------------------------------------------------------------
# Parameter init (same shapes / semantics as the nn.Module)
# -----------------------------------------------------------------------------
def init_unet(key, in_channels=3, out_channels=3, features=8):
    def conv_init(k, cin, cout):
        kw, kb = jax.random.split(k)
        w = jax.random.normal(kw, (3, 3, cin, cout), jnp.float32) * 0.05
        b = jax.random.normal(kb, (cout,), jnp.float32) * 0.05
        return w, b

    def block_init(k, cin, cout):
        k1, k2 = jax.random.split(k)
        w1, b1 = conv_init(k1, cin, cout)
        w2, b2 = conv_init(k2, cout, cout)
        return dict(w1=w1, b1=b1, g1=jnp.ones((cout,), jnp.float32),
                    be1=jnp.zeros((cout,), jnp.float32),
                    w2=w2, b2=b2, g2=jnp.ones((cout,), jnp.float32),
                    be2=jnp.zeros((cout,), jnp.float32))

    keys = jax.random.split(key, 9)
    f = features
    return {
        "enc1": block_init(keys[0], in_channels, f),
        "enc2": block_init(keys[1], f, f * 2),
        "enc3": block_init(keys[2], f * 2, f * 4),
        "bottleneck": block_init(keys[3], f * 4, f * 8),
        "dec3": block_init(keys[4], f * 8 + f * 4, f * 4),
        "dec2": block_init(keys[5], f * 4 + f * 2, f * 2),
        "dec1": block_init(keys[6], f * 2 + f, f),
        "final_w": jax.random.normal(keys[7], (f, out_channels),
                                     jnp.float32) * 0.05,
        "final_b": jax.random.normal(keys[8], (out_channels,),
                                     jnp.float32) * 0.05,
    }


# -----------------------------------------------------------------------------
# Pack module parameters into the kernel's operand layout (done once, numpy)
# -----------------------------------------------------------------------------
def pack_unet(params, *, in_channels, out_channels, features, h0):
    f = features
    lane = h0 * f                        # W*C is 128 at every conv output
    assert h0 % 8 == 0, "spatial size must be divisible by 8 (3 pool levels)"

    def to_np(a):
        return np.asarray(a, np.float32)

    def banded(w, wsp):
        """(3,3,Cin,Cout) conv weight -> (3*wsp*Cin, wsp*Cout) banded matrix
        mapping the (H, 3*wsp*Cin) tap layout to the (H, wsp*Cout) output
        layout (x shifts + zero padding in x folded in)."""
        w = to_np(w)
        cin, cout = w.shape[2], w.shape[3]
        bm = np.zeros((3 * wsp * cin, wsp * cout), np.float32)
        for dy in range(3):
            for x in range(wsp):
                for dx in range(3):
                    xin = x + dx - 1
                    if 0 <= xin < wsp:
                        bm[dy * wsp * cin + xin * cin:
                           dy * wsp * cin + (xin + 1) * cin,
                           x * cout:(x + 1) * cout] = w[dy, dx]
        return bm

    def lane_vec(v, wsp):
        return np.tile(to_np(v), wsp)    # lane x*C + c  ->  v[c]

    def up1d(n):
        """PyTorch bilinear 2x, align_corners=False, 1-D weights (2n, n)."""
        u = np.zeros((2 * n, n), np.float32)
        for i in range(2 * n):
            src = min(max((i + 0.5) * 0.5 - 0.5, 0.0), float(n - 1))
            j0 = int(np.floor(src))
            j1 = min(j0 + 1, n - 1)
            t = src - j0
            u[i, j0] += 1.0 - t
            u[i, j1] += t
        return u

    def ux_mat(hb, cb):
        """x-direction interpolation matrix (hb*cb, 2*hb*cb) in lane layout."""
        u = up1d(hb)
        m = np.zeros((hb * cb, 2 * hb * cb), np.float32)
        for xo in range(2 * hb):
            for xin in range(hb):
                wgt = u[xo, xin]
                if wgt != 0.0:
                    m[xin * cb:(xin + 1) * cb, xo * cb:(xo + 1) * cb] = \
                        wgt * np.eye(cb, dtype=np.float32)
        return m

    # deduplicated group matrices (1/count folded), one per distinct cout
    g_list, g_index = [], {}

    def gmat_idx(cout, wsp):
        if cout not in g_index:
            groups = min(8, cout) if cout >= 8 else 1   # == nn.GroupNorm arg
            cg = cout // groups
            grp = (np.arange(wsp * cout) % cout) // cg
            m = (grp[:, None] == grp[None, :]).astype(np.float32)
            m /= float(wsp * wsp * cg)                  # 1/cnt folded in
            g_index[cout] = len(g_list)
            g_list.append(m)
        return g_index[cout]

    # 7 blocks -> 14 conv+GN+ReLU layers, in execution order.
    blocks = [
        ("enc1", h0, [in_channels]),
        ("enc2", h0 // 2, [f]),
        ("enc3", h0 // 4, [f * 2]),
        ("bottleneck", h0 // 8, [f * 4]),
        ("dec3", h0 // 4, [f * 8, f * 4]),   # [upsampled, skip] channel split
        ("dec2", h0 // 2, [f * 4, f * 2]),
        ("dec1", h0, [f * 2, f]),
    ]

    band_list, vec_rows, layer_meta = [], [], []
    off = 0
    for name, wsp, in_split in blocks:
        p = params[name]
        cout = to_np(p["w1"]).shape[3]
        assert wsp * cout == lane, (name, wsp, cout, lane)

        w1 = to_np(p["w1"])
        if len(in_split) == 2:
            # decoder conv1: fold the x-interpolation into the up-branch band
            c_up, c_skip = in_split
            hb = wsp // 2
            b_up = banded(w1[:, :, :c_up, :], wsp)           # (3*wsp*c_up, lane)
            fold = np.kron(np.eye(3, dtype=np.float32),
                           ux_mat(hb, c_up)) @ b_up          # (3*hb*c_up, lane)
            b_skip = banded(w1[:, :, c_up:, :], wsp)
            b1 = np.concatenate([fold, b_skip], axis=0)
        else:
            b1 = banded(w1, wsp)
        band_list.append(b1)
        vec_rows += [lane_vec(p["b1"], wsp), lane_vec(p["g1"], wsp),
                     lane_vec(p["be1"], wsp)]
        layer_meta.append((off, b1.shape[0], gmat_idx(cout, wsp)))
        off += b1.shape[0]

        # conv2
        b2 = banded(to_np(p["w2"]), wsp)
        band_list.append(b2)
        vec_rows += [lane_vec(p["b2"], wsp), lane_vec(p["g2"], wsp),
                     lane_vec(p["be2"], wsp)]
        layer_meta.append((off, b2.shape[0], gmat_idx(cout, wsp)))
        off += b2.shape[0]

    # final 1x1 conv: block-diagonal, output padded to `lane` lanes
    wf = to_np(params["final_w"])                     # (f, out_channels)
    bfv = to_np(params["final_b"])
    final_band = np.zeros((lane, lane), np.float32)
    bf_lane = np.zeros((lane,), np.float32)
    for x in range(h0):
        final_band[x * f:(x + 1) * f,
                   x * out_channels:(x + 1) * out_channels] = wf
        bf_lane[x * out_channels:(x + 1) * out_channels] = bfv
    final_off = off
    band_list.append(final_band)
    off += lane

    big_band = np.concatenate(band_list, axis=0)      # (sum_K, lane)
    n_layers = len(layer_meta)
    n_vec_rows = ((3 * n_layers + 1 + 7) // 8) * 8
    vecs = np.zeros((n_vec_rows, lane), np.float32)
    vecs[:3 * n_layers] = np.stack(vec_rows, axis=0)
    vecs[3 * n_layers] = bf_lane
    gmats = np.stack(g_list, axis=0)                  # (4, lane, lane)

    # merged 2x2 max-pool selection matrices (even|odd stacked)
    sy = np.zeros((3, h0, h0), np.float32)
    sx = np.zeros((3, lane, lane), np.float32)
    half = lane // 2
    pool_cfg = [(h0, f), (h0 // 2, f * 2), (h0 // 4, f * 4)]
    for i, (hs, c) in enumerate(pool_cfg):
        hh = hs // 2
        for r in range(hh):
            sy[i, r, 2 * r] = 1.0                 # even rows -> first half
            sy[i, hh + r, 2 * r + 1] = 1.0        # odd rows  -> second half
        for x in range(hh):
            sx[i, (2 * x) * c:(2 * x + 1) * c, x * c:(x + 1) * c] = \
                np.eye(c, dtype=np.float32)
            sx[i, (2 * x + 1) * c:(2 * x + 2) * c,
               half + x * c:half + (x + 1) * c] = np.eye(c, dtype=np.float32)

    # y-direction bilinear 2x (x-direction is folded into decoder conv bands)
    uy = np.zeros((3, h0, h0 // 2), np.float32)
    for i, hb in enumerate([h0 // 8, h0 // 4, h0 // 2]):
        uy[i, :2 * hb, :hb] = up1d(hb)

    bf16 = jnp.bfloat16
    tensors = dict(
        big_band=jnp.asarray(big_band, dtype=bf16),   # ~1.4 MiB
        vecs=jnp.asarray(vecs, dtype=jnp.float32),    # tiny, kept f32
        gmats=jnp.asarray(gmats, dtype=jnp.float32),  # 4x128x128, kept f32
        sy=jnp.asarray(sy, dtype=bf16),
        sx=jnp.asarray(sx, dtype=bf16),
        uy=jnp.asarray(uy, dtype=bf16),
    )
    meta = dict(layer_meta=tuple(layer_meta), final_off=final_off, lane=lane,
                h0=h0, in_channels=in_channels, out_channels=out_channels)
    return tensors, meta


# -----------------------------------------------------------------------------
# Forward pass: one pallas_call for the entire UNet
# -----------------------------------------------------------------------------
def simple_unet_forward(tensors, meta, sample_nchw, timestep=None):
    """Mirrors SimpleUNet.forward (timestep is accepted but unused, exactly
    like the reference module)."""
    del timestep
    n, cin, h, w = sample_nchw.shape
    assert h == meta["h0"] and w == meta["h0"] and cin == meta["in_channels"]
    lane = meta["lane"]
    out_ch = meta["out_channels"]

    # NCHW -> lane layout (N, H, W*Cin)
    x_l = jnp.transpose(sample_nchw, (0, 2, 3, 1)).reshape(n, h, w * cin)

    kernel = functools.partial(
        _unet_kernel,
        layer_meta=meta["layer_meta"],
        final_off=meta["final_off"],
        lane=lane,
        eps=1e-5,
    )

    t = tensors
    in_specs = [
        pl.BlockSpec((1, h, w * cin), lambda i: (i, 0, 0)),
        pl.BlockSpec(t["big_band"].shape, lambda i: (0, 0)),
        pl.BlockSpec(t["vecs"].shape, lambda i: (0, 0)),
        pl.BlockSpec(t["gmats"].shape, lambda i: (0, 0, 0)),
        pl.BlockSpec(t["sy"].shape, lambda i: (0, 0, 0)),
        pl.BlockSpec(t["sx"].shape, lambda i: (0, 0, 0)),
        pl.BlockSpec(t["uy"].shape, lambda i: (0, 0, 0)),
    ]

    out = pl.pallas_call(
        kernel,
        out_shape=jax.ShapeDtypeStruct((n, h, lane), jnp.float32),
        grid=(n,),
        in_specs=in_specs,
        out_specs=pl.BlockSpec((1, h, lane), lambda i: (i, 0, 0)),
        compiler_params=pltpu.CompilerParams(
            dimension_semantics=("parallel",),   # batch -> 2 TCs on v7x
            vmem_limit_bytes=32 * 1024 * 1024),
    )(x_l, t["big_band"], t["vecs"], t["gmats"], t["sy"], t["sx"], t["uy"])

    # (N, H, W*out_ch) lanes -> NCHW
    y = out[:, :, :w * out_ch].reshape(n, h, w, out_ch)
    return jnp.transpose(y, (0, 3, 1, 2))


# -----------------------------------------------------------------------------
if __name__ == "__main__":
    key = jax.random.PRNGKey(0)
    k_params, k_x = jax.random.split(key)

    N, C, H, W = 2, 3, 16, 16
    features = 8
    params = init_unet(k_params, in_channels=C, out_channels=C,
                       features=features)
    tensors, meta = pack_unet(params, in_channels=C, out_channels=C,
                              features=features, h0=H)

    sample = jax.random.normal(k_x, (N, C, H, W), jnp.float32)
    timestep = jnp.array([10, 10], dtype=jnp.int32)   # unused by forward

    fwd = jax.jit(functools.partial(simple_unet_forward, tensors, meta))
    out = jax.block_until_ready(fwd(sample, timestep))

    assert out.shape == (N, C, H, W), out.shape
    assert out.dtype == jnp.float32
    assert bool(jnp.all(jnp.isfinite(out)))
    print("KERNEL_OK")
</pallas_src>

<mosaic_0001>
module attributes {stable_mosaic.version = 11 : i64} {
  func.func @_unet_kernel(%arg0: i32, %arg1: memref<1x16x48xf32, #tpu.memory_space<vmem>>, %arg2: memref<5840x128xbf16, #tpu.memory_space<vmem>>, %arg3: memref<48x128xf32, #tpu.memory_space<vmem>>, %arg4: memref<4x128x128xf32, #tpu.memory_space<vmem>>, %arg5: memref<3x16x16xbf16, #tpu.memory_space<vmem>>, %arg6: memref<3x128x128xbf16, #tpu.memory_space<vmem>>, %arg7: memref<3x16x8xbf16, #tpu.memory_space<vmem>>, %arg8: memref<1x16x128xf32, #tpu.memory_space<vmem>>) attributes {dimension_semantics = [#tpu.dimension_semantics<parallel>], iteration_bounds = array<i64: 2>, scalar_prefetch = 0 : i64, scratch_operands = 0 : i64, tpu.core_type = #tpu.core_type<tc>, window_params = [{transform_indices = @transform_0, window_bounds = array<i64: 1, 16, 48>}, {pipeline_mode = #tpu.pipeline_mode<synchronous>, transform_indices = @transform_1, window_bounds = array<i64: 5840, 128>}, {pipeline_mode = #tpu.pipeline_mode<synchronous>, transform_indices = @transform_2, window_bounds = array<i64: 48, 128>}, {pipeline_mode = #tpu.pipeline_mode<synchronous>, transform_indices = @transform_3, window_bounds = array<i64: 4, 128, 128>}, {pipeline_mode = #tpu.pipeline_mode<synchronous>, transform_indices = @transform_4, window_bounds = array<i64: 3, 16, 16>}, {pipeline_mode = #tpu.pipeline_mode<synchronous>, transform_indices = @transform_5, window_bounds = array<i64: 3, 128, 128>}, {pipeline_mode = #tpu.pipeline_mode<synchronous>, transform_indices = @transform_6, window_bounds = array<i64: 3, 16, 8>}, {transform_indices = @transform_7, window_bounds = array<i64: 1, 16, 128>}]} {
    %c0 = arith.constant 0 : index
    %c0_0 = arith.constant 0 : index
    %c0_1 = arith.constant 0 : index
    %0 = vector.load %arg1[%c0, %c0_0, %c0_1] : memref<1x16x48xf32, #tpu.memory_space<vmem>>, vector<1x16x48xf32>
    %1 = vector.shape_cast %0 : vector<1x16x48xf32> to vector<16x48xf32>
    %2 = arith.truncf %1 : vector<16x48xf32> to vector<16x48xbf16>
    %cst = arith.constant 0.000000e+00 : bf16
    %3 = vector.broadcast %cst : bf16 to vector<1x48xbf16>
    %4 = tpu.concatenate %3, %2, %3 in 0 : vector<1x48xbf16>, vector<16x48xbf16>, vector<1x48xbf16> -> vector<18x48xbf16>
    %5 = vector.extract_strided_slice %4 {offsets = [0, 0], sizes = [16, 48], strides = [1, 1]} : vector<18x48xbf16> to vector<16x48xbf16>
    %6 = vector.extract_strided_slice %4 {offsets = [2, 0], sizes = [16, 48], strides = [1, 1]} : vector<18x48xbf16> to vector<16x48xbf16>
    %7 = tpu.concatenate %5, %2, %6 in 1 : vector<16x48xbf16>, vector<16x48xbf16>, vector<16x48xbf16> -> vector<16x144xbf16>
    %c0_2 = arith.constant 0 : index
    %c0_3 = arith.constant 0 : index
    %8 = vector.load %arg2[%c0_2, %c0_3] : memref<5840x128xbf16, #tpu.memory_space<vmem>>, vector<144x128xbf16>
    %c0_4 = arith.constant 0 : index
    %c0_5 = arith.constant 0 : index
    %9 = vector.load %arg3[%c0_4, %c0_5] : memref<48x128xf32, #tpu.memory_space<vmem>>, vector<1x128xf32>
    %c1 = arith.constant 1 : index
    %c0_6 = arith.constant 0 : index
    %10 = vector.load %arg3[%c1, %c0_6] : memref<48x128xf32, #tpu.memory_space<vmem>>, vector<1x128xf32>
    %c2 = arith.constant 2 : index
    %c0_7 = arith.constant 0 : index
    %11 = vector.load %arg3[%c2, %c0_7] : memref<48x128xf32, #tpu.memory_space<vmem>>, vector<1x128xf32>
    %cst_8 = arith.constant dense<0.000000e+00> : vector<16x128xf32>
    %12 = tpu.matmul %7, %8, %cst_8 {dimension_numbers = #tpu.dot_dimension_numbers<[1], [0], [0], [1], [0, 0, 1, 1], [], []>} : vector<16x144xbf16>, vector<144x128xbf16>, vector<16x128xf32> -> vector<16x128xf32>
    %13 = vector.broadcast %9 : vector<1x128xf32> to vector<16x128xf32>
    %14 = arith.addf %12, %13 : vector<16x128xf32>
    %cst_9 = arith.constant dense<0.000000e+00> : vector<128xf32>
    %15 = vector.multi_reduction <add>, %14, %cst_9 [0] : vector<16x128xf32> to vector<128xf32>
    %16 = vector.shape_cast %15 : vector<128xf32> to vector<1x128xf32>
    %17 = arith.mulf %14, %14 : vector<16x128xf32>
    %cst_10 = arith.constant dense<0.000000e+00> : vector<128xf32>
    %18 = vector.multi_reduction <add>, %17, %cst_10 [0] : vector<16x128xf32> to vector<128xf32>
    %19 = vector.shape_cast %18 : vector<128xf32> to vector<1x128xf32>
    %20 = tpu.concatenate %16, %19 in 0 : vector<1x128xf32>, vector<1x128xf32> -> vector<2x128xf32>
    %c0_11 = arith.constant 0 : index
    %c0_12 = arith.constant 0 : index
    %c0_13 = arith.constant 0 : index
    %21 = vector.load %arg4[%c0_11, %c0_12, %c0_13] : memref<4x128x128xf32, #tpu.memory_space<vmem>>, vector<1x128x128xf32>
    %22 = vector.shape_cast %21 : vector<1x128x128xf32> to vector<128x128xf32>
    %cst_14 = arith.constant dense<0.000000e+00> : vector<2x128xf32>
    %23 = tpu.matmul %20, %22, %cst_14 {dimension_numbers = #tpu.dot_dimension_numbers<[1], [0], [0], [1], [0, 0, 1, 1], [], []>} : vector<2x128xf32>, vector<128x128xf32>, vector<2x128xf32> -> vector<2x128xf32>
    %24 = vector.extract_strided_slice %23 {offsets = [0, 0], sizes = [1, 128], strides = [1, 1]} : vector<2x128xf32> to vector<1x128xf32>
    %25 = vector.extract_strided_slice %23 {offsets = [1, 0], sizes = [1, 128], strides = [1, 1]} : vector<2x128xf32> to vector<1x128xf32>
    %26 = arith.mulf %24, %24 : vector<1x128xf32>
    %27 = arith.subf %25, %26 : vector<1x128xf32>
    %cst_15 = arith.constant 0.000000e+00 : f32
    %28 = vector.broadcast %cst_15 : f32 to vector<1x128xf32>
    %29 = arith.maximumf %27, %28 : vector<1x128xf32>
    %30 = vector.broadcast %24 : vector<1x128xf32> to vector<16x128xf32>
    %31 = arith.subf %14, %30 : vector<16x128xf32>
    %cst_16 = arith.constant 9.99999974E-6 : f32
    %32 = vector.broadcast %cst_16 : f32 to vector<1x128xf32>
    %33 = arith.addf %29, %32 : vector<1x128xf32>
    %34 = math.rsqrt %33 : vector<1x128xf32>
    %35 = vector.broadcast %34 : vector<1x128xf32> to vector<16x128xf32>
    %36 = arith.mulf %31, %35 : vector<16x128xf32>
    %37 = vector.broadcast %10 : vector<1x128xf32> to vector<16x128xf32>
    %38 = arith.mulf %36, %37 : vector<16x128xf32>
    %39 = vector.broadcast %11 : vector<1x128xf32> to vector<16x128xf32>
    %40 = arith.addf %38, %39 : vector<16x128xf32>
    %cst_17 = arith.constant 0.000000e+00 : f32
    %41 = vector.broadcast %cst_17 : f32 to vector<16x128xf32>
    %42 = arith.maximumf %40, %41 : vector<16x128xf32>
    %43 = arith.truncf %42 : vector<16x128xf32> to vector<16x128xbf16>
    %cst_18 = arith.constant 0.000000e+00 : bf16
    %44 = vector.broadcast %cst_18 : bf16 to vector<1x128xbf16>
    %45 = tpu.concatenate %44, %43, %44 in 0 : vector<1x128xbf16>, vector<16x128xbf16>, vector<1x128xbf16> -> vector<18x128xbf16>
    %46 = vector.extract_strided_slice %45 {offsets = [0, 0], sizes = [16, 128], strides = [1, 1]} : vector<18x128xbf16> to vector<16x128xbf16>
    %47 = vector.extract_strided_slice %45 {offsets = [2, 0], sizes = [16, 128], strides = [1, 1]} : vector<18x128xbf16> to vector<16x128xbf16>
    %48 = tpu.concatenate %46, %43, %47 in 1 : vector<16x128xbf16>, vector<16x128xbf16>, vector<16x128xbf16> -> vector<16x384xbf16>
    %c144 = arith.constant 144 : index
    %c0_19 = arith.constant 0 : index
    %49 = vector.load %arg2[%c144, %c0_19] : memref<5840x128xbf16, #tpu.memory_space<vmem>>, vector<384x128xbf16>
    %c3 = arith.constant 3 : index
    %c0_20 = arith.constant 0 : index
    %50 = vector.load %arg3[%c3, %c0_20] : memref<48x128xf32, #tpu.memory_space<vmem>>, vector<1x128xf32>
    %c4 = arith.constant 4 : index
    %c0_21 = arith.constant 0 : index
    %51 = vector.load %arg3[%c4, %c0_21] : memref<48x128xf32, #tpu.memory_space<vmem>>, vector<1x128xf32>
    %c5 = arith.constant 5 : index
    %c0_22 = arith.constant 0 : index
    %52 = vector.load %arg3[%c5, %c0_22] : memref<48x128xf32, #tpu.memory_space<vmem>>, vector<1x128xf32>
    %cst_23 = arith.constant dense<0.000000e+00> : vector<16x128xf32>
    %53 = tpu.matmul %48, %49, %cst_23 {dimension_numbers = #tpu.dot_dimension_numbers<[1], [0], [0], [1], [0, 0, 1, 1], [], []>} : vector<16x384xbf16>, vector<384x128xbf16>, vector<16x128xf32> -> vector<16x128xf32>
    %54 = vector.broadcast %50 : vector<1x128xf32> to vector<16x128xf32>
    %55 = arith.addf %53, %54 : vector<16x128xf32>
    %cst_24 = arith.constant dense<0.000000e+00> : vector<128xf32>
    %56 = vector.multi_reduction <add>, %55, %cst_24 [0] : vector<16x128xf32> to vector<128xf32>
    %57 = vector.shape_cast %56 : vector<128xf32> to vector<1x128xf32>
    %58 = arith.mulf %55, %55 : vector<16x128xf32>
    %cst_25 = arith.constant dense<0.000000e+00> : vector<128xf32>
    %59 = vector.multi_reduction <add>, %58, %cst_25 [0] : vector<16x128xf32> to vector<128xf32>
    %60 = vector.shape_cast %59 : vector<128xf32> to vector<1x128xf32>
    %61 = tpu.concatenate %57, %60 in 0 : vector<1x128xf32>, vector<1x128xf32> -> vector<2x128xf32>
    %c0_26 = arith.constant 0 : index
    %c0_27 = arith.constant 0 : index
    %c0_28 = arith.constant 0 : index
    %62 = vector.load %arg4[%c0_26, %c0_27, %c0_28] : memref<4x128x128xf32, #tpu.memory_space<vmem>>, vector<1x128x128xf32>
    %63 = vector.shape_cast %62 : vector<1x128x128xf32> to vector<128x128xf32>
    %cst_29 = arith.constant dense<0.000000e+00> : vector<2x128xf32>
    %64 = tpu.matmul %61, %63, %cst_29 {dimension_numbers = #tpu.dot_dimension_numbers<[1], [0], [0], [1], [0, 0, 1, 1], [], []>} : vector<2x128xf32>, vector<128x128xf32>, vector<2x128xf32> -> vector<2x128xf32>
    %65 = vector.extract_strided_slice %64 {offsets = [0, 0], sizes = [1, 128], strides = [1, 1]} : vector<2x128xf32> to vector<1x128xf32>
    %66 = vector.extract_strided_slice %64 {offsets = [1, 0], sizes = [1, 128], strides = [1, 1]} : vector<2x128xf32> to vector<1x128xf32>
    %67 = arith.mulf %65, %65 : vector<1x128xf32>
    %68 = arith.subf %66, %67 : vector<1x128xf32>
    %cst_30 = arith.constant 0.000000e+00 : f32
    %69 = vector.broadcast %cst_30 : f32 to vector<1x128xf32>
    %70 = arith.maximumf %68, %69 : vector<1x128xf32>
    %71 = vector.broadcast %65 : vector<1x128xf32> to vector<16x128xf32>
    %72 = arith.subf %55, %71 : vector<16x128xf32>
    %cst_31 = arith.constant 9.99999974E-6 : f32
    %73 = vector.broadcast %cst_31 : f32 to vector<1x128xf32>
    %74 = arith.addf %70, %73 : vector<1x128xf32>
    %75 = math.rsqrt %74 : vector<1x128xf32>
    %76 = vector.broadcast %75 : vector<1x128xf32> to vector<16x128xf32>
    %77 = arith.mulf %72, %76 : vector<16x128xf32>
    %78 = vector.broadcast %51 : vector<1x128xf32> to vector<16x128xf32>
    %79 = arith.mulf %77, %78 : vector<16x128xf32>
    %80 = vector.broadcast %52 : vector<1x128xf32> to vector<16x128xf32>
    %81 = arith.addf %79, %80 : vector<16x128xf32>
    %cst_32 = arith.constant 0.000000e+00 : f32
    %82 = vector.broadcast %cst_32 : f32 to vector<16x128xf32>
    %83 = arith.maximumf %81, %82 : vector<16x128xf32>
    %c0_33 = arith.constant 0 : index
    %c0_34 = arith.constant 0 : index
    %c0_35 = arith.constant 0 : index
    %84 = vector.load %arg5[%c0_33, %c0_34, %c0_35] : memref<3x16x16xbf16, #tpu.memory_space<vmem>>, vector<1x16x16xbf16>
    %85 = vector.shape_cast %84 : vector<1x16x16xbf16> to vector<16x16xbf16>
    %86 = arith.truncf %83 : vector<16x128xf32> to vector<16x128xbf16>
    %cst_36 = arith.constant dense<0.000000e+00> : vector<16x128xf32>
    %87 = tpu.matmul %85, %86, %cst_36 {dimension_numbers = #tpu.dot_dimension_numbers<[1], [0], [0], [1], [0, 0, 1, 1], [], []>} : vector<16x16xbf16>, vector<16x128xbf16>, vector<16x128xf32> -> vector<16x128xf32>
    %88 = vector.extract_strided_slice %87 {offsets = [0, 0], sizes = [8, 128], strides = [1, 1]} : vector<16x128xf32> to vector<8x128xf32>
    %89 = vector.extract_strided_slice %87 {offsets = [8, 0], sizes = [8, 128], strides = [1, 1]} : vector<16x128xf32> to vector<8x128xf32>
    %90 = arith.maximumf %88, %89 : vector<8x128xf32>
    %91 = arith.truncf %90 : vector<8x128xf32> to vector<8x128xbf16>
    %c0_37 = arith.constant 0 : index
    %c0_38 = arith.constant 0 : index
    %c0_39 = arith.constant 0 : index
    %92 = vector.load %arg6[%c0_37, %c0_38, %c0_39] : memref<3x128x128xbf16, #tpu.memory_space<vmem>>, vector<1x128x128xbf16>
    %93 = vector.shape_cast %92 : vector<1x128x128xbf16> to vector<128x128xbf16>
    %cst_40 = arith.constant dense<0.000000e+00> : vector<8x128xf32>
    %94 = tpu.matmul %91, %93, %cst_40 {dimension_numbers = #tpu.dot_dimension_numbers<[1], [0], [0], [1], [0, 0, 1, 1], [], []>} : vector<8x128xbf16>, vector<128x128xbf16>, vector<8x128xf32> -> vector<8x128xf32>
    %c64_i32 = arith.constant 64 : i32
    %95 = tpu.dynamic_rotate %94 by %c64_i32 dim 1 : vector<8x128xf32>, i32 -> vector<8x128xf32>
    %96 = arith.maximumf %94, %95 : vector<8x128xf32>
    %97 = vector.extract_strided_slice %96 {offsets = [0, 0], sizes = [8, 64], strides = [1, 1]} : vector<8x128xf32> to vector<8x64xf32>
    %98 = arith.truncf %97 : vector<8x64xf32> to vector<8x64xbf16>
    %cst_41 = arith.constant 0.000000e+00 : bf16
    %99 = vector.broadcast %cst_41 : bf16 to vector<1x64xbf16>
    %100 = tpu.concatenate %99, %98, %99 in 0 : vector<1x64xbf16>, vector<8x64xbf16>, vector<1x64xbf16> -> vector<10x64xbf16>
    %101 = vector.extract_strided_slice %100 {offsets = [0, 0], sizes = [8, 64], strides = [1, 1]} : vector<10x64xbf16> to vector<8x64xbf16>
    %102 = vector.extract_strided_slice %100 {offsets = [2, 0], sizes = [8, 64], strides = [1, 1]} : vector<10x64xbf16> to vector<8x64xbf16>
    %103 = tpu.concatenate %101, %98, %102 in 1 : vector<8x64xbf16>, vector<8x64xbf16>, vector<8x64xbf16> -> vector<8x192xbf16>
    %c528 = arith.constant 528 : index
    %c0_42 = arith.constant 0 : index
    %104 = vector.load %arg2[%c528, %c0_42] : memref<5840x128xbf16, #tpu.memory_space<vmem>>, vector<192x128xbf16>
    %c6 = arith.constant 6 : index
    %c0_43 = arith.constant 0 : index
    %105 = vector.load %arg3[%c6, %c0_43] : memref<48x128xf32, #tpu.memory_space<vmem>>, vector<1x128xf32>
    %c7 = arith.constant 7 : index
    %c0_44 = arith.constant 0 : index
    %106 = vector.load %arg3[%c7, %c0_44] : memref<48x128xf32, #tpu.memory_space<vmem>>, vector<1x128xf32>
    %c8 = arith.constant 8 : index
    %c0_45 = arith.constant 0 : index
    %107 = vector.load %arg3[%c8, %c0_45] : memref<48x128xf32, #tpu.memory_space<vmem>>, vector<1x128xf32>
    %cst_46 = arith.constant dense<0.000000e+00> : vector<8x128xf32>
    %108 = tpu.matmul %103, %104, %cst_46 {dimension_numbers = #tpu.dot_dimension_numbers<[1], [0], [0], [1], [0, 0, 1, 1], [], []>} : vector<8x192xbf16>, vector<192x128xbf16>, vector<8x128xf32> -> vector<8x128xf32>
    %109 = vector.broadcast %105 : vector<1x128xf32> to vector<8x128xf32>
    %110 = arith.addf %108, %109 : vector<8x128xf32>
    %cst_47 = arith.constant dense<0.000000e+00> : vector<128xf32>
    %111 = vector.multi_reduction <add>, %110, %cst_47 [0] : vector<8x128xf32> to vector<128xf32>
    %112 = vector.shape_cast %111 : vector<128xf32> to vector<1x128xf32>
    %113 = arith.mulf %110, %110 : vector<8x128xf32>
    %cst_48 = arith.constant dense<0.000000e+00> : vector<128xf32>
    %114 = vector.multi_reduction <add>, %113, %cst_48 [0] : vector<8x128xf32> to vector<128xf32>
    %115 = vector.shape_cast %114 : vector<128xf32> to vector<1x128xf32>
    %116 = tpu.concatenate %112, %115 in 0 : vector<1x128xf32>, vector<1x128xf32> -> vector<2x128xf32>
    %c1_49 = arith.constant 1 : index
    %c0_50 = arith.constant 0 : index
    %c0_51 = arith.constant 0 : index
    %117 = vector.load %arg4[%c1_49, %c0_50, %c0_51] : memref<4x128x128xf32, #tpu.memory_space<vmem>>, vector<1x128x128xf32>
    %118 = vector.shape_cast %117 : vector<1x128x128xf32> to vector<128x128xf32>
    %cst_52 = arith.constant dense<0.000000e+00> : vector<2x128xf32>
    %119 = tpu.matmul %116, %118, %cst_52 {dimension_numbers = #tpu.dot_dimension_numbers<[1], [0], [0], [1], [0, 0, 1, 1], [], []>} : vector<2x128xf32>, vector<128x128xf32>, vector<2x128xf32> -> vector<2x128xf32>
    %120 = vector.extract_strided_slice %119 {offsets = [0, 0], sizes = [1, 128], strides = [1, 1]} : vector<2x128xf32> to vector<1x128xf32>
    %121 = vector.extract_strided_slice %119 {offsets = [1, 0], sizes = [1, 128], strides = [1, 1]} : vector<2x128xf32> to vector<1x128xf32>
    %122 = arith.mulf %120, %120 : vector<1x128xf32>
    %123 = arith.subf %121, %122 : vector<1x128xf32>
    %cst_53 = arith.constant 0.000000e+00 : f32
    %124 = vector.broadcast %cst_53 : f32 to vector<1x128xf32>
    %125 = arith.maximumf %123, %124 : vector<1x128xf32>
    %126 = vector.broadcast %120 : vector<1x128xf32> to vector<8x128xf32>
    %127 = arith.subf %110, %126 : vector<8x128xf32>
    %cst_54 = arith.constant 9.99999974E-6 : f32
    %128 = vector.broadcast %cst_54 : f32 to vector<1x128xf32>
    %129 = arith.addf %125, %128 : vector<1x128xf32>
    %130 = math.rsqrt %129 : vector<1x128xf32>
    %131 = vector.broadcast %130 : vector<1x128xf32> to vector<8x128xf32>
    %132 = arith.mulf %127, %131 : vector<8x128xf32>
    %133 = vector.broadcast %106 : vector<1x128xf32> to vector<8x128xf32>
    %134 = arith.mulf %132, %133 : vector<8x128xf32>
    %135 = vector.broadcast %107 : vector<1x128xf32> to vector<8x128xf32>
    %136 = arith.addf %134, %135 : vector<8x128xf32>
    %cst_55 = arith.constant 0.000000e+00 : f32
    %137 = vector.broadcast %cst_55 : f32 to vector<8x128xf32>
    %138 = arith.maximumf %136, %137 : vector<8x128xf32>
    %139 = arith.truncf %138 : vector<8x128xf32> to vector<8x128xbf16>
    %cst_56 = arith.constant 0.000000e+00 : bf16
    %140 = vector.broadcast %cst_56 : bf16 to vector<1x128xbf16>
    %141 = tpu.concatenate %140, %139, %140 in 0 : vector<1x128xbf16>, vector<8x128xbf16>, vector<1x128xbf16> -> vector<10x128xbf16>
    %142 = vector.extract_strided_slice %141 {offsets = [0, 0], sizes = [8, 128], strides = [1, 1]} : vector<10x128xbf16> to vector<8x128xbf16>
    %143 = vector.extract_strided_slice %141 {offsets = [2, 0], sizes = [8, 128], strides = [1, 1]} : vector<10x128xbf16> to vector<8x128xbf16>
    %144 = tpu.concatenate %142, %139, %143 in 1 : vector<8x128xbf16>, vector<8x128xbf16>, vector<8x128xbf16> -> vector<8x384xbf16>
    %c720 = arith.constant 720 : index
    %c0_57 = arith.constant 0 : index
    %145 = vector.load %arg2[%c720, %c0_57] : memref<5840x128xbf16, #tpu.memory_space<vmem>>, vector<384x128xbf16>
    %c9 = arith.constant 9 : index
    %c0_58 = arith.constant 0 : index
    %146 = vector.load %arg3[%c9, %c0_58] : memref<48x128xf32, #tpu.memory_space<vmem>>, vector<1x128xf32>
    %c10 = arith.constant 10 : index
    %c0_59 = arith.constant 0 : index
    %147 = vector.load %arg3[%c10, %c0_59] : memref<48x128xf32, #tpu.memory_space<vmem>>, vector<1x128xf32>
    %c11 = arith.constant 11 : index
    %c0_60 = arith.constant 0 : index
    %148 = vector.load %arg3[%c11, %c0_60] : memref<48x128xf32, #tpu.memory_space<vmem>>, vector<1x128xf32>
    %cst_61 = arith.constant dense<0.000000e+00> : vector<8x128xf32>
    %149 = tpu.matmul %144, %145, %cst_61 {dimension_numbers = #tpu.dot_dimension_numbers<[1], [0], [0], [1], [0, 0, 1, 1], [], []>} : vector<8x384xbf16>, vector<384x128xbf16>, vector<8x128xf32> -> vector<8x128xf32>
    %150 = vector.broadcast %146 : vector<1x128xf32> to vector<8x128xf32>
    %151 = arith.addf %149, %150 : vector<8x128xf32>
    %cst_62 = arith.constant dense<0.000000e+00> : vector<128xf32>
    %152 = vector.multi_reduction <add>, %151, %cst_62 [0] : vector<8x128xf32> to vector<128xf32>
    %153 = vector.shape_cast %152 : vector<128xf32> to vector<1x128xf32>
    %154 = arith.mulf %151, %151 : vector<8x128xf32>
    %cst_63 = arith.constant dense<0.000000e+00> : vector<128xf32>
    %155 = vector.multi_reduction <add>, %154, %cst_63 [0] : vector<8x128xf32> to vector<128xf32>
    %156 = vector.shape_cast %155 : vector<128xf32> to vector<1x128xf32>
    %157 = tpu.concatenate %153, %156 in 0 : vector<1x128xf32>, vector<1x128xf32> -> vector<2x128xf32>
    %c1_64 = arith.constant 1 : index
    %c0_65 = arith.constant 0 : index
    %c0_66 = arith.constant 0 : index
    %158 = vector.load %arg4[%c1_64, %c0_65, %c0_66] : memref<4x128x128xf32, #tpu.memory_space<vmem>>, vector<1x128x128xf32>
    %159 = vector.shape_cast %158 : vector<1x128x128xf32> to vector<128x128xf32>
    %cst_67 = arith.constant dense<0.000000e+00> : vector<2x128xf32>
    %160 = tpu.matmul %157, %159, %cst_67 {dimension_numbers = #tpu.dot_dimension_numbers<[1], [0], [0], [1], [0, 0, 1, 1], [], []>} : vector<2x128xf32>, vector<128x128xf32>, vector<2x128xf32> -> vector<2x128xf32>
    %161 = vector.extract_strided_slice %160 {offsets = [0, 0], sizes = [1, 128], strides = [1, 1]} : vector<2x128xf32> to vector<1x128xf32>
    %162 = vector.extract_strided_slice %160 {offsets = [1, 0], sizes = [1, 128], strides = [1, 1]} : vector<2x128xf32> to vector<1x128xf32>
    %163 = arith.mulf %161, %161 : vector<1x128xf32>
    %164 = arith.subf %162, %163 : vector<1x128xf32>
    %cst_68 = arith.constant 0.000000e+00 : f32
    %165 = vector.broadcast %cst_68 : f32 to vector<1x128xf32>
    %166 = arith.maximumf %164, %165 : vector<1x128xf32>
    %167 = vector.broadcast %161 : vector<1x128xf32> to vector<8x128xf32>
    %168 = arith.subf %151, %167 : vector<8x128xf32>
    %cst_69 = arith.constant 9.99999974E-6 : f32
    %169 = vector.broadcast %cst_69 : f32 to vector<1x128xf32>
    %170 = arith.addf %166, %169 : vector<1x128xf32>
    %171 = math.rsqrt %170 : vector<1x128xf32>
    %172 = vector.broadcast %171 : vector<1x128xf32> to vector<8x128xf32>
    %173 = arith.mulf %168, %172 : vector<8x128xf32>
    %174 = vector.broadcast %147 : vector<1x128xf32> to vector<8x128xf32>
    %175 = arith.mulf %173, %174 : vector<8x128xf32>
    %176 = vector.broadcast %148 : vector<1x128xf32> to vector<8x128xf32>
    %177 = arith.addf %175, %176 : vector<8x128xf32>
    %cst_70 = arith.constant 0.000000e+00 : f32
    %178 = vector.broadcast %cst_70 : f32 to vector<8x128xf32>
    %179 = arith.maximumf %177, %178 : vector<8x128xf32>
    %c1_71 = arith.constant 1 : index
    %c0_72 = arith.constant 0 : index
    %c0_73 = arith.constant 0 : index
    %180 = vector.load %arg5[%c1_71, %c0_72, %c0_73] : memref<3x16x16xbf16, #tpu.memory_space<vmem>>, vector<1x8x8xbf16>
    %181 = vector.shape_cast %180 : vector<1x8x8xbf16> to vector<8x8xbf16>
    %182 = arith.truncf %179 : vector<8x128xf32> to vector<8x128xbf16>
    %cst_74 = arith.constant dense<0.000000e+00> : vector<8x128xf32>
    %183 = tpu.matmul %181, %182, %cst_74 {dimension_numbers = #tpu.dot_dimension_numbers<[1], [0], [0], [1], [0, 0, 1, 1], [], []>} : vector<8x8xbf16>, vector<8x128xbf16>, vector<8x128xf32> -> vector<8x128xf32>
    %184 = vector.extract_strided_slice %183 {offsets = [0, 0], sizes = [4, 128], strides = [1, 1]} : vector<8x128xf32> to vector<4x128xf32>
    %185 = vector.extract_strided_slice %183 {offsets = [4, 0], sizes = [4, 128], strides = [1, 1]} : vector<8x128xf32> to vector<4x128xf32>
    %186 = arith.maximumf %184, %185 : vector<4x128xf32>
    %187 = arith.truncf %186 : vector<4x128xf32> to vector<4x128xbf16>
    %c1_75 = arith.constant 1 : index
    %c0_76 = arith.constant 0 : index
    %c0_77 = arith.constant 0 : index
    %188 = vector.load %arg6[%c1_75, %c0_76, %c0_77] : memref<3x128x128xbf16, #tpu.memory_space<vmem>>, vector<1x128x128xbf16>
    %189 = vector.shape_cast %188 : vector<1x128x128xbf16> to vector<128x128xbf16>
    %cst_78 = arith.constant dense<0.000000e+00> : vector<4x128xf32>
    %190 = tpu.matmul %187, %189, %cst_78 {dimension_numbers = #tpu.dot_dimension_numbers<[1], [0], [0], [1], [0, 0, 1, 1], [], []>} : vector<4x128xbf16>, vector<128x128xbf16>, vector<4x128xf32> -> vector<4x128xf32>
    %c64_i32_79 = arith.constant 64 : i32
    %191 = tpu.dynamic_rotate %190 by %c64_i32_79 dim 1 : vector<4x128xf32>, i32 -> vector<4x128xf32>
    %192 = arith.maximumf %190, %191 : vector<4x128xf32>
    %193 = vector.extract_strided_slice %192 {offsets = [0, 0], sizes = [4, 64], strides = [1, 1]} : vector<4x128xf32> to vector<4x64xf32>
    %194 = arith.truncf %193 : vector<4x64xf32> to vector<4x64xbf16>
    %cst_80 = arith.constant 0.000000e+00 : bf16
    %195 = vector.broadcast %cst_80 : bf16 to vector<1x64xbf16>
    %196 = tpu.concatenate %195, %194, %195 in 0 : vector<1x64xbf16>, vector<4x64xbf16>, vector<1x64xbf16> -> vector<6x64xbf16>
    %197 = vector.extract_strided_slice %196 {offsets = [0, 0], sizes = [4, 64], strides = [1, 1]} : vector<6x64xbf16> to vector<4x64xbf16>
    %198 = vector.extract_strided_slice %196 {offsets = [2, 0], sizes = [4, 64], strides = [1, 1]} : vector<6x64xbf16> to vector<4x64xbf16>
    %199 = tpu.concatenate %197, %194, %198 in 1 : vector<4x64xbf16>, vector<4x64xbf16>, vector<4x64xbf16> -> vector<4x192xbf16>
    %c1104 = arith.constant 1104 : index
    %c0_81 = arith.constant 0 : index
    %200 = vector.load %arg2[%c1104, %c0_81] : memref<5840x128xbf16, #tpu.memory_space<vmem>>, vector<192x128xbf16>
    %c12 = arith.constant 12 : index
    %c0_82 = arith.constant 0 : index
    %201 = vector.load %arg3[%c12, %c0_82] : memref<48x128xf32, #tpu.memory_space<vmem>>, vector<1x128xf32>
    %c13 = arith.constant 13 : index
    %c0_83 = arith.constant 0 : index
    %202 = vector.load %arg3[%c13, %c0_83] : memref<48x128xf32, #tpu.memory_space<vmem>>, vector<1x128xf32>
    %c14 = arith.constant 14 : index
    %c0_84 = arith.constant 0 : index
    %203 = vector.load %arg3[%c14, %c0_84] : memref<48x128xf32, #tpu.memory_space<vmem>>, vector<1x128xf32>
    %cst_85 = arith.constant dense<0.000000e+00> : vector<4x128xf32>
    %204 = tpu.matmul %199, %200, %cst_85 {dimension_numbers = #tpu.dot_dimension_numbers<[1], [0], [0], [1], [0, 0, 1, 1], [], []>} : vector<4x192xbf16>, vector<192x128xbf16>, vector<4x128xf32> -> vector<4x128xf32>
    %205 = vector.broadcast %201 : vector<1x128xf32> to vector<4x128xf32>
    %206 = arith.addf %204, %205 : vector<4x128xf32>
    %cst_86 = arith.constant dense<0.000000e+00> : vector<128xf32>
    %207 = vector.multi_reduction <add>, %206, %cst_86 [0] : vector<4x128xf32> to vector<128xf32>
    %208 = vector.shape_cast %207 : vector<128xf32> to vector<1x128xf32>
    %209 = arith.mulf %206, %206 : vector<4x128xf32>
    %cst_87 = arith.constant dense<0.000000e+00> : vector<128xf32>
    %210 = vector.multi_reduction <add>, %209, %cst_87 [0] : vector<4x128xf32> to vector<128xf32>
    %211 = vector.shape_cast %210 : vector<128xf32> to vector<1x128xf32>
    %212 = tpu.concatenate %208, %211 in 0 : vector<1x128xf32>, vector<1x128xf32> -> vector<2x128xf32>
    %c2_88 = arith.constant 2 : index
    %c0_89 = arith.constant 0 : index
    %c0_90 = arith.constant 0 : index
    %213 = vector.load %arg4[%c2_88, %c0_89, %c0_90] : memref<4x128x128xf32, #tpu.memory_space<vmem>>, vector<1x128x128xf32>
    %214 = vector.shape_cast %213 : vector<1x128x128xf32> to vector<128x128xf32>
    %cst_91 = arith.constant dense<0.000000e+00> : vector<2x128xf32>
    %215 = tpu.matmul %212, %214, %cst_91 {dimension_numbers = #tpu.dot_dimension_numbers<[1], [0], [0], [1], [0, 0, 1, 1], [], []>} : vector<2x128xf32>, vector<128x128xf32>, vector<2x128xf32> -> vector<2x128xf32>
    %216 = vector.extract_strided_slice %215 {offsets = [0, 0], sizes = [1, 128], strides = [1, 1]} : vector<2x128xf32> to vector<1x128xf32>
    %217 = vector.extract_strided_slice %215 {offsets = [1, 0], sizes = [1, 128], strides = [1, 1]} : vector<2x128xf32> to vector<1x128xf32>
    %218 = arith.mulf %216, %216 : vector<1x128xf32>
    %219 = arith.subf %217, %218 : vector<1x128xf32>
    %cst_92 = arith.constant 0.000000e+00 : f32
    %220 = vector.broadcast %cst_92 : f32 to vector<1x128xf32>
    %221 = arith.maximumf %219, %220 : vector<1x128xf32>
    %222 = vector.broadcast %216 : vector<1x128xf32> to vector<4x128xf32>
    %223 = arith.subf %206, %222 : vector<4x128xf32>
    %cst_93 = arith.constant 9.99999974E-6 : f32
    %224 = vector.broadcast %cst_93 : f32 to vector<1x128xf32>
    %225 = arith.addf %221, %224 : vector<1x128xf32>
    %226 = math.rsqrt %225 : vector<1x128xf32>
    %227 = vector.broadcast %226 : vector<1x128xf32> to vector<4x128xf32>
    %228 = arith.mulf %223, %227 : vector<4x128xf32>
    %229 = vector.broadcast %202 : vector<1x128xf32> to vector<4x128xf32>
    %230 = arith.mulf %228, %229 : vector<4x128xf32>
    %231 = vector.broadcast %203 : vector<1x128xf32> to vector<4x128xf32>
    %232 = arith.addf %230, %231 : vector<4x128xf32>
    %cst_94 = arith.constant 0.000000e+00 : f32
    %233 = vector.broadcast %cst_94 : f32 to vector<4x128xf32>
    %234 = arith.maximumf %232, %233 : vector<4x128xf32>
    %235 = arith.truncf %234 : vector<4x128xf32> to vector<4x128xbf16>
    %cst_95 = arith.constant 0.000000e+00 : bf16
    %236 = vector.broadcast %cst_95 : bf16 to vector<1x128xbf16>
    %237 = tpu.concatenate %236, %235, %236 in 0 : vector<1x128xbf16>, vector<4x128xbf16>, vector<1x128xbf16> -> vector<6x128xbf16>
    %238 = vector.extract_strided_slice %237 {offsets = [0, 0], sizes = [4, 128], strides = [1, 1]} : vector<6x128xbf16> to vector<4x128xbf16>
    %239 = vector.extract_strided_slice %237 {offsets = [2, 0], sizes = [4, 128], strides = [1, 1]} : vector<6x128xbf16> to vector<4x128xbf16>
    %240 = tpu.concatenate %238, %235, %239 in 1 : vector<4x128xbf16>, vector<4x128xbf16>, vector<4x128xbf16> -> vector<4x384xbf16>
    %c1296 = arith.constant 1296 : index
    %c0_96 = arith.constant 0 : index
    %241 = vector.load %arg2[%c1296, %c0_96] : memref<5840x128xbf16, #tpu.memory_space<vmem>>, vector<384x128xbf16>
    %c15 = arith.constant 15 : index
    %c0_97 = arith.constant 0 : index
    %242 = vector.load %arg3[%c15, %c0_97] : memref<48x128xf32, #tpu.memory_space<vmem>>, vector<1x128xf32>
    %c16 = arith.constant 16 : index
    %c0_98 = arith.constant 0 : index
    %243 = vector.load %arg3[%c16, %c0_98] : memref<48x128xf32, #tpu.memory_space<vmem>>, vector<1x128xf32>
    %c17 = arith.constant 17 : index
    %c0_99 = arith.constant 0 : index
    %244 = vector.load %arg3[%c17, %c0_99] : memref<48x128xf32, #tpu.memory_space<vmem>>, vector<1x128xf32>
    %cst_100 = arith.constant dense<0.000000e+00> : vector<4x128xf32>
    %245 = tpu.matmul %240, %241, %cst_100 {dimension_numbers = #tpu.dot_dimension_numbers<[1], [0], [0], [1], [0, 0, 1, 1], [], []>} : vector<4x384xbf16>, vector<384x128xbf16>, vector<4x128xf32> -> vector<4x128xf32>
    %246 = vector.broadcast %242 : vector<1x128xf32> to vector<4x128xf32>
    %247 = arith.addf %245, %246 : vector<4x128xf32>
    %cst_101 = arith.constant dense<0.000000e+00> : vector<128xf32>
    %248 = vector.multi_reduction <add>, %247, %cst_101 [0] : vector<4x128xf32> to vector<128xf32>
    %249 = vector.shape_cast %248 : vector<128xf32> to vector<1x128xf32>
    %250 = arith.mulf %247, %247 : vector<4x128xf32>
    %cst_102 = arith.constant dense<0.000000e+00> : vector<128xf32>
    %251 = vector.multi_reduction <add>, %250, %cst_102 [0] : vector<4x128xf32> to vector<128xf32>
    %252 = vector.shape_cast %251 : vector<128xf32> to vector<1x128xf32>
    %253 = tpu.concatenate %249, %252 in 0 : vector<1x128xf32>, vector<1x128xf32> -> vector<2x128xf32>
    %c2_103 = arith.constant 2 : index
    %c0_104 = arith.constant 0 : index
    %c0_105 = arith.constant 0 : index
    %254 = vector.load %arg4[%c2_103, %c0_104, %c0_105] : memref<4x128x128xf32, #tpu.memory_space<vmem>>, vector<1x128x128xf32>
    %255 = vector.shape_cast %254 : vector<1x128x128xf32> to vector<128x128xf32>
    %cst_106 = arith.constant dense<0.000000e+00> : vector<2x128xf32>
    %256 = tpu.matmul %253, %255, %cst_106 {dimension_numbers = #tpu.dot_dimension_numbers<[1], [0], [0], [1], [0, 0, 1, 1], [], []>} : vector<2x128xf32>, vector<128x128xf32>, vector<2x128xf32> -> vector<2x128xf32>
    %257 = vector.extract_strided_slice %256 {offsets = [0, 0], sizes = [1, 128], strides = [1, 1]} : vector<2x128xf32> to vector<1x128xf32>
    %258 = vector.extract_strided_slice %256 {offsets = [1, 0], sizes = [1, 128], strides = [1, 1]} : vector<2x128xf32> to vector<1x128xf32>
    %259 = arith.mulf %257, %257 : vector<1x128xf32>
    %260 = arith.subf %258, %259 : vector<1x128xf32>
    %cst_107 = arith.constant 0.000000e+00 : f32
    %261 = vector.broadcast %cst_107 : f32 to vector<1x128xf32>
    %262 = arith.maximumf %260, %261 : vector<1x128xf32>
    %263 = vector.broadcast %257 : vector<1x128xf32> to vector<4x128xf32>
    %264 = arith.subf %247, %263 : vector<4x128xf32>
    %cst_108 = arith.constant 9.99999974E-6 : f32
    %265 = vector.broadcast %cst_108 : f32 to vector<1x128xf32>
    %266 = arith.addf %262, %265 : vector<1x128xf32>
    %267 = math.rsqrt %266 : vector<1x128xf32>
    %268 = vector.broadcast %267 : vector<1x128xf32> to vector<4x128xf32>
    %269 = arith.mulf %264, %268 : vector<4x128xf32>
    %270 = vector.broadcast %243 : vector<1x128xf32> to vector<4x128xf32>
    %271 = arith.mulf %269, %270 : vector<4x128xf32>
    %272 = vector.broadcast %244 : vector<1x128xf32> to vector<4x128xf32>
    %273 = arith.addf %271, %272 : vector<4x128xf32>
    %cst_109 = arith.constant 0.000000e+00 : f32
    %274 = vector.broadcast %cst_109 : f32 to vector<4x128xf32>
    %275 = arith.maximumf %273, %274 : vector<4x128xf32>
    %c2_110 = arith.constant 2 : index
    %c0_111 = arith.constant 0 : index
    %c0_112 = arith.constant 0 : index
    %276 = vector.load %arg5[%c2_110, %c0_111, %c0_112] : memref<3x16x16xbf16, #tpu.memory_space<vmem>>, vector<1x4x4xbf16>
    %277 = vector.shape_cast %276 : vector<1x4x4xbf16> to vector<4x4xbf16>
    %278 = arith.truncf %275 : vector<4x128xf32> to vector<4x128xbf16>
    %cst_113 = arith.constant dense<0.000000e+00> : vector<4x128xf32>
    %279 = tpu.matmul %277, %278, %cst_113 {dimension_numbers = #tpu.dot_dimension_numbers<[1], [0], [0], [1], [0, 0, 1, 1], [], []>} : vector<4x4xbf16>, vector<4x128xbf16>, vector<4x128xf32> -> vector<4x128xf32>
    %280 = vector.extract_strided_slice %279 {offsets = [0, 0], sizes = [2, 128], strides = [1, 1]} : vector<4x128xf32> to vector<2x128xf32>
    %281 = vector.extract_strided_slice %279 {offsets = [2, 0], sizes = [2, 128], strides = [1, 1]} : vector<4x128xf32> to vector<2x128xf32>
    %282 = arith.maximumf %280, %281 : vector<2x128xf32>
    %283 = arith.truncf %282 : vector<2x128xf32> to vector<2x128xbf16>
    %c2_114 = arith.constant 2 : index
    %c0_115 = arith.constant 0 : index
    %c0_116 = arith.constant 0 : index
    %284 = vector.load %arg6[%c2_114, %c0_115, %c0_116] : memref<3x128x128xbf16, #tpu.memory_space<vmem>>, vector<1x128x128xbf16>
    %285 = vector.shape_cast %284 : vector<1x128x128xbf16> to vector<128x128xbf16>
    %cst_117 = arith.constant dense<0.000000e+00> : vector<2x128xf32>
    %286 = tpu.matmul %283, %285, %cst_117 {dimension_numbers = #tpu.dot_dimension_numbers<[1], [0], [0], [1], [0, 0, 1, 1], [], []>} : vector<2x128xbf16>, vector<128x128xbf16>, vector<2x128xf32> -> vector<2x128xf32>
    %c64_i32_118 = arith.constant 64 : i32
    %287 = tpu.dynamic_rotate %286 by %c64_i32_118 dim 1 : vector<2x128xf32>, i32 -> vector<2x128xf32>
    %288 = arith.maximumf %286, %287 : vector<2x128xf32>
    %289 = vector.extract_strided_slice %288 {offsets = [0, 0], sizes = [2, 64], strides = [1, 1]} : vector<2x128xf32> to vector<2x64xf32>
    %290 = arith.truncf %289 : vector<2x64xf32> to vector<2x64xbf16>
    %cst_119 = arith.constant 0.000000e+00 : bf16
    %291 = vector.broadcast %cst_119 : bf16 to vector<1x64xbf16>
    %292 = tpu.concatenate %291, %290, %291 in 0 : vector<1x64xbf16>, vector<2x64xbf16>, vector<1x64xbf16> -> vector<4x64xbf16>
    %293 = vector.extract_strided_slice %292 {offsets = [0, 0], sizes = [2, 64], strides = [1, 1]} : vector<4x64xbf16> to vector<2x64xbf16>
    %294 = vector.extract_strided_slice %292 {offsets = [2, 0], sizes = [2, 64], strides = [1, 1]} : vector<4x64xbf16> to vector<2x64xbf16>
    %295 = tpu.concatenate %293, %290, %294 in 1 : vector<2x64xbf16>, vector<2x64xbf16>, vector<2x64xbf16> -> vector<2x192xbf16>
    %c1680 = arith.constant 1680 : index
    %c0_120 = arith.constant 0 : index
    %296 = vector.load %arg2[%c1680, %c0_120] : memref<5840x128xbf16, #tpu.memory_space<vmem>>, vector<192x128xbf16>
    %c18 = arith.constant 18 : index
    %c0_121 = arith.constant 0 : index
    %297 = vector.load %arg3[%c18, %c0_121] : memref<48x128xf32, #tpu.memory_space<vmem>>, vector<1x128xf32>
    %c19 = arith.constant 19 : index
    %c0_122 = arith.constant 0 : index
    %298 = vector.load %arg3[%c19, %c0_122] : memref<48x128xf32, #tpu.memory_space<vmem>>, vector<1x128xf32>
    %c20 = arith.constant 20 : index
    %c0_123 = arith.constant 0 : index
    %299 = vector.load %arg3[%c20, %c0_123] : memref<48x128xf32, #tpu.memory_space<vmem>>, vector<1x128xf32>
    %cst_124 = arith.constant dense<0.000000e+00> : vector<2x128xf32>
    %300 = tpu.matmul %295, %296, %cst_124 {dimension_numbers = #tpu.dot_dimension_numbers<[1], [0], [0], [1], [0, 0, 1, 1], [], []>} : vector<2x192xbf16>, vector<192x128xbf16>, vector<2x128xf32> -> vector<2x128xf32>
    %301 = vector.broadcast %297 : vector<1x128xf32> to vector<2x128xf32>
    %302 = arith.addf %300, %301 : vector<2x128xf32>
    %cst_125 = arith.constant dense<0.000000e+00> : vector<128xf32>
    %303 = vector.multi_reduction <add>, %302, %cst_125 [0] : vector<2x128xf32> to vector<128xf32>
    %304 = vector.shape_cast %303 : vector<128xf32> to vector<1x128xf32>
    %305 = arith.mulf %302, %302 : vector<2x128xf32>
    %cst_126 = arith.constant dense<0.000000e+00> : vector<128xf32>
    %306 = vector.multi_reduction <add>, %305, %cst_126 [0] : vector<2x128xf32> to vector<128xf32>
    %307 = vector.shape_cast %306 : vector<128xf32> to vector<1x128xf32>
    %308 = tpu.concatenate %304, %307 in 0 : vector<1x128xf32>, vector<1x128xf32> -> vector<2x128xf32>
    %c3_127 = arith.constant 3 : index
    %c0_128 = arith.constant 0 : index
    %c0_129 = arith.constant 0 : index
    %309 = vector.load %arg4[%c3_127, %c0_128, %c0_129] : memref<4x128x128xf32, #tpu.memory_space<vmem>>, vector<1x128x128xf32>
    %310 = vector.shape_cast %309 : vector<1x128x128xf32> to vector<128x128xf32>
    %cst_130 = arith.constant dense<0.000000e+00> : vector<2x128xf32>
    %311 = tpu.matmul %308, %310, %cst_130 {dimension_numbers = #tpu.dot_dimension_numbers<[1], [0], [0], [1], [0, 0, 1, 1], [], []>} : vector<2x128xf32>, vector<128x128xf32>, vector<2x128xf32> -> vector<2x128xf32>
    %312 = vector.extract_strided_slice %311 {offsets = [0, 0], sizes = [1, 128], strides = [1, 1]} : vector<2x128xf32> to vector<1x128xf32>
    %313 = vector.extract_strided_slice %311 {offsets = [1, 0], sizes = [1, 128], strides = [1, 1]} : vector<2x128xf32> to vector<1x128xf32>
    %314 = arith.mulf %312, %312 : vector<1x128xf32>
    %315 = arith.subf %313, %314 : vector<1x128xf32>
    %cst_131 = arith.constant 0.000000e+00 : f32
    %316 = vector.broadcast %cst_131 : f32 to vector<1x128xf32>
    %317 = arith.maximumf %315, %316 : vector<1x128xf32>
    %318 = vector.broadcast %312 : vector<1x128xf32> to vector<2x128xf32>
    %319 = arith.subf %302, %318 : vector<2x128xf32>
    %cst_132 = arith.constant 9.99999974E-6 : f32
    %320 = vector.broadcast %cst_132 : f32 to vector<1x128xf32>
    %321 = arith.addf %317, %320 : vector<1x128xf32>
    %322 = math.rsqrt %321 : vector<1x128xf32>
    %323 = vector.broadcast %322 : vector<1x128xf32> to vector<2x128xf32>
    %324 = arith.mulf %319, %323 : vector<2x128xf32>
    %325 = vector.broadcast %298 : vector<1x128xf32> to vector<2x128xf32>
    %326 = arith.mulf %324, %325 : vector<2x128xf32>
    %327 = vector.broadcast %299 : vector<1x128xf32> to vector<2x128xf32>
    %328 = arith.addf %326, %327 : vector<2x128xf32>
    %cst_133 = arith.constant 0.000000e+00 : f32
    %329 = vector.broadcast %cst_133 : f32 to vector<2x128xf32>
    %330 = arith.maximumf %328, %329 : vector<2x128xf32>
    %331 = arith.truncf %330 : vector<2x128xf32> to vector<2x128xbf16>
    %cst_134 = arith.constant 0.000000e+00 : bf16
    %332 = vector.broadcast %cst_134 : bf16 to vector<1x128xbf16>
    %333 = tpu.concatenate %332, %331, %332 in 0 : vector<1x128xbf16>, vector<2x128xbf16>, vector<1x128xbf16> -> vector<4x128xbf16>
    %334 = vector.extract_strided_slice %333 {offsets = [0, 0], sizes = [2, 128], strides = [1, 1]} : vector<4x128xbf16> to vector<2x128xbf16>
    %335 = vector.extract_strided_slice %333 {offsets = [2, 0], sizes = [2, 128], strides = [1, 1]} : vector<4x128xbf16> to vector<2x128xbf16>
    %336 = tpu.concatenate %334, %331, %335 in 1 : vector<2x128xbf16>, vector<2x128xbf16>, vector<2x128xbf16> -> vector<2x384xbf16>
    %c1872 = arith.constant 1872 : index
    %c0_135 = arith.constant 0 : index
    %337 = vector.load %arg2[%c1872, %c0_135] : memref<5840x128xbf16, #tpu.memory_space<vmem>>, vector<384x128xbf16>
    %c21 = arith.constant 21 : index
    %c0_136 = arith.constant 0 : index
    %338 = vector.load %arg3[%c21, %c0_136] : memref<48x128xf32, #tpu.memory_space<vmem>>, vector<1x128xf32>
    %c22 = arith.constant 22 : index
    %c0_137 = arith.constant 0 : index
    %339 = vector.load %arg3[%c22, %c0_137] : memref<48x128xf32, #tpu.memory_space<vmem>>, vector<1x128xf32>
    %c23 = arith.constant 23 : index
    %c0_138 = arith.constant 0 : index
    %340 = vector.load %arg3[%c23, %c0_138] : memref<48x128xf32, #tpu.memory_space<vmem>>, vector<1x128xf32>
    %cst_139 = arith.constant dense<0.000000e+00> : vector<2x128xf32>
    %341 = tpu.matmul %336, %337, %cst_139 {dimension_numbers = #tpu.dot_dimension_numbers<[1], [0], [0], [1], [0, 0, 1, 1], [], []>} : vector<2x384xbf16>, vector<384x128xbf16>, vector<2x128xf32> -> vector<2x128xf32>
    %342 = vector.broadcast %338 : vector<1x128xf32> to vector<2x128xf32>
    %343 = arith.addf %341, %342 : vector<2x128xf32>
    %cst_140 = arith.constant dense<0.000000e+00> : vector<128xf32>
    %344 = vector.multi_reduction <add>, %343, %cst_140 [0] : vector<2x128xf32> to vector<128xf32>
    %345 = vector.shape_cast %344 : vector<128xf32> to vector<1x128xf32>
    %346 = arith.mulf %343, %343 : vector<2x128xf32>
    %cst_141 = arith.constant dense<0.000000e+00> : vector<128xf32>
    %347 = vector.multi_reduction <add>, %346, %cst_141 [0] : vector<2x128xf32> to vector<128xf32>
    %348 = vector.shape_cast %347 : vector<128xf32> to vector<1x128xf32>
    %349 = tpu.concatenate %345, %348 in 0 : vector<1x128xf32>, vector<1x128xf32> -> vector<2x128xf32>
    %c3_142 = arith.constant 3 : index
    %c0_143 = arith.constant 0 : index
    %c0_144 = arith.constant 0 : index
    %350 = vector.load %arg4[%c3_142, %c0_143, %c0_144] : memref<4x128x128xf32, #tpu.memory_space<vmem>>, vector<1x128x128xf32>
    %351 = vector.shape_cast %350 : vector<1x128x128xf32> to vector<128x128xf32>
    %cst_145 = arith.constant dense<0.000000e+00> : vector<2x128xf32>
    %352 = tpu.matmul %349, %351, %cst_145 {dimension_numbers = #tpu.dot_dimension_numbers<[1], [0], [0], [1], [0, 0, 1, 1], [], []>} : vector<2x128xf32>, vector<128x128xf32>, vector<2x128xf32> -> vector<2x128xf32>
    %353 = vector.extract_strided_slice %352 {offsets = [0, 0], sizes = [1, 128], strides = [1, 1]} : vector<2x128xf32> to vector<1x128xf32>
    %354 = vector.extract_strided_slice %352 {offsets = [1, 0], sizes = [1, 128], strides = [1, 1]} : vector<2x128xf32> to vector<1x128xf32>
    %355 = arith.mulf %353, %353 : vector<1x128xf32>
    %356 = arith.subf %354, %355 : vector<1x128xf32>
    %cst_146 = arith.constant 0.000000e+00 : f32
    %357 = vector.broadcast %cst_146 : f32 to vector<1x128xf32>
    %358 = arith.maximumf %356, %357 : vector<1x128xf32>
    %359 = vector.broadcast %353 : vector<1x128xf32> to vector<2x128xf32>
    %360 = arith.subf %343, %359 : vector<2x128xf32>
    %cst_147 = arith.constant 9.99999974E-6 : f32
    %361 = vector.broadcast %cst_147 : f32 to vector<1x128xf32>
    %362 = arith.addf %358, %361 : vector<1x128xf32>
    %363 = math.rsqrt %362 : vector<1x128xf32>
    %364 = vector.broadcast %363 : vector<1x128xf32> to vector<2x128xf32>
    %365 = arith.mulf %360, %364 : vector<2x128xf32>
    %366 = vector.broadcast %339 : vector<1x128xf32> to vector<2x128xf32>
    %367 = arith.mulf %365, %366 : vector<2x128xf32>
    %368 = vector.broadcast %340 : vector<1x128xf32> to vector<2x128xf32>
    %369 = arith.addf %367, %368 : vector<2x128xf32>
    %cst_148 = arith.constant 0.000000e+00 : f32
    %370 = vector.broadcast %cst_148 : f32 to vector<2x128xf32>
    %371 = arith.maximumf %369, %370 : vector<2x128xf32>
    %c0_149 = arith.constant 0 : index
    %c0_150 = arith.constant 0 : index
    %c0_151 = arith.constant 0 : index
    %372 = vector.load %arg7[%c0_149, %c0_150, %c0_151] : memref<3x16x8xbf16, #tpu.memory_space<vmem>>, vector<1x4x2xbf16>
    %373 = vector.shape_cast %372 : vector<1x4x2xbf16> to vector<4x2xbf16>
    %374 = arith.truncf %371 : vector<2x128xf32> to vector<2x128xbf16>
    %cst_152 = arith.constant dense<0.000000e+00> : vector<4x128xf32>
    %375 = tpu.matmul %373, %374, %cst_152 {dimension_numbers = #tpu.dot_dimension_numbers<[1], [0], [0], [1], [0, 0, 1, 1], [], []>} : vector<4x2xbf16>, vector<2x128xbf16>, vector<4x128xf32> -> vector<4x128xf32>
    %376 = arith.truncf %375 : vector<4x128xf32> to vector<4x128xbf16>
    %cst_153 = arith.constant 0.000000e+00 : bf16
    %377 = vector.broadcast %cst_153 : bf16 to vector<1x128xbf16>
    %378 = tpu.concatenate %377, %376, %377 in 0 : vector<1x128xbf16>, vector<4x128xbf16>, vector<1x128xbf16> -> vector<6x128xbf16>
    %379 = vector.extract_strided_slice %378 {offsets = [0, 0], sizes = [4, 128], strides = [1, 1]} : vector<6x128xbf16> to vector<4x128xbf16>
    %380 = vector.extract_strided_slice %378 {offsets = [2, 0], sizes = [4, 128], strides = [1, 1]} : vector<6x128xbf16> to vector<4x128xbf16>
    %381 = tpu.concatenate %379, %376, %380 in 1 : vector<4x128xbf16>, vector<4x128xbf16>, vector<4x128xbf16> -> vector<4x384xbf16>
    %382 = arith.truncf %275 : vector<4x128xf32> to vector<4x128xbf16>
    %cst_154 = arith.constant 0.000000e+00 : bf16
    %383 = vector.broadcast %cst_154 : bf16 to vector<1x128xbf16>
    %384 = tpu.concatenate %383, %382, %383 in 0 : vector<1x128xbf16>, vector<4x128xbf16>, vector<1x128xbf16> -> vector<6x128xbf16>
    %385 = vector.extract_strided_slice %384 {offsets = [0, 0], sizes = [4, 128], strides = [1, 1]} : vector<6x128xbf16> to vector<4x128xbf16>
    %386 = vector.extract_strided_slice %384 {offsets = [2, 0], sizes = [4, 128], strides = [1, 1]} : vector<6x128xbf16> to vector<4x128xbf16>
    %387 = tpu.concatenate %385, %382, %386 in 1 : vector<4x128xbf16>, vector<4x128xbf16>, vector<4x128xbf16> -> vector<4x384xbf16>
    %388 = tpu.concatenate %381, %387 in 1 : vector<4x384xbf16>, vector<4x384xbf16> -> vector<4x768xbf16>
    %c2256 = arith.constant 2256 : index
    %c0_155 = arith.constant 0 : index
    %389 = vector.load %arg2[%c2256, %c0_155] : memref<5840x128xbf16, #tpu.memory_space<vmem>>, vector<768x128xbf16>
    %c24 = arith.constant 24 : index
    %c0_156 = arith.constant 0 : index
    %390 = vector.load %arg3[%c24, %c0_156] : memref<48x128xf32, #tpu.memory_space<vmem>>, vector<1x128xf32>
    %c25 = arith.constant 25 : index
    %c0_157 = arith.constant 0 : index
    %391 = vector.load %arg3[%c25, %c0_157] : memref<48x128xf32, #tpu.memory_space<vmem>>, vector<1x128xf32>
    %c26 = arith.constant 26 : index
    %c0_158 = arith.constant 0 : index
    %392 = vector.load %arg3[%c26, %c0_158] : memref<48x128xf32, #tpu.memory_space<vmem>>, vector<1x128xf32>
    %cst_159 = arith.constant dense<0.000000e+00> : vector<4x128xf32>
    %393 = tpu.matmul %388, %389, %cst_159 {dimension_numbers = #tpu.dot_dimension_numbers<[1], [0], [0], [1], [0, 0, 1, 1], [], []>} : vector<4x768xbf16>, vector<768x128xbf16>, vector<4x128xf32> -> vector<4x128xf32>
    %394 = vector.broadcast %390 : vector<1x128xf32> to vector<4x128xf32>
    %395 = arith.addf %393, %394 : vector<4x128xf32>
    %cst_160 = arith.constant dense<0.000000e+00> : vector<128xf32>
    %396 = vector.multi_reduction <add>, %395, %cst_160 [0] : vector<4x128xf32> to vector<128xf32>
    %397 = vector.shape_cast %396 : vector<128xf32> to vector<1x128xf32>
    %398 = arith.mulf %395, %395 : vector<4x128xf32>
    %cst_161 = arith.constant dense<0.000000e+00> : vector<128xf32>
    %399 = vector.multi_reduction <add>, %398, %cst_161 [0] : vector<4x128xf32> to vector<128xf32>
    %400 = vector.shape_cast %399 : vector<128xf32> to vector<1x128xf32>
    %401 = tpu.concatenate %397, %400 in 0 : vector<1x128xf32>, vector<1x128xf32> -> vector<2x128xf32>
    %c2_162 = arith.constant 2 : index
    %c0_163 = arith.constant 0 : index
    %c0_164 = arith.constant 0 : index
    %402 = vector.load %arg4[%c2_162, %c0_163, %c0_164] : memref<4x128x128xf32, #tpu.memory_space<vmem>>, vector<1x128x128xf32>
    %403 = vector.shape_cast %402 : vector<1x128x128xf32> to vector<128x128xf32>
    %cst_165 = arith.constant dense<0.000000e+00> : vector<2x128xf32>
    %404 = tpu.matmul %401, %403, %cst_165 {dimension_numbers = #tpu.dot_dimension_numbers<[1], [0], [0], [1], [0, 0, 1, 1], [], []>} : vector<2x128xf32>, vector<128x128xf32>, vector<2x128xf32> -> vector<2x128xf32>
    %405 = vector.extract_strided_slice %404 {offsets = [0, 0], sizes = [1, 128], strides = [1, 1]} : vector<2x128xf32> to vector<1x128xf32>
    %406 = vector.extract_strided_slice %404 {offsets = [1, 0], sizes = [1, 128], strides = [1, 1]} : vector<2x128xf32> to vector<1x128xf32>
    %407 = arith.mulf %405, %405 : vector<1x128xf32>
    %408 = arith.subf %406, %407 : vector<1x128xf32>
    %cst_166 = arith.constant 0.000000e+00 : f32
    %409 = vector.broadcast %cst_166 : f32 to vector<1x128xf32>
    %410 = arith.maximumf %408, %409 : vector<1x128xf32>
    %411 = vector.broadcast %405 : vector<1x128xf32> to vector<4x128xf32>
    %412 = arith.subf %395, %411 : vector<4x128xf32>
    %cst_167 = arith.constant 9.99999974E-6 : f32
    %413 = vector.broadcast %cst_167 : f32 to vector<1x128xf32>
    %414 = arith.addf %410, %413 : vector<1x128xf32>
    %415 = math.rsqrt %414 : vector<1x128xf32>
    %416 = vector.broadcast %415 : vector<1x128xf32> to vector<4x128xf32>
    %417 = arith.mulf %412, %416 : vector<4x128xf32>
    %418 = vector.broadcast %391 : vector<1x128xf32> to vector<4x128xf32>
    %419 = arith.mulf %417, %418 : vector<4x128xf32>
    %420 = vector.broadcast %392 : vector<1x128xf32> to vector<4x128xf32>
    %421 = arith.addf %419, %420 : vector<4x128xf32>
    %cst_168 = arith.constant 0.000000e+00 : f32
    %422 = vector.broadcast %cst_168 : f32 to vector<4x128xf32>
    %423 = arith.maximumf %421, %422 : vector<4x128xf32>
    %424 = arith.truncf %423 : vector<4x128xf32> to vector<4x128xbf16>
    %cst_169 = arith.constant 0.000000e+00 : bf16
    %425 = vector.broadcast %cst_169 : bf16 to vector<1x128xbf16>
    %426 = tpu.concatenate %425, %424, %425 in 0 : vector<1x128xbf16>, vector<4x128xbf16>, vector<1x128xbf16> -> vector<6x128xbf16>
    %427 = vector.extract_strided_slice %426 {offsets = [0, 0], sizes = [4, 128], strides = [1, 1]} : vector<6x128xbf16> to vector<4x128xbf16>
    %428 = vector.extract_strided_slice %426 {offsets = [2, 0], sizes = [4, 128], strides = [1, 1]} : vector<6x128xbf16> to vector<4x128xbf16>
    %429 = tpu.concatenate %427, %424, %428 in 1 : vector<4x128xbf16>, vector<4x128xbf16>, vector<4x128xbf16> -> vector<4x384xbf16>
    %c3024 = arith.constant 3024 : index
    %c0_170 = arith.constant 0 : index
    %430 = vector.load %arg2[%c3024, %c0_170] : memref<5840x128xbf16, #tpu.memory_space<vmem>>, vector<384x128xbf16>
    %c27 = arith.constant 27 : index
    %c0_171 = arith.constant 0 : index
    %431 = vector.load %arg3[%c27, %c0_171] : memref<48x128xf32, #tpu.memory_space<vmem>>, vector<1x128xf32>
    %c28 = arith.constant 28 : index
    %c0_172 = arith.constant 0 : index
    %432 = vector.load %arg3[%c28, %c0_172] : memref<48x128xf32, #tpu.memory_space<vmem>>, vector<1x128xf32>
    %c29 = arith.constant 29 : index
    %c0_173 = arith.constant 0 : index
    %433 = vector.load %arg3[%c29, %c0_173] : memref<48x128xf32, #tpu.memory_space<vmem>>, vector<1x128xf32>
    %cst_174 = arith.constant dense<0.000000e+00> : vector<4x128xf32>
    %434 = tpu.matmul %429, %430, %cst_174 {dimension_numbers = #tpu.dot_dimension_numbers<[1], [0], [0], [1], [0, 0, 1, 1], [], []>} : vector<4x384xbf16>, vector<384x128xbf16>, vector<4x128xf32> -> vector<4x128xf32>
    %435 = vector.broadcast %431 : vector<1x128xf32> to vector<4x128xf32>
    %436 = arith.addf %434, %435 : vector<4x128xf32>
    %cst_175 = arith.constant dense<0.000000e+00> : vector<128xf32>
    %437 = vector.multi_reduction <add>, %436, %cst_175 [0] : vector<4x128xf32> to vector<128xf32>
    %438 = vector.shape_cast %437 : vector<128xf32> to vector<1x128xf32>
    %439 = arith.mulf %436, %436 : vector<4x128xf32>
    %cst_176 = arith.constant dense<0.000000e+00> : vector<128xf32>
    %440 = vector.multi_reduction <add>, %439, %cst_176 [0] : vector<4x128xf32> to vector<128xf32>
    %441 = vector.shape_cast %440 : vector<128xf32> to vector<1x128xf32>
    %442 = tpu.concatenate %438, %441 in 0 : vector<1x128xf32>, vector<1x128xf32> -> vector<2x128xf32>
    %c2_177 = arith.constant 2 : index
    %c0_178 = arith.constant 0 : index
    %c0_179 = arith.constant 0 : index
    %443 = vector.load %arg4[%c2_177, %c0_178, %c0_179] : memref<4x128x128xf32, #tpu.memory_space<vmem>>, vector<1x128x128xf32>
    %444 = vector.shape_cast %443 : vector<1x128x128xf32> to vector<128x128xf32>
    %cst_180 = arith.constant dense<0.000000e+00> : vector<2x128xf32>
    %445 = tpu.matmul %442, %444, %cst_180 {dimension_numbers = #tpu.dot_dimension_numbers<[1], [0], [0], [1], [0, 0, 1, 1], [], []>} : vector<2x128xf32>, vector<128x128xf32>, vector<2x128xf32> -> vector<2x128xf32>
    %446 = vector.extract_strided_slice %445 {offsets = [0, 0], sizes = [1, 128], strides = [1, 1]} : vector<2x128xf32> to vector<1x128xf32>
    %447 = vector.extract_strided_slice %445 {offsets = [1, 0], sizes = [1, 128], strides = [1, 1]} : vector<2x128xf32> to vector<1x128xf32>
    %448 = arith.mulf %446, %446 : vector<1x128xf32>
    %449 = arith.subf %447, %448 : vector<1x128xf32>
    %cst_181 = arith.constant 0.000000e+00 : f32
    %450 = vector.broadcast %cst_181 : f32 to vector<1x128xf32>
    %451 = arith.maximumf %449, %450 : vector<1x128xf32>
    %452 = vector.broadcast %446 : vector<1x128xf32> to vector<4x128xf32>
    %453 = arith.subf %436, %452 : vector<4x128xf32>
    %cst_182 = arith.constant 9.99999974E-6 : f32
    %454 = vector.broadcast %cst_182 : f32 to vector<1x128xf32>
    %455 = arith.addf %451, %454 : vector<1x128xf32>
    %456 = math.rsqrt %455 : vector<1x128xf32>
    %457 = vector.broadcast %456 : vector<1x128xf32> to vector<4x128xf32>
    %458 = arith.mulf %453, %457 : vector<4x128xf32>
    %459 = vector.broadcast %432 : vector<1x128xf32> to vector<4x128xf32>
    %460 = arith.mulf %458, %459 : vector<4x128xf32>
    %461 = vector.broadcast %433 : vector<1x128xf32> to vector<4x128xf32>
    %462 = arith.addf %460, %461 : vector<4x128xf32>
    %cst_183 = arith.constant 0.000000e+00 : f32
    %463 = vector.broadcast %cst_183 : f32 to vector<4x128xf32>
    %464 = arith.maximumf %462, %463 : vector<4x128xf32>
    %c1_184 = arith.constant 1 : index
    %c0_185 = arith.constant 0 : index
    %c0_186 = arith.constant 0 : index
    %465 = vector.load %arg7[%c1_184, %c0_185, %c0_186] : memref<3x16x8xbf16, #tpu.memory_space<vmem>>, vector<1x8x4xbf16>
    %466 = vector.shape_cast %465 : vector<1x8x4xbf16> to vector<8x4xbf16>
    %467 = arith.truncf %464 : vector<4x128xf32> to vector<4x128xbf16>
    %cst_187 = arith.constant dense<0.000000e+00> : vector<8x128xf32>
    %468 = tpu.matmul %466, %467, %cst_187 {dimension_numbers = #tpu.dot_dimension_numbers<[1], [0], [0], [1], [0, 0, 1, 1], [], []>} : vector<8x4xbf16>, vector<4x128xbf16>, vector<8x128xf32> -> vector<8x128xf32>
    %469 = arith.truncf %468 : vector<8x128xf32> to vector<8x128xbf16>
    %cst_188 = arith.constant 0.000000e+00 : bf16
    %470 = vector.broadcast %cst_188 : bf16 to vector<1x128xbf16>
    %471 = tpu.concatenate %470, %469, %470 in 0 : vector<1x128xbf16>, vector<8x128xbf16>, vector<1x128xbf16> -> vector<10x128xbf16>
    %472 = vector.extract_strided_slice %471 {offsets = [0, 0], sizes = [8, 128], strides = [1, 1]} : vector<10x128xbf16> to vector<8x128xbf16>
    %473 = vector.extract_strided_slice %471 {offsets = [2, 0], sizes = [8, 128], strides = [1, 1]} : vector<10x128xbf16> to vector<8x128xbf16>
    %474 = tpu.concatenate %472, %469, %473 in 1 : vector<8x128xbf16>, vector<8x128xbf16>, vector<8x128xbf16> -> vector<8x384xbf16>
    %475 = arith.truncf %179 : vector<8x128xf32> to vector<8x128xbf16>
    %cst_189 = arith.constant 0.000000e+00 : bf16
    %476 = vector.broadcast %cst_189 : bf16 to vector<1x128xbf16>
    %477 = tpu.concatenate %476, %475, %476 in 0 : vector<1x128xbf16>, vector<8x128xbf16>, vector<1x128xbf16> -> vector<10x128xbf16>
    %478 = vector.extract_strided_slice %477 {offsets = [0, 0], sizes = [8, 128], strides = [1, 1]} : vector<10x128xbf16> to vector<8x128xbf16>
    %479 = vector.extract_strided_slice %477 {offsets = [2, 0], sizes = [8, 128], strides = [1, 1]} : vector<10x128xbf16> to vector<8x128xbf16>
    %480 = tpu.concatenate %478, %475, %479 in 1 : vector<8x128xbf16>, vector<8x128xbf16>, vector<8x128xbf16> -> vector<8x384xbf16>
    %481 = tpu.concatenate %474, %480 in 1 : vector<8x384xbf16>, vector<8x384xbf16> -> vector<8x768xbf16>
    %c3408 = arith.constant 3408 : index
    %c0_190 = arith.constant 0 : index
    %482 = vector.load %arg2[%c3408, %c0_190] : memref<5840x128xbf16, #tpu.memory_space<vmem>>, vector<768x128xbf16>
    %c30 = arith.constant 30 : index
    %c0_191 = arith.constant 0 : index
    %483 = vector.load %arg3[%c30, %c0_191] : memref<48x128xf32, #tpu.memory_space<vmem>>, vector<1x128xf32>
    %c31 = arith.constant 31 : index
    %c0_192 = arith.constant 0 : index
    %484 = vector.load %arg3[%c31, %c0_192] : memref<48x128xf32, #tpu.memory_space<vmem>>, vector<1x128xf32>
    %c32 = arith.constant 32 : index
    %c0_193 = arith.constant 0 : index
    %485 = vector.load %arg3[%c32, %c0_193] : memref<48x128xf32, #tpu.memory_space<vmem>>, vector<1x128xf32>
    %cst_194 = arith.constant dense<0.000000e+00> : vector<8x128xf32>
    %486 = tpu.matmul %481, %482, %cst_194 {dimension_numbers = #tpu.dot_dimension_numbers<[1], [0], [0], [1], [0, 0, 1, 1], [], []>} : vector<8x768xbf16>, vector<768x128xbf16>, vector<8x128xf32> -> vector<8x128xf32>
    %487 = vector.broadcast %483 : vector<1x128xf32> to vector<8x128xf32>
    %488 = arith.addf %486, %487 : vector<8x128xf32>
    %cst_195 = arith.constant dense<0.000000e+00> : vector<128xf32>
    %489 = vector.multi_reduction <add>, %488, %cst_195 [0] : vector<8x128xf32> to vector<128xf32>
    %490 = vector.shape_cast %489 : vector<128xf32> to vector<1x128xf32>
    %491 = arith.mulf %488, %488 : vector<8x128xf32>
    %cst_196 = arith.constant dense<0.000000e+00> : vector<128xf32>
    %492 = vector.multi_reduction <add>, %491, %cst_196 [0] : vector<8x128xf32> to vector<128xf32>
    %493 = vector.shape_cast %492 : vector<128xf32> to vector<1x128xf32>
    %494 = tpu.concatenate %490, %493 in 0 : vector<1x128xf32>, vector<1x128xf32> -> vector<2x128xf32>
    %c1_197 = arith.constant 1 : index
    %c0_198 = arith.constant 0 : index
    %c0_199 = arith.constant 0 : index
    %495 = vector.load %arg4[%c1_197, %c0_198, %c0_199] : memref<4x128x128xf32, #tpu.memory_space<vmem>>, vector<1x128x128xf32>
    %496 = vector.shape_cast %495 : vector<1x128x128xf32> to vector<128x128xf32>
    %cst_200 = arith.constant dense<0.000000e+00> : vector<2x128xf32>
    %497 = tpu.matmul %494, %496, %cst_200 {dimension_numbers = #tpu.dot_dimension_numbers<[1], [0], [0], [1], [0, 0, 1, 1], [], []>} : vector<2x128xf32>, vector<128x128xf32>, vector<2x128xf32> -> vector<2x128xf32>
    %498 = vector.extract_strided_slice %497 {offsets = [0, 0], sizes = [1, 128], strides = [1, 1]} : vector<2x128xf32> to vector<1x128xf32>
    %499 = vector.extract_strided_slice %497 {offsets = [1, 0], sizes = [1, 128], strides = [1, 1]} : vector<2x128xf32> to vector<1x128xf32>
    %500 = arith.mulf %498, %498 : vector<1x128xf32>
    %501 = arith.subf %499, %500 : vector<1x128xf32>
    %cst_201 = arith.constant 0.000000e+00 : f32
    %502 = vector.broadcast %cst_201 : f32 to vector<1x128xf32>
    %503 = arith.maximumf %501, %502 : vector<1x128xf32>
    %504 = vector.broadcast %498 : vector<1x128xf32> to vector<8x128xf32>
    %505 = arith.subf %488, %504 : vector<8x128xf32>
    %cst_202 = arith.constant 9.99999974E-6 : f32
    %506 = vector.broadcast %cst_202 : f32 to vector<1x128xf32>
    %507 = arith.addf %503, %506 : vector<1x128xf32>
    %508 = math.rsqrt %507 : vector<1x128xf32>
    %509 = vector.broadcast %508 : vector<1x128xf32> to vector<8x128xf32>
    %510 = arith.mulf %505, %509 : vector<8x128xf32>
    %511 = vector.broadcast %484 : vector<1x128xf32> to vector<8x128xf32>
    %512 = arith.mulf %510, %511 : vector<8x128xf32>
    %513 = vector.broadcast %485 : vector<1x128xf32> to vector<8x128xf32>
    %514 = arith.addf %512, %513 : vector<8x128xf32>
    %cst_203 = arith.constant 0.000000e+00 : f32
    %515 = vector.broadcast %cst_203 : f32 to vector<8x128xf32>
    %516 = arith.maximumf %514, %515 : vector<8x128xf32>
    %517 = arith.truncf %516 : vector<8x128xf32> to vector<8x128xbf16>
    %cst_204 = arith.constant 0.000000e+00 : bf16
    %518 = vector.broadcast %cst_204 : bf16 to vector<1x128xbf16>
    %519 = tpu.concatenate %518, %517, %518 in 0 : vector<1x128xbf16>, vector<8x128xbf16>, vector<1x128xbf16> -> vector<10x128xbf16>
    %520 = vector.extract_strided_slice %519 {offsets = [0, 0], sizes = [8, 128], strides = [1, 1]} : vector<10x128xbf16> to vector<8x128xbf16>
    %521 = vector.extract_strided_slice %519 {offsets = [2, 0], sizes = [8, 128], strides = [1, 1]} : vector<10x128xbf16> to vector<8x128xbf16>
    %522 = tpu.concatenate %520, %517, %521 in 1 : vector<8x128xbf16>, vector<8x128xbf16>, vector<8x128xbf16> -> vector<8x384xbf16>
    %c4176 = arith.constant 4176 : index
    %c0_205 = arith.constant 0 : index
    %523 = vector.load %arg2[%c4176, %c0_205] : memref<5840x128xbf16, #tpu.memory_space<vmem>>, vector<384x128xbf16>
    %c33 = arith.constant 33 : index
    %c0_206 = arith.constant 0 : index
    %524 = vector.load %arg3[%c33, %c0_206] : memref<48x128xf32, #tpu.memory_space<vmem>>, vector<1x128xf32>
    %c34 = arith.constant 34 : index
    %c0_207 = arith.constant 0 : index
    %525 = vector.load %arg3[%c34, %c0_207] : memref<48x128xf32, #tpu.memory_space<vmem>>, vector<1x128xf32>
    %c35 = arith.constant 35 : index
    %c0_208 = arith.constant 0 : index
    %526 = vector.load %arg3[%c35, %c0_208] : memref<48x128xf32, #tpu.memory_space<vmem>>, vector<1x128xf32>
    %cst_209 = arith.constant dense<0.000000e+00> : vector<8x128xf32>
    %527 = tpu.matmul %522, %523, %cst_209 {dimension_numbers = #tpu.dot_dimension_numbers<[1], [0], [0], [1], [0, 0, 1, 1], [], []>} : vector<8x384xbf16>, vector<384x128xbf16>, vector<8x128xf32> -> vector<8x128xf32>
    %528 = vector.broadcast %524 : vector<1x128xf32> to vector<8x128xf32>
    %529 = arith.addf %527, %528 : vector<8x128xf32>
    %cst_210 = arith.constant dense<0.000000e+00> : vector<128xf32>
    %530 = vector.multi_reduction <add>, %529, %cst_210 [0] : vector<8x128xf32> to vector<128xf32>
    %531 = vector.shape_cast %530 : vector<128xf32> to vector<1x128xf32>
    %532 = arith.mulf %529, %529 : vector<8x128xf32>
    %cst_211 = arith.constant dense<0.000000e+00> : vector<128xf32>
    %533 = vector.multi_reduction <add>, %532, %cst_211 [0] : vector<8x128xf32> to vector<128xf32>
    %534 = vector.shape_cast %533 : vector<128xf32> to vector<1x128xf32>
    %535 = tpu.concatenate %531, %534 in 0 : vector<1x128xf32>, vector<1x128xf32> -> vector<2x128xf32>
    %c1_212 = arith.constant 1 : index
    %c0_213 = arith.constant 0 : index
    %c0_214 = arith.constant 0 : index
    %536 = vector.load %arg4[%c1_212, %c0_213, %c0_214] : memref<4x128x128xf32, #tpu.memory_space<vmem>>, vector<1x128x128xf32>
    %537 = vector.shape_cast %536 : vector<1x128x128xf32> to vector<128x128xf32>
    %cst_215 = arith.constant dense<0.000000e+00> : vector<2x128xf32>
    %538 = tpu.matmul %535, %537, %cst_215 {dimension_numbers = #tpu.dot_dimension_numbers<[1], [0], [0], [1], [0, 0, 1, 1], [], []>} : vector<2x128xf32>, vector<128x128xf32>, vector<2x128xf32> -> vector<2x128xf32>
    %539 = vector.extract_strided_slice %538 {offsets = [0, 0], sizes = [1, 128], strides = [1, 1]} : vector<2x128xf32> to vector<1x128xf32>
    %540 = vector.extract_strided_slice %538 {offsets = [1, 0], sizes = [1, 128], strides = [1, 1]} : vector<2x128xf32> to vector<1x128xf32>
    %541 = arith.mulf %539, %539 : vector<1x128xf32>
    %542 = arith.subf %540, %541 : vector<1x128xf32>
    %cst_216 = arith.constant 0.000000e+00 : f32
    %543 = vector.broadcast %cst_216 : f32 to vector<1x128xf32>
    %544 = arith.maximumf %542, %543 : vector<1x128xf32>
    %545 = vector.broadcast %539 : vector<1x128xf32> to vector<8x128xf32>
    %546 = arith.subf %529, %545 : vector<8x128xf32>
    %cst_217 = arith.constant 9.99999974E-6 : f32
    %547 = vector.broadcast %cst_217 : f32 to vector<1x128xf32>
    %548 = arith.addf %544, %547 : vector<1x128xf32>
    %549 = math.rsqrt %548 : vector<1x128xf32>
    %550 = vector.broadcast %549 : vector<1x128xf32> to vector<8x128xf32>
    %551 = arith.mulf %546, %550 : vector<8x128xf32>
    %552 = vector.broadcast %525 : vector<1x128xf32> to vector<8x128xf32>
    %553 = arith.mulf %551, %552 : vector<8x128xf32>
    %554 = vector.broadcast %526 : vector<1x128xf32> to vector<8x128xf32>
    %555 = arith.addf %553, %554 : vector<8x128xf32>
    %cst_218 = arith.constant 0.000000e+00 : f32
    %556 = vector.broadcast %cst_218 : f32 to vector<8x128xf32>
    %557 = arith.maximumf %555, %556 : vector<8x128xf32>
    %c2_219 = arith.constant 2 : index
    %c0_220 = arith.constant 0 : index
    %c0_221 = arith.constant 0 : index
    %558 = vector.load %arg7[%c2_219, %c0_220, %c0_221] : memref<3x16x8xbf16, #tpu.memory_space<vmem>>, vector<1x16x8xbf16>
    %559 = vector.shape_cast %558 : vector<1x16x8xbf16> to vector<16x8xbf16>
    %560 = arith.truncf %557 : vector<8x128xf32> to vector<8x128xbf16>
    %cst_222 = arith.constant dense<0.000000e+00> : vector<16x128xf32>
    %561 = tpu.matmul %559, %560, %cst_222 {dimension_numbers = #tpu.dot_dimension_numbers<[1], [0], [0], [1], [0, 0, 1, 1], [], []>} : vector<16x8xbf16>, vector<8x128xbf16>, vector<16x128xf32> -> vector<16x128xf32>
    %562 = arith.truncf %561 : vector<16x128xf32> to vector<16x128xbf16>
    %cst_223 = arith.constant 0.000000e+00 : bf16
    %563 = vector.broadcast %cst_223 : bf16 to vector<1x128xbf16>
    %564 = tpu.concatenate %563, %562, %563 in 0 : vector<1x128xbf16>, vector<16x128xbf16>, vector<1x128xbf16> -> vector<18x128xbf16>
    %565 = vector.extract_strided_slice %564 {offsets = [0, 0], sizes = [16, 128], strides = [1, 1]} : vector<18x128xbf16> to vector<16x128xbf16>
    %566 = vector.extract_strided_slice %564 {offsets = [2, 0], sizes = [16, 128], strides = [1, 1]} : vector<18x128xbf16> to vector<16x128xbf16>
    %567 = tpu.concatenate %565, %562, %566 in 1 : vector<16x128xbf16>, vector<16x128xbf16>, vector<16x128xbf16> -> vector<16x384xbf16>
    %568 = arith.truncf %83 : vector<16x128xf32> to vector<16x128xbf16>
    %cst_224 = arith.constant 0.000000e+00 : bf16
    %569 = vector.broadcast %cst_224 : bf16 to vector<1x128xbf16>
    %570 = tpu.concatenate %569, %568, %569 in 0 : vector<1x128xbf16>, vector<16x128xbf16>, vector<1x128xbf16> -> vector<18x128xbf16>
    %571 = vector.extract_strided_slice %570 {offsets = [0, 0], sizes = [16, 128], strides = [1, 1]} : vector<18x128xbf16> to vector<16x128xbf16>
    %572 = vector.extract_strided_slice %570 {offsets = [2, 0], sizes = [16, 128], strides = [1, 1]} : vector<18x128xbf16> to vector<16x128xbf16>
    %573 = tpu.concatenate %571, %568, %572 in 1 : vector<16x128xbf16>, vector<16x128xbf16>, vector<16x128xbf16> -> vector<16x384xbf16>
    %574 = tpu.concatenate %567, %573 in 1 : vector<16x384xbf16>, vector<16x384xbf16> -> vector<16x768xbf16>
    %c4560 = arith.constant 4560 : index
    %c0_225 = arith.constant 0 : index
    %575 = vector.load %arg2[%c4560, %c0_225] : memref<5840x128xbf16, #tpu.memory_space<vmem>>, vector<768x128xbf16>
    %c36 = arith.constant 36 : index
    %c0_226 = arith.constant 0 : index
    %576 = vector.load %arg3[%c36, %c0_226] : memref<48x128xf32, #tpu.memory_space<vmem>>, vector<1x128xf32>
    %c37 = arith.constant 37 : index
    %c0_227 = arith.constant 0 : index
    %577 = vector.load %arg3[%c37, %c0_227] : memref<48x128xf32, #tpu.memory_space<vmem>>, vector<1x128xf32>
    %c38 = arith.constant 38 : index
    %c0_228 = arith.constant 0 : index
    %578 = vector.load %arg3[%c38, %c0_228] : memref<48x128xf32, #tpu.memory_space<vmem>>, vector<1x128xf32>
    %cst_229 = arith.constant dense<0.000000e+00> : vector<16x128xf32>
    %579 = tpu.matmul %574, %575, %cst_229 {dimension_numbers = #tpu.dot_dimension_numbers<[1], [0], [0], [1], [0, 0, 1, 1], [], []>} : vector<16x768xbf16>, vector<768x128xbf16>, vector<16x128xf32> -> vector<16x128xf32>
    %580 = vector.broadcast %576 : vector<1x128xf32> to vector<16x128xf32>
    %581 = arith.addf %579, %580 : vector<16x128xf32>
    %cst_230 = arith.constant dense<0.000000e+00> : vector<128xf32>
    %582 = vector.multi_reduction <add>, %581, %cst_230 [0] : vector<16x128xf32> to vector<128xf32>
    %583 = vector.shape_cast %582 : vector<128xf32> to vector<1x128xf32>
    %584 = arith.mulf %581, %581 : vector<16x128xf32>
    %cst_231 = arith.constant dense<0.000000e+00> : vector<128xf32>
    %585 = vector.multi_reduction <add>, %584, %cst_231 [0] : vector<16x128xf32> to vector<128xf32>
    %586 = vector.shape_cast %585 : vector<128xf32> to vector<1x128xf32>
    %587 = tpu.concatenate %583, %586 in 0 : vector<1x128xf32>, vector<1x128xf32> -> vector<2x128xf32>
    %c0_232 = arith.constant 0 : index
    %c0_233 = arith.constant 0 : index
    %c0_234 = arith.constant 0 : index
    %588 = vector.load %arg4[%c0_232, %c0_233, %c0_234] : memref<4x128x128xf32, #tpu.memory_space<vmem>>, vector<1x128x128xf32>
    %589 = vector.shape_cast %588 : vector<1x128x128xf32> to vector<128x128xf32>
    %cst_235 = arith.constant dense<0.000000e+00> : vector<2x128xf32>
    %590 = tpu.matmul %587, %589, %cst_235 {dimension_numbers = #tpu.dot_dimension_numbers<[1], [0], [0], [1], [0, 0, 1, 1], [], []>} : vector<2x128xf32>, vector<128x128xf32>, vector<2x128xf32> -> vector<2x128xf32>
    %591 = vector.extract_strided_slice %590 {offsets = [0, 0], sizes = [1, 128], strides = [1, 1]} : vector<2x128xf32> to vector<1x128xf32>
    %592 = vector.extract_strided_slice %590 {offsets = [1, 0], sizes = [1, 128], strides = [1, 1]} : vector<2x128xf32> to vector<1x128xf32>
    %593 = arith.mulf %591, %591 : vector<1x128xf32>
    %594 = arith.subf %592, %593 : vector<1x128xf32>
    %cst_236 = arith.constant 0.000000e+00 : f32
    %595 = vector.broadcast %cst_236 : f32 to vector<1x128xf32>
    %596 = arith.maximumf %594, %595 : vector<1x128xf32>
    %597 = vector.broadcast %591 : vector<1x128xf32> to vector<16x128xf32>
    %598 = arith.subf %581, %597 : vector<16x128xf32>
    %cst_237 = arith.constant 9.99999974E-6 : f32
    %599 = vector.broadcast %cst_237 : f32 to vector<1x128xf32>
    %600 = arith.addf %596, %599 : vector<1x128xf32>
    %601 = math.rsqrt %600 : vector<1x128xf32>
    %602 = vector.broadcast %601 : vector<1x128xf32> to vector<16x128xf32>
    %603 = arith.mulf %598, %602 : vector<16x128xf32>
    %604 = vector.broadcast %577 : vector<1x128xf32> to vector<16x128xf32>
    %605 = arith.mulf %603, %604 : vector<16x128xf32>
    %606 = vector.broadcast %578 : vector<1x128xf32> to vector<16x128xf32>
    %607 = arith.addf %605, %606 : vector<16x128xf32>
    %cst_238 = arith.constant 0.000000e+00 : f32
    %608 = vector.broadcast %cst_238 : f32 to vector<16x128xf32>
    %609 = arith.maximumf %607, %608 : vector<16x128xf32>
    %610 = arith.truncf %609 : vector<16x128xf32> to vector<16x128xbf16>
    %cst_239 = arith.constant 0.000000e+00 : bf16
    %611 = vector.broadcast %cst_239 : bf16 to vector<1x128xbf16>
    %612 = tpu.concatenate %611, %610, %611 in 0 : vector<1x128xbf16>, vector<16x128xbf16>, vector<1x128xbf16> -> vector<18x128xbf16>
    %613 = vector.extract_strided_slice %612 {offsets = [0, 0], sizes = [16, 128], strides = [1, 1]} : vector<18x128xbf16> to vector<16x128xbf16>
    %614 = vector.extract_strided_slice %612 {offsets = [2, 0], sizes = [16, 128], strides = [1, 1]} : vector<18x128xbf16> to vector<16x128xbf16>
    %615 = tpu.concatenate %613, %610, %614 in 1 : vector<16x128xbf16>, vector<16x128xbf16>, vector<16x128xbf16> -> vector<16x384xbf16>
    %c5328 = arith.constant 5328 : index
    %c0_240 = arith.constant 0 : index
    %616 = vector.load %arg2[%c5328, %c0_240] : memref<5840x128xbf16, #tpu.memory_space<vmem>>, vector<384x128xbf16>
    %c39 = arith.constant 39 : index
    %c0_241 = arith.constant 0 : index
    %617 = vector.load %arg3[%c39, %c0_241] : memref<48x128xf32, #tpu.memory_space<vmem>>, vector<1x128xf32>
    %c40 = arith.constant 40 : index
    %c0_242 = arith.constant 0 : index
    %618 = vector.load %arg3[%c40, %c0_242] : memref<48x128xf32, #tpu.memory_space<vmem>>, vector<1x128xf32>
    %c41 = arith.constant 41 : index
    %c0_243 = arith.constant 0 : index
    %619 = vector.load %arg3[%c41, %c0_243] : memref<48x128xf32, #tpu.memory_space<vmem>>, vector<1x128xf32>
    %cst_244 = arith.constant dense<0.000000e+00> : vector<16x128xf32>
    %620 = tpu.matmul %615, %616, %cst_244 {dimension_numbers = #tpu.dot_dimension_numbers<[1], [0], [0], [1], [0, 0, 1, 1], [], []>} : vector<16x384xbf16>, vector<384x128xbf16>, vector<16x128xf32> -> vector<16x128xf32>
    %621 = vector.broadcast %617 : vector<1x128xf32> to vector<16x128xf32>
    %622 = arith.addf %620, %621 : vector<16x128xf32>
    %cst_245 = arith.constant dense<0.000000e+00> : vector<128xf32>
    %623 = vector.multi_reduction <add>, %622, %cst_245 [0] : vector<16x128xf32> to vector<128xf32>
    %624 = vector.shape_cast %623 : vector<128xf32> to vector<1x128xf32>
    %625 = arith.mulf %622, %622 : vector<16x128xf32>
    %cst_246 = arith.constant dense<0.000000e+00> : vector<128xf32>
    %626 = vector.multi_reduction <add>, %625, %cst_246 [0] : vector<16x128xf32> to vector<128xf32>
    %627 = vector.shape_cast %626 : vector<128xf32> to vector<1x128xf32>
    %628 = tpu.concatenate %624, %627 in 0 : vector<1x128xf32>, vector<1x128xf32> -> vector<2x128xf32>
    %c0_247 = arith.constant 0 : index
    %c0_248 = arith.constant 0 : index
    %c0_249 = arith.constant 0 : index
    %629 = vector.load %arg4[%c0_247, %c0_248, %c0_249] : memref<4x128x128xf32, #tpu.memory_space<vmem>>, vector<1x128x128xf32>
    %630 = vector.shape_cast %629 : vector<1x128x128xf32> to vector<128x128xf32>
    %cst_250 = arith.constant dense<0.000000e+00> : vector<2x128xf32>
    %631 = tpu.matmul %628, %630, %cst_250 {dimension_numbers = #tpu.dot_dimension_numbers<[1], [0], [0], [1], [0, 0, 1, 1], [], []>} : vector<2x128xf32>, vector<128x128xf32>, vector<2x128xf32> -> vector<2x128xf32>
    %632 = vector.extract_strided_slice %631 {offsets = [0, 0], sizes = [1, 128], strides = [1, 1]} : vector<2x128xf32> to vector<1x128xf32>
    %633 = vector.extract_strided_slice %631 {offsets = [1, 0], sizes = [1, 128], strides = [1, 1]} : vector<2x128xf32> to vector<1x128xf32>
    %634 = arith.mulf %632, %632 : vector<1x128xf32>
    %635 = arith.subf %633, %634 : vector<1x128xf32>
    %cst_251 = arith.constant 0.000000e+00 : f32
    %636 = vector.broadcast %cst_251 : f32 to vector<1x128xf32>
    %637 = arith.maximumf %635, %636 : vector<1x128xf32>
    %638 = vector.broadcast %632 : vector<1x128xf32> to vector<16x128xf32>
    %639 = arith.subf %622, %638 : vector<16x128xf32>
    %cst_252 = arith.constant 9.99999974E-6 : f32
    %640 = vector.broadcast %cst_252 : f32 to vector<1x128xf32>
    %641 = arith.addf %637, %640 : vector<1x128xf32>
    %642 = math.rsqrt %641 : vector<1x128xf32>
    %643 = vector.broadcast %642 : vector<1x128xf32> to vector<16x128xf32>
    %644 = arith.mulf %639, %643 : vector<16x128xf32>
    %645 = vector.broadcast %618 : vector<1x128xf32> to vector<16x128xf32>
    %646 = arith.mulf %644, %645 : vector<16x128xf32>
    %647 = vector.broadcast %619 : vector<1x128xf32> to vector<16x128xf32>
    %648 = arith.addf %646, %647 : vector<16x128xf32>
    %cst_253 = arith.constant 0.000000e+00 : f32
    %649 = vector.broadcast %cst_253 : f32 to vector<16x128xf32>
    %650 = arith.maximumf %648, %649 : vector<16x128xf32>
    %c5712 = arith.constant 5712 : index
    %c0_254 = arith.constant 0 : index
    %651 = vector.load %arg2[%c5712, %c0_254] : memref<5840x128xbf16, #tpu.memory_space<vmem>>, vector<128x128xbf16>
    %c42 = arith.constant 42 : index
    %c0_255 = arith.constant 0 : index
    %652 = vector.load %arg3[%c42, %c0_255] : memref<48x128xf32, #tpu.memory_space<vmem>>, vector<1x128xf32>
    %653 = arith.truncf %650 : vector<16x128xf32> to vector<16x128xbf16>
    %cst_256 = arith.constant dense<0.000000e+00> : vector<16x128xf32>
    %654 = tpu.matmul %653, %651, %cst_256 {dimension_numbers = #tpu.dot_dimension_numbers<[1], [0], [0], [1], [0, 0, 1, 1], [], []>} : vector<16x128xbf16>, vector<128x128xbf16>, vector<16x128xf32> -> vector<16x128xf32>
    %655 = vector.broadcast %652 : vector<1x128xf32> to vector<16x128xf32>
    %656 = arith.addf %654, %655 : vector<16x128xf32>
    %c0_257 = arith.constant 0 : index
    %c0_258 = arith.constant 0 : index
    %c0_259 = arith.constant 0 : index
    %657 = vector.load %arg8[%c0_257, %c0_258, %c0_259] : memref<1x16x128xf32, #tpu.memory_space<vmem>>, vector<1x16x128xf32>
    %658 = vector.shape_cast %657 : vector<1x16x128xf32> to vector<16x128xf32>
    %659 = vector.shape_cast %656 : vector<16x128xf32> to vector<1x16x128xf32>
    tpu.vector_store %arg8[%c0_257, %c0_258, %c0_259], %659 {strides = array<i32>} : memref<1x16x128xf32, #tpu.memory_space<vmem>>, vector<1x16x128xf32>,
    return
  }
  func.func @transform_0(%arg0: i32) -> (i32, i32, i32) {
    %c0_i32 = arith.constant 0 : i32
    %c0_i32_0 = arith.constant 0 : i32
    %c0_i32_1 = arith.constant 0 : i32
    return %arg0, %c0_i32, %c0_i32_0 : i32, i32, i32
  }
  func.func @transform_1(%arg0: i32) -> (i32, i32) {
    %c0_i32 = arith.constant 0 : i32
    %c0_i32_0 = arith.constant 0 : i32
    %c0_i32_1 = arith.constant 0 : i32
    return %c0_i32, %c0_i32_0 : i32, i32
  }
  func.func @transform_2(%arg0: i32) -> (i32, i32) {
    %c0_i32 = arith.constant 0 : i32
    %c0_i32_0 = arith.constant 0 : i32
    %c0_i32_1 = arith.constant 0 : i32
    return %c0_i32, %c0_i32_0 : i32, i32
  }
  func.func @transform_3(%arg0: i32) -> (i32, i32, i32) {
    %c0_i32 = arith.constant 0 : i32
    %c0_i32_0 = arith.constant 0 : i32
    %c0_i32_1 = arith.constant 0 : i32
    %c0_i32_2 = arith.constant 0 : i32
    return %c0_i32, %c0_i32_0, %c0_i32_1 : i32, i32, i32
  }
  func.func @transform_4(%arg0: i32) -> (i32, i32, i32) {
    %c0_i32 = arith.constant 0 : i32
    %c0_i32_0 = arith.constant 0 : i32
    %c0_i32_1 = arith.constant 0 : i32
    %c0_i32_2 = arith.constant 0 : i32
    return %c0_i32, %c0_i32_0, %c0_i32_1 : i32, i32, i32
  }
  func.func @transform_5(%arg0: i32) -> (i32, i32, i32) {
    %c0_i32 = arith.constant 0 : i32
    %c0_i32_0 = arith.constant 0 : i32
    %c0_i32_1 = arith.constant 0 : i32
    %c0_i32_2 = arith.constant 0 : i32
    return %c0_i32, %c0_i32_0, %c0_i32_1 : i32, i32, i32
  }
  func.func @transform_6(%arg0: i32) -> (i32, i32, i32) {
    %c0_i32 = arith.constant 0 : i32
    %c0_i32_0 = arith.constant 0 : i32
    %c0_i32_1 = arith.constant 0 : i32
    %c0_i32_2 = arith.constant 0 : i32
    return %c0_i32, %c0_i32_0, %c0_i32_1 : i32, i32, i32
  }
  func.func @transform_7(%arg0: i32) -> (i32, i32, i32) {
    %c0_i32 = arith.constant 0 : i32
    %c0_i32_0 = arith.constant 0 : i32
    %c0_i32_1 = arith.constant 0 : i32
    return %arg0, %c0_i32, %c0_i32_0 : i32, i32, i32
  }
}

</mosaic_0001>

<bundles_post_ra>
// kernel: simple_unet_forward.1
= control target key start
LH: loop header
LB: loop body
LE: loop exit
PB: predicated region body
PF: predicated region fallthrough
CT: control target
= control target key end

     0   :  { %12 = vsyncpa [#allocation3], 0  ;;  %s8617_s0 = inlined_call_operand.vmem [shape: f32[2,16,48], index: 0, kind: input, shape index: {}]   ;;  %s8618_s1 = inlined_call_operand.hbm [shape: bf16[5840,128], index: 1, kind: input, shape index: {}]   ;;  %s8619_s2 = inlined_call_operand.hbm [shape: f32[48,128], index: 2, kind: input, shape index: {}]   ;;  %s8620_s3 = inlined_call_operand.hbm [shape: f32[4,128,128], index: 3, kind: input, shape index: {}]   ;;  %s8621_s4 = inlined_call_operand.hbm [shape: bf16[3,16,16], index: 4, kind: input, shape index: {}]   ;;  %s8622_s5 = inlined_call_operand.hbm [shape: bf16[3,128,128], index: 5, kind: input, shape index: {}]   ;;  %s8623_s6 = inlined_call_operand.hbm [shape: bf16[3,16,8], index: 6, kind: input, shape index: {}]   ;;  %s8624_s7 = inlined_call_operand.vmem [shape: f32[2,16,128], index: 7, kind: output, shape index: {}]  }
   0x1   :  { %13 = vsyncpa [#allocation5], 0 }
   0x2   :  { %14 = vsyncpa [#allocation8], 0 }
   0x3   :  { %15 = vsyncpa [#allocation11], 0  ;;  %s8288_s24 = smov 0  }
   0x4 LB: > { %s229_s27 = sshll.u32 %s8619_s2, 4  ;;  %s8297_s28 = sadd.s32 4294967295, %s8233_s24   ;;  %s8233_s24 = sphi %s8288_s24, %s21_s24   ;;  %s230_s27 = int_to_ptr.hbm [resolvable:$true] %s229_s27 }
   0x5   : > { %p5848_p0 = scmp.ge.s32.totalorder %s8233_s24, 1  ;;  %p204_p1 = scmp.lt.s32.totalorder %s8233_s24, 3 }
   0x6   : > { %p7879_p2 = scmp.eq.s32.totalorder %s8297_s28, 0  ;;  %s8235_s30 = smov [#allocation4]  }
   0x7   : > { %p8302_p3 = pnand %p5848_p0, %p204_p1  ;;  %s231_s8 = sshll.u32 %s8235_s30, 4  ;;  %s232_s8 = int_to_ptr.vmem [resolvable:$true] %s231_s8 }
   0x8   : > { %s257_s12 = sshll.u32 %s8621_s4, 4  ;;  %s8236_s13 = smov [#allocation7]   ;;  %s258_s12 = int_to_ptr.hbm [resolvable:$true] %s257_s12 }
   0x9   : > { %p7860_p4 = pneg %p8302_p3  ;;  %s259_s14 = sshll.u32 %s8236_s13, 4  ;;  %s260_s14 = int_to_ptr.vmem [resolvable:$true] %s259_s14 }
   0xa   : > { %s8237_s15 = smov 128   ;;  %s8238_s16 = smov 8  }
   0xb   : > { %p8310_p5 = pnand %p7879_p2, %p7860_p4  ;;  %s215_s19 = sshll.u32 %s8618_s1, 4  ;;  %s216_s19 = int_to_ptr.hbm [resolvable:$true] %s215_s19 }
   0xc   : > { %s8239_s20 = smov 64   ;;  %s8240_s21 = smov 4  }
   0xd   : > { %7866 = dma.hbm_to_vmem [thread:$0]  (!%p8310_p5), %s230_s27, 768, %s232_s8, [#allocation5], %s8237_s15, %s8237_s15, %s8238_s16  }
   0xe   : > { %7872 = dma.hbm_to_vmem [thread:$0]  (!%p8310_p5), %s258_s12, 384, %s260_s14, [#allocation8], %s8239_s20, %s8239_s20, %s8240_s21  }
   0xf   : > { %s8241_s22 = smov [#allocation2]   ;;  %s243_s30 = sshll.u32 %s8620_s3, 4  ;;  %s244_s30 = int_to_ptr.hbm [resolvable:$true] %s243_s30 }
  0x10   : > { %s217_s23 = sshll.u32 %s8241_s22, 4  ;;  %s271_s10 = sshll.u32 %s8622_s5, 4  ;;  %s218_s23 = int_to_ptr.vmem [resolvable:$true] %s217_s23  ;;  %s272_s10 = int_to_ptr.hbm [resolvable:$true] %s271_s10 }
  0x11   : > { %7863 = dma.hbm_to_vmem [thread:$0]  (!%p8310_p5), %s216_s19, 46720, %s218_s23, [#allocation3], %s8239_s20, %s8239_s20, %s8240_s21  }
  0x12   : > { %s8242_s11 = smov [#allocation6]   ;;  %s8243_s12 = smov [#allocation9]  }
  0x13   : > { %s245_s13 = sshll.u32 %s8242_s11, 4  ;;  %s273_s14 = sshll.u32 %s8243_s12, 4  ;;  %s246_s13 = int_to_ptr.vmem [resolvable:$true] %s245_s13  ;;  %s274_s14 = int_to_ptr.vmem [resolvable:$true] %s273_s14 }
  0x14   : > { %7869 = dma.hbm_to_vmem [thread:$0]  (!%p8310_p5), %s244_s30, 8192, %s246_s13, [#allocation5], %s8237_s15, %s8237_s15, %s8238_s16  }
  0x15   : > { %s285_s22 = sshll.u32 %s8623_s6, 4  ;;  %s8244_s19 = smov [#allocation10]   ;;  %s286_s22 = int_to_ptr.hbm [resolvable:$true] %s285_s22 }
  0x16   : > { %7875 = dma.hbm_to_vmem [thread:$0]  (!%p8310_p5), %s272_s10, 3072, %s274_s14, [#allocation8], %s8239_s20, %s8239_s20, %s8240_s21  }
  0x17   : > { %s287_s23 = sshll.u32 %s8244_s19, 4  ;;  %311 = sbr.rel (%p8302_p3) target bundleno = 6899 (0x1af3), region = 48  ;;  %s288_s23 = int_to_ptr.vmem [resolvable:$true] %s287_s23 }
  0x18   : > { %7878 = dma.hbm_to_vmem [thread:$0]  (!%p8310_p5), %s286_s22, 384, %s288_s23, [#allocation11], %s8239_s20, %s8239_s20, %s8240_s21  }
  0x1c   : > { %8216 = dma.done.wait (%p7879_p2), [#allocation3], 46720  }
  0x1d   : > { %8218 = vsyncadd (%p7879_p2), [#allocation3], 4294920576 }
  0x1e   : > { %8220 = dma.done.wait (%p7879_p2), [#allocation5], 8960  }
  0x1f   : > { %8222 = vsyncadd (%p7879_p2), [#allocation5], 4294958336 }
  0x20   : > { %8224 = dma.done.wait (%p7879_p2), [#allocation8], 3456  }
  0x21   : > { %8226 = vsyncadd (%p7879_p2), [#allocation8], 4294963840 }
  0x22   : > { %8228 = dma.done.wait (%p7879_p2), [#allocation11], 384  }
  0x23   : > { %8230 = vsyncadd (%p7879_p2), [#allocation11], 4294966912  ;;  %p369_p6 = scmp.lt.s32.totalorder %s8297_s28, 1  ;;  %v7452_v2 = vld [vmem:[#allocation2 + $0x38] sm:$0xff]  ;;  %vm398_vm0 = vcmask 1040384   ;;  %v7451_v5 = vld [vmem:[#allocation2 + $0x30] sm:$0xff] }
  0x24   : > { %vm399_vm1 = vsmask.f32 256  ;;  %500 = vmatpush.bf16.msra.mxu0 %v7452_v2  ;;  %v7450_v8 = vld [vmem:[#allocation2 + $0x28] sm:$0xff]  ;;  %s8245_s20 = smov 48   ;;  %v7449_v14 = vld [vmem:[#allocation2 + $0x20] sm:$0xff]  ;;  %vm407_vm3 = vcmask 1046528  }
  0x25   : > { %s8636_s28 = smov (!%p369_p6, %s8297_s28), 1  ;;  %vm8370_vm2 = vmand %vm398_vm0, %vm399_vm1  ;;  %v7448_v20 = vld [vmem:[#allocation2 + $0x18] sm:$0xff]  ;;  %v7447_v22 = vld [vmem:[#allocation2 + $0x10] sm:$0xff]  ;;  %s8246_s21 = smov 96   ;;  %vm413_vm4 = vcmask 392192   ;;  %vm497_vm5 = vcmask 130048  }
  0x26   : > { %s7443_s29 = sshll.u32 %s8636_s28, 4  ;;  %v7446_v23 = vld [vmem:[#allocation2 + $0x8] sm:$0xff]  ;;  %v7453_v24 = vld [vmem:[#allocation2 + $0x40] sm:$0xff]  ;;  %vm417_vm6 = vcmask 785408   ;;  %v561_v30 = vld [vmem:[#allocation6 + $0x78] sm:$0xff]  ;;  %s8247_s25 = smov 64  }
  0x27   : > { %s373_s16 = scalar_lea.vmem %s8617_s0, %s7443_s29  ;;  %521 = vmatpush.bf16.msra.mxu1 %v7453_v24  ;;  %v7445_v25 = vld [vmem:[#allocation2] sm:$0xff]  ;;  %562 = vmatpush.msra.mxu2 %v561_v30  ;;  %v560_v31 = vld [vmem:[#allocation6 + $0x70] sm:$0xff]  ;;  %v558_v33 = vld [vmem:[#allocation6 + $0x60] sm:$0xff]  ;;  %vm1071_vm13 = vcmask 1044480   ;;  %vm1072_vm14 = vsmask.f32 4352  ;;  %s378_s27 = scalar_lea.vmem %s8624_s7, %s7443_s29 }
  0x28   : > { %v380_v0 = vld [vmem:[%s373_s16] sm:$0xff]  ;;  %v381_v1 = vld [vmem:[%s373_s16 + $0x8] sm:$0xff]  ;;  %501 = vmatpush.bf16.msra.mxu0 %v7451_v5  ;;  %v557_v34 = vld [vmem:[#allocation6 + $0x58] sm:$0xff]  ;;  %vm1079_vm1 = vcmask 523264  }
  0x29   : > { %v382_v3 = vpack.c.bf16 %v380_v0, %v380_v0  ;;  %v383_v4 = vpack.c.bf16 %v381_v1, %v381_v1  ;;  %563 = vmatpush.msra.mxu2 %v560_v31  ;;  %v559_v32 = vld [vmem:[#allocation6 + $0x68] sm:$0xff]  ;;  %v556_v35 = vld [vmem:[#allocation6 + $0x50] sm:$0xff]  ;;  %v554_v37 = vld [vmem:[#allocation6 + $0x40] sm:$0xff] }
  0x2a   : > { %v555_v36 = vld [vmem:[#allocation6 + $0x48] sm:$0xff]  ;;  %v553_v38 = vld [vmem:[#allocation6 + $0x38] sm:$0xff]  ;;  %v552_v39 = vld [vmem:[#allocation6 + $0x30] sm:$0xff] }
  0x2b   : > { %v386_v6 = vunpack.c.l.b16 %v382_v3  ;;  %v387_v7 = vunpack.c.l.b16 %v383_v4  ;;  %564 = vmatpush.msra.mxu2 %v559_v32  ;;  %v551_v40 = vld [vmem:[#allocation6 + $0x28] sm:$0xff]  ;;  %v550_v41 = vld [vmem:[#allocation6 + $0x20] sm:$0xff]  ;;  %v549_v42 = vld [vmem:[#allocation6 + $0x18] sm:$0xff] }
  0x2c   : > { %502 = vmatpush.bf16.msra.mxu0 %v7450_v8  ;;  %v548_v43 = vld [vmem:[#allocation6 + $0x10] sm:$0xff]  ;;  %v547_v44 = vld [vmem:[#allocation6 + $0x8] sm:$0xff]  ;;  %v546_v45 = vld [vmem:[#allocation6] sm:$0xff] }
  0x2d   : > { %v388_v9 = vpack.c.b16 %v387_v7, %v386_v6  ;;  %565 = vmatpush.msra.mxu2 %v558_v33  ;;  %v7912_v48 = vld [vmem:[#allocation4] ss:$0 sm:$0xff]  ;;  %v7469_v8 = vld [vmem:[#allocation2 + $0xc0] sm:$0xff]  ;;  %vm8405_vm15 = vmand %vm1071_vm13, %vm1072_vm14  ;;  %vm1726_vm13 = vsmask.f32 2304 }
  0x2e   : > { %848 = vmatpush.bf16.msrb.mxu1 %v7469_v8 }
  0x2f   : > { %403 = vrot.lane.b32.xlu0 %v388_v9, %s8245_s20  ;;  %v390_v10 = vshrl.u32 %v388_v9, 16  ;;  %v393_v11 = vshll.u32 %v388_v9, 16  ;;  %566 = vmatpush.msra.mxu2 %v557_v34  ;;  %v7468_v9 = vld [vmem:[#allocation2 + $0xb8] sm:$0xff] }
  0x30   : > { %503 = vmatpush.bf16.msra.mxu0 %v7449_v14  ;;  %v7460_v14 = vld [vmem:[#allocation2 + $0x78] sm:$0xff] }
  0x31   : > { %v392_v13 = vrot.slane %v390_v10, 7  ;;  %567 = vmatpush.msra.mxu2 %v556_v35  ;;  %v7461_v10 = vld [vmem:[#allocation2 + $0x80] sm:$0xff] }
  0x32   : > { %849 = vmatpush.bf16.msrb.mxu1 %v7468_v9  ;;  %834 = vmatpush.bf16.msra.mxu3 %v7461_v10  ;;  %v7915_v10 = vld [vmem:[#allocation4 + $0x3] ss:$0 sm:$0xff] }
  0x33   : > { %v395_v15 = vor.u32 %v393_v11, %v392_v13  ;;  %v402_v16 = vsel %vm8370_vm2, %v392_v13, 0  ;;  %568 = vmatpush.msra.mxu2 %v555_v36  ;;  %v7467_v11 = vld [vmem:[#allocation2 + $0xb0] sm:$0xff]  ;;  %v7477_v13 = vld [vmem:[#allocation2 + $0x100] sm:$0xff] }
  0x34   : > { %v409_v17 = vrot.slane %v402_v16, 1  ;;  %504 = vmatpush.bf16.msra.mxu0 %v7448_v20  ;;  %v7476_v16 = vld [vmem:[#allocation2 + $0xf8] sm:$0xff]  ;;  %v7458_v20 = vld [vmem:[#allocation2 + $0x68] sm:$0xff] }
  0x35   : > { %v401_v18 = vsel %vm8370_vm2, 0, %v395_v15  ;;  %569 = vmatpush.msra.mxu2 %v554_v37  ;;  %v7466_v15 = vld [vmem:[#allocation2 + $0xa8] sm:$0xff] }
  0x36   : > { %v408_v19 = vrot.slane %v401_v18, 1  ;;  %850 = vmatpush.bf16.msrb.mxu1 %v7467_v11  ;;  %835 = vmatpush.bf16.msra.mxu3 %v7460_v14 }
  0x37   : > { %570 = vmatpush.msra.mxu2 %v553_v38 }
  0x38   : > { %v410_v21 = vsel %vm407_vm3, %v408_v19, %v409_v17  ;;  %505 = vmatpush.bf16.msra.mxu0 %v7447_v22  ;;  %v7459_v17 = vld [vmem:[#allocation2 + $0x70] sm:$0xff] }
  0x39   : > { %411 = vrot.lane.b32.xlu0 %v410_v21, %s8246_s21  ;;  %571 = vmatpush.msra.mxu2 %v552_v39  ;;  %v7475_v19 = vld [vmem:[#allocation2 + $0xf0] sm:$0xff]  ;;  %v7464_v21 = vld [vmem:[#allocation2 + $0x98] sm:$0xff] }
  0x3a   : > { %851 = vmatpush.bf16.msrb.mxu1 %v7466_v15  ;;  %836 = vmatpush.bf16.msra.mxu3 %v7459_v17 }
  0x3b   : > { %572 = vmatpush.msra.mxu2 %v551_v40 }
  0x3c   : > { %506 = vmatpush.bf16.msra.mxu0 %v7446_v23  ;;  %v7474_v23 = vld [vmem:[#allocation2 + $0xe8] sm:$0xff] }
  0x3d   : > { %573 = vmatpush.msra.mxu2 %v550_v41 }
  0x3e   : > { %837 = vmatpush.bf16.msra.mxu3 %v7458_v20 }
  0x3f   : > { %574 = vmatpush.msra.mxu2 %v549_v42 }
  0x40   : > { %507 = vmatpush.bf16.msra.mxu0 %v7445_v25  ;;  %v7457_v25 = vld [vmem:[#allocation2 + $0x60] sm:$0xff] }
  0x41   : > { %575 = vmatpush.msra.mxu2 %v548_v43 }
  0x42   : > { %838 = vmatpush.bf16.msra.mxu3 %v7457_v25 }
  0x43   : > { %576 = vmatpush.msra.mxu2 %v547_v44 }
  0x44   : > { %862 = vmatpush.bf16.msrb.mxu0 %v7477_v13 }
  0x45   : > { %577 = vmatpush.msra.mxu2 %v546_v45 }
  0x47   : > { %893 = vmatpush.msrb.mxu2 %v561_v30  ;;  %v7456_v30 = vld [vmem:[#allocation2 + $0x58] sm:$0xff] }
  0x48   : > { %863 = vmatpush.bf16.msrb.mxu0 %v7476_v16  ;;  %839 = vmatpush.bf16.msra.mxu3 %v7456_v30 }
  0x49   : > { %894 = vmatpush.msrb.mxu2 %v560_v31  ;;  %v7462_v31 = vld [vmem:[#allocation2 + $0x88] sm:$0xff] }
  0x4b   : > { %895 = vmatpush.msrb.mxu2 %v559_v32 }
  0x4c   : > { %864 = vmatpush.bf16.msrb.mxu0 %v7475_v19 }
  0x4d   : > { %896 = vmatpush.msrb.mxu2 %v558_v33  ;;  %v7472_v33 = vld [vmem:[#allocation2 + $0xd8] sm:$0xff] }
  0x4f   : > { %897 = vmatpush.msrb.mxu2 %v557_v34 }
  0x50   : > { %865 = vmatpush.bf16.msrb.mxu0 %v7474_v23 }
  0x51   : > { %898 = vmatpush.msrb.mxu2 %v556_v35  ;;  %v7455_v35 = vld [vmem:[#allocation2 + $0x50] sm:$0xff] }
  0x52   : > { %840 = vmatpush.bf16.msra.mxu3 %v7455_v35 }
  0x53   : > { %899 = vmatpush.msrb.mxu2 %v555_v36  ;;  %v7471_v36 = vld [vmem:[#allocation2 + $0xd0] sm:$0xff] }
  0x55   : > { %900 = vmatpush.msrb.mxu2 %v554_v37  ;;  %v7454_v37 = vld [vmem:[#allocation2 + $0x48] sm:$0xff] }
  0x56   : > { %841 = vmatpush.bf16.msra.mxu3 %v7454_v37 }
  0x57   : > { %901 = vmatpush.msrb.mxu2 %v553_v38 }
  0x59   : > { %902 = vmatpush.msrb.mxu2 %v552_v39 }
  0x5b   : > { %903 = vmatpush.msrb.mxu2 %v551_v40  ;;  %v7470_v40 = vld [vmem:[#allocation2 + $0xc8] sm:$0xff] }
  0x5d   : > { %904 = vmatpush.msrb.mxu2 %v550_v41 }
  0x5f   : > { %905 = vmatpush.msrb.mxu2 %v549_v42 }
  0x61   : > { %906 = vmatpush.msrb.mxu2 %v548_v43 }
  0x63   : > { %907 = vmatpush.msrb.mxu2 %v547_v44 }
  0x65   : > { %908 = vmatpush.msrb.mxu2 %v546_v45 }
  0xa1   : > { %v404_v26 = vpop.permute.xlu0 %403 }
  0xa2   : > { %v416_v27 = vsel %vm413_vm4, %v401_v18, %v404_v26  ;;  %v7465_v18 = vld [vmem:[#allocation2 + $0xa0] sm:$0xff]  ;;  %v7463_v26 = vld [vmem:[#allocation2 + $0x90] sm:$0xff] }
  0xa3   : > { %852 = vmatpush.bf16.msrb.mxu1 %v7465_v18 }
  0xa7   : > { %853 = vmatpush.bf16.msrb.mxu1 %v7464_v21 }
  0xab   : > { %v412_v28 = vpop.permute.xlu0 %411  ;;  %854 = vmatpush.bf16.msrb.mxu1 %v7463_v26 }
  0xac   : > { %5903 = vmatmul.msk.bf16.vlgmr.msra.gmra.mxu1 %vm497_vm5, %v412_v28  ;;  %v419_v29 = vsel %vm417_vm6, %v416_v27, %v412_v28  ;;  %v7473_v28 = vld [vmem:[#allocation2 + $0xe0] sm:$0xff] }
  0xad   : > { %508 = vmatmul.bf16.vlgmr.msra.gmra.mxu0 %v419_v29 }
  0xae   : > { %866 = vmatpush.bf16.msrb.mxu0 %v7473_v28 }
  0xaf   : > { %855 = vmatpush.bf16.msrb.mxu1 %v7462_v31 }
  0xb2   : > { %867 = vmatpush.bf16.msrb.mxu0 %v7472_v33 }
  0xb6   : > { %868 = vmatpush.bf16.msrb.mxu0 %v7471_v36 }
  0xba   : > { %869 = vmatpush.bf16.msrb.mxu0 %v7470_v40 }
 0x129   : > { %v523_v46 = vpop.f32.mrf.mxu1 }
 0x12a   : > { %v509_v47 = vpop.f32.mrf.mxu0 }
 0x12b   : > { %v510_v49 = vadd.f32 %v7912_v48, %v509_v47 }
 0x12d   : > { %v8380_v51 = vadd.f32 %v523_v46, %v510_v49 }
 0x12f   : > { %v535_v55 = vmul.f32 %v8380_v51, %v8380_v51 }
 0x131   : > { %v525_v53 = vpop.f32.mrf.mxu1 }
 0x132   : > { %v511_v50 = vpop.f32.mrf.mxu0 }
 0x133   : > { %v512_v52 = vadd.f32 %v7912_v48, %v511_v50  ;;  %v7913_v50 = vld [vmem:[#allocation4 + $0x1] ss:$0 sm:$0xff] }
 0x135   : > { %v8382_v54 = vadd.f32 %v525_v53, %v512_v52 }
 0x137   : > { %v528_v56 = vadd.f32 %v8382_v54, %v8380_v51  ;;  %v536_v57 = vmul.f32 %v8382_v54, %v8382_v54 }
 0x139   : > { %v529_v58 = vrot.slane %v528_v56, 4  ;;  %v537_v59 = vadd.f32 %v536_v57, %v535_v55  ;;  %v7914_v55 = vld [vmem:[#allocation4 + $0x2] ss:$0 sm:$0xff] }
 0x13b   : > { %v530_v60 = vadd.f32 %v529_v58, %v528_v56  ;;  %v538_v61 = vrot.slane %v537_v59, 4 }
 0x13d   : > { %v531_v62 = vrot.slane %v530_v60, 2  ;;  %v539_v63 = vadd.f32 %v538_v61, %v537_v59 }
 0x13f   : > { %v532_v0 = vadd.f32 %v531_v62, %v530_v60  ;;  %v540_v1 = vrot.slane %v539_v63, 2 }
 0x141   : > { %v533_v2 = vrot.slane %v532_v0, 1  ;;  %v541_v3 = vadd.f32 %v540_v1, %v539_v63 }
 0x143   : > { %v542_v4 = vrot.slane %v541_v3, 1  ;;  %v534_v5 = vadd.f32 %v533_v2, %v532_v0 }
 0x145   : > { %v543_v6 = vadd.f32 %v542_v4, %v541_v3 }
 0x147   : > { %v545_v7 = vsel %vm398_vm0, %v534_v5, %v543_v6 }
 0x148   : > { %578 = vmatmul.f32.vlgmr.msra.gmra.mxu2 %v545_v7 }
 0x1cb   : > { %v579_v22 = vpop.f32.mrf.mxu2 }
 0x1cc   : > { %v582_v24 = vmul.f32 %v579_v22, %v579_v22  ;;  %v588_v44 = vperm.slane %v579_v22, 0 }
 0x1ce   : > { %v584_v27 = vrot.slane %v582_v24, 7  ;;  %v589_v47 = vsub.f32 %v8380_v51, %v588_v44  ;;  %v590_v48 = vsub.f32 %v8382_v54, %v588_v44 }
 0x1d0   : > { %v586_v29 = vsub.f32 %v579_v22, %v584_v27 }
 0x1d2   : > { %v587_v32 = vmax.f32 %v586_v29, 0.0 }
 0x1d4   : > { %v591_v34 = vadd.f32 1e-05, %v587_v32 }
 0x1d6   : > { %7955 = vrsqrt.f32 %v591_v34  ;;  %vm598_vm8 = vweird.f32 %v591_v34 }
 0x1dc   : > { %v7956_v38 = vpop.eup %7955 }
 0x1dd   : > { %v593_v39 = vmul.f32 %v7956_v38, %v591_v34  ;;  %vm599_vm7 = vweird.f32 %v7956_v38 }
 0x1de   : > { %vm600_vm9 = vmor %vm598_vm8, %vm599_vm7 }
 0x1df   : > { %v594_v41 = vmul.f32 %v7956_v38, %v593_v39 }
 0x1e1   : > { %v595_v42 = vmul.f32 0.5, %v594_v41 }
 0x1e3   : > { %v596_v43 = vsub.f32 1.5, %v595_v42 }
 0x1e5   : > { %v597_v45 = vmul.f32 %v7956_v38, %v596_v43 }
 0x1e7   : > { %v601_v46 = vsel %vm600_vm9, %v7956_v38, %v597_v45 }
 0x1e8   : > { %v602_v49 = vperm.slane %v601_v46, 1 }
 0x1ea   : > { %v603_v52 = vmul.f32 %v602_v49, %v589_v47  ;;  %v604_v53 = vmul.f32 %v602_v49, %v590_v48  ;;  %v7486_v47 = vld [vmem:[#allocation9 + $0x38] sm:$0xff] }
 0x1eb   : > { %1042 = vmatpush.bf16.msra.mxu1 %v7486_v47 }
 0x1ec   : > { %v606_v56 = vmul.f32 %v7913_v50, %v603_v52  ;;  %v607_v57 = vmul.f32 %v7913_v50, %v604_v53  ;;  %v7485_v50 = vld [vmem:[#allocation9 + $0x30] sm:$0xff] }
 0x1ee   : > { %v609_v58 = vadd.f32 %v7914_v55, %v606_v56  ;;  %v610_v59 = vadd.f32 %v7914_v55, %v607_v57  ;;  %v7484_v55 = vld [vmem:[#allocation9 + $0x28] sm:$0xff] }
 0x1ef   : > { %1043 = vmatpush.bf16.msra.mxu1 %v7485_v50  ;;  %v1243_v50 = vld [vmem:[#allocation6 + $0xf8] sm:$0xff] }
 0x1f0   : > { %v611_v60 = vmax.f32 %v609_v58, 0.0  ;;  %v612_v61 = vmax.f32 %v610_v59, 0.0  ;;  %v7483_v59 = vld [vmem:[#allocation9 + $0x20] sm:$0xff]  ;;  %1244 = vmatpush.msra.mxu2 %v1243_v50 }
 0x1f2   : > { %v613_v62 = vpack.c.bf16 %v611_v60, %v611_v60  ;;  %v614_v63 = vpack.c.bf16 %v612_v61, %v612_v61 }
 0x1f3   : > { %1044 = vmatpush.bf16.msra.mxu1 %v7484_v55 }
 0x1f4   : > { %v617_v0 = vunpack.c.l.b16 %v613_v62  ;;  %v618_v1 = vunpack.c.l.b16 %v614_v63 }
 0x1f6   : > { %v619_v2 = vpack.c.b16 %v618_v1, %v617_v0  ;;  %v7916_v0 = vld [vmem:[#allocation4 + $0x4] ss:$0 sm:$0xff] }
 0x1f7   : > { %1045 = vmatpush.bf16.msra.mxu1 %v7483_v59  ;;  %v7482_v1 = vld [vmem:[#allocation9 + $0x18] sm:$0xff] }
 0x1f8   : > { %856 = vmatmul.bf16.vlgmr.msrb.gmra.mxu1 %v619_v2  ;;  %v621_v51 = vshrl.u32 %v619_v2, 16  ;;  %v624_v54 = vshll.u32 %v619_v2, 16  ;;  %v1238_v59 = vld [vmem:[#allocation6 + $0xd0] sm:$0xff] }
 0x1fa   : > { %v623_v3 = vrot.slane %v621_v51, 7 }
 0x1fb   : > { %1046 = vmatpush.bf16.msra.mxu1 %v7482_v1  ;;  %v1234_v1 = vld [vmem:[#allocation6 + $0xb0] sm:$0xff] }
 0x1fc   : > { %v626_v4 = vor.u32 %v624_v54, %v623_v3  ;;  %v630_v5 = vsel %vm8370_vm2, %v623_v3, 0  ;;  %v7917_v3 = vld [vmem:[#allocation4 + $0x5] ss:$0 sm:$0xff] }
 0x1fd   : > { %v635_v8 = vrot.slane %v630_v5, 1 }
 0x1fe   : > { %v629_v6 = vsel %vm8370_vm2, 0, %v626_v4 }
 0x1ff   : > { %v634_v7 = vrot.slane %v629_v6, 1  ;;  %842 = vmatmul.bf16.vlgmr.msra.gmra.mxu3 %v629_v6 }
 0x201   : > { %v636_v9 = vsel %vm407_vm3, %v634_v7, %v635_v8 }
 0x202   : > { %870 = vmatmul.bf16.vlgmr.msrb.gmra.mxu0 %v636_v9 }
 0x275   : > { %v857_v11 = vpop.f32.mrf.mxu1 }
 0x27d   : > { %v859_v19 = vpop.f32.mrf.mxu1 }
 0x27f   : > { %v871_v14 = vpop.f32.mrf.mxu0 }
 0x282   : > { %v843_v13 = vpop.f32.mrf.mxu3 }
 0x283   : > { %v844_v15 = vadd.f32 %v7915_v10, %v843_v13 }
 0x285   : > { %v858_v16 = vadd.f32 %v857_v11, %v844_v15  ;;  %v7478_v15 = vld [vmem:[#allocation7] sm:$0xff] }
 0x287   : > { %v872_v20 = vadd.f32 %v871_v14, %v858_v16  ;;  %v873_v22 = vpop.f32.mrf.mxu0  ;;  %v7481_v16 = vld [vmem:[#allocation9 + $0x10] sm:$0xff] }
 0x288   : > { %1047 = vmatpush.bf16.msra.mxu1 %v7481_v16 }
 0x289   : > { %v883_v24 = vmul.f32 %v872_v20, %v872_v20 }
 0x28a   : > { %v845_v17 = vpop.f32.mrf.mxu3 }
 0x28b   : > { %v846_v18 = vadd.f32 %v7915_v10, %v845_v17  ;;  %v7480_v17 = vld [vmem:[#allocation9 + $0x8] sm:$0xff] }
 0x28c   : > { %1048 = vmatpush.bf16.msra.mxu1 %v7480_v17 }
 0x28d   : > { %v860_v21 = vadd.f32 %v859_v19, %v846_v18  ;;  %v7479_v18 = vld [vmem:[#allocation9] sm:$0xff] }
 0x28f   : > { %v874_v23 = vadd.f32 %v873_v22, %v860_v21 }
 0x290   : > { %1049 = vmatpush.bf16.msra.mxu1 %v7479_v18 }
 0x291   : > { %v876_v25 = vadd.f32 %v874_v23, %v872_v20  ;;  %v884_v26 = vmul.f32 %v874_v23, %v874_v23 }
 0x293   : > { %v877_v27 = vrot.slane %v876_v25, 4  ;;  %v885_v28 = vadd.f32 %v884_v26, %v883_v24  ;;  %v7497_v26 = vld [vmem:[#allocation2 + $0x158] sm:$0xff] }
 0x295   : > { %v878_v29 = vadd.f32 %v877_v27, %v876_v25  ;;  %v886_v30 = vrot.slane %v885_v28, 4  ;;  %v7498_v25 = vld [vmem:[#allocation2 + $0x160] sm:$0xff]  ;;  %v7496_v27 = vld [vmem:[#allocation2 + $0x150] sm:$0xff] }
 0x296   : > { %1204 = vmatpush.bf16.msra.mxu0 %v7498_v25 }
 0x297   : > { %v879_v31 = vrot.slane %v878_v29, 2  ;;  %v887_v32 = vadd.f32 %v886_v30, %v885_v28  ;;  %v7495_v28 = vld [vmem:[#allocation2 + $0x148] sm:$0xff]  ;;  %v7493_v30 = vld [vmem:[#allocation2 + $0x138] sm:$0xff] }
 0x299   : > { %v880_v33 = vadd.f32 %v879_v31, %v878_v29  ;;  %v888_v34 = vrot.slane %v887_v32, 2  ;;  %v7494_v29 = vld [vmem:[#allocation2 + $0x140] sm:$0xff]  ;;  %v7492_v31 = vld [vmem:[#allocation2 + $0x130] sm:$0xff] }
 0x29a   : > { %1205 = vmatpush.bf16.msra.mxu0 %v7497_v26 }
 0x29b   : > { %v881_v35 = vrot.slane %v880_v33, 1  ;;  %v889_v36 = vadd.f32 %v888_v34, %v887_v32  ;;  %v7491_v32 = vld [vmem:[#allocation2 + $0x128] sm:$0xff] }
 0x29d   : > { %v890_v37 = vrot.slane %v889_v36, 1  ;;  %v882_v38 = vadd.f32 %v881_v35, %v880_v33  ;;  %v7490_v35 = vld [vmem:[#allocation2 + $0x120] sm:$0xff] }
 0x29e   : > { %1206 = vmatpush.bf16.msra.mxu0 %v7496_v27  ;;  %v7514_v27 = vld [vmem:[#allocation2 + $0x1e0] sm:$0xff] }
 0x29f   : > { %v891_v39 = vadd.f32 %v890_v37, %v889_v36 }
 0x2a1   : > { %v892_v40 = vsel %vm398_vm0, %v882_v38, %v891_v39  ;;  %v7489_v38 = vld [vmem:[#allocation2 + $0x118] sm:$0xff] }
 0x2a2   : > { %909 = vmatmul.f32.vlgmr.msrb.gmra.mxu2 %v892_v40  ;;  %1207 = vmatpush.bf16.msra.mxu0 %v7495_v28  ;;  %v7513_v28 = vld [vmem:[#allocation2 + $0x1d8] sm:$0xff] }
 0x2a6   : > { %1516 = vmatpush.bf16.msrb.mxu0 %v7514_v27 }
 0x2aa   : > { %1517 = vmatpush.bf16.msrb.mxu0 %v7513_v28 }
 0x325   : > { %v910_v41 = vpop.f32.mrf.mxu2 }
 0x326   : > { %v913_v42 = vmul.f32 %v910_v41, %v910_v41  ;;  %v919_v57 = vperm.slane %v910_v41, 0 }
 0x328   : > { %v915_v43 = vrot.slane %v913_v42, 7  ;;  %v920_v61 = vsub.f32 %v872_v20, %v919_v57  ;;  %v921_v62 = vsub.f32 %v874_v23, %v919_v57  ;;  %v1240_v57 = vld [vmem:[#allocation6 + $0xe0] sm:$0xff] }
 0x32a   : > { %v917_v44 = vsub.f32 %v910_v41, %v915_v43  ;;  %v7488_v41 = vld [vmem:[#allocation2 + $0x110] sm:$0xff] }
 0x32c   : > { %v918_v45 = vmax.f32 %v917_v44, 0.0  ;;  %v7780_v44 = vld [vmem:[#allocation2 + $0x9a8] sm:$0xff] }
 0x32e   : > { %v922_v46 = vadd.f32 1e-05, %v918_v45 }
 0x330   : > { %7957 = vrsqrt.f32 %v922_v46  ;;  %vm929_vm11 = vweird.f32 %v922_v46 }
 0x336   : > { %v7958_v48 = vpop.eup %7957 }
 0x337   : > { %v924_v49 = vmul.f32 %v7958_v48, %v922_v46  ;;  %vm930_vm10 = vweird.f32 %v7958_v48  ;;  %v7487_v46 = vld [vmem:[#allocation2 + $0x108] sm:$0xff] }
 0x338   : > { %vm931_vm12 = vmor %vm929_vm11, %vm930_vm10  ;;  %vm1609_vm10 = vcmask 1043456   ;;  %vm1605_vm11 = vcmask 64512  }
 0x339   : > { %v925_v52 = vmul.f32 %v7958_v48, %v924_v49 }
 0x33b   : > { %v926_v53 = vmul.f32 0.5, %v925_v52  ;;  %v1242_v52 = vld [vmem:[#allocation6 + $0xf0] sm:$0xff] }
 0x33c   : > { %1245 = vmatpush.msra.mxu2 %v1242_v52 }
 0x33d   : > { %v927_v56 = vsub.f32 1.5, %v926_v53  ;;  %v1241_v53 = vld [vmem:[#allocation6 + $0xe8] sm:$0xff] }
 0x33e   : > { %1246 = vmatpush.msra.mxu2 %v1241_v53 }
 0x33f   : > { %v928_v58 = vmul.f32 %v7958_v48, %v927_v56 }
 0x340   : > { %1247 = vmatpush.msra.mxu2 %v1240_v57 }
 0x341   : > { %v932_v60 = vsel %vm931_vm12, %v7958_v48, %v928_v58  ;;  %v1239_v58 = vld [vmem:[#allocation6 + $0xd8] sm:$0xff]  ;;  %vm1725_vm12 = vcmask 1042432  }
 0x342   : > { %v933_v63 = vperm.slane %v932_v60, 1  ;;  %1248 = vmatpush.msra.mxu2 %v1239_v58  ;;  %vm8435_vm14 = vmand %vm1725_vm12, %vm1726_vm13  ;;  %vm2266_vm12 = vcmask 1041408   ;;  %vm2262_vm13 = vcmask 31744  }
 0x344   : > { %v934_v2 = vmul.f32 %v933_v63, %v920_v61  ;;  %v935_v51 = vmul.f32 %v933_v63, %v921_v62  ;;  %1249 = vmatpush.msra.mxu2 %v1238_v59  ;;  %v1237_v62 = vld [vmem:[#allocation6 + $0xc8] sm:$0xff]  ;;  %v1236_v63 = vld [vmem:[#allocation6 + $0xc0] sm:$0xff] }
 0x346   : > { %v937_v54 = vmul.f32 %v7916_v0, %v934_v2  ;;  %v938_v4 = vmul.f32 %v7916_v0, %v935_v51  ;;  %1250 = vmatpush.msra.mxu2 %v1237_v62  ;;  %v1235_v0 = vld [vmem:[#allocation6 + $0xb8] sm:$0xff]  ;;  %v1233_v2 = vld [vmem:[#allocation6 + $0xa8] sm:$0xff]  ;;  %v1232_v51 = vld [vmem:[#allocation6 + $0xa0] sm:$0xff] }
 0x348   : > { %v940_v5 = vadd.f32 %v7917_v3, %v937_v54  ;;  %v941_v6 = vadd.f32 %v7917_v3, %v938_v4  ;;  %1251 = vmatpush.msra.mxu2 %v1236_v63  ;;  %v1231_v3 = vld [vmem:[#allocation6 + $0x98] sm:$0xff]  ;;  %v1230_v54 = vld [vmem:[#allocation6 + $0x90] sm:$0xff]  ;;  %v1229_v4 = vld [vmem:[#allocation6 + $0x88] sm:$0xff] }
 0x34a   : > { %v942_v7 = vmax.f32 %v940_v5, 0.0  ;;  %v943_v8 = vmax.f32 %v941_v6, 0.0  ;;  %1252 = vmatpush.msra.mxu2 %v1235_v0  ;;  %v1228_v5 = vld [vmem:[#allocation6 + $0x80] sm:$0xff]  ;;  %v7918_v6 = vld [vmem:[#allocation4 + $0x6] ss:$0 sm:$0xff] }
 0x34c   : > { %v946_v9 = vpack.c.bf16 %v942_v7, %v942_v7  ;;  %v947_v10 = vpack.c.bf16 %v943_v8, %v943_v8  ;;  %1253 = vmatpush.msra.mxu2 %v1234_v1 }
 0x34e   : > { %v955_v11 = vunpack.c.l.b16 %v946_v9  ;;  %v956_v13 = vunpack.c.l.b16 %v947_v10  ;;  %1254 = vmatpush.msra.mxu2 %v1233_v2 }
 0x350   : > { %v8399_v14 = vpack.c.b16 %v956_v13, %v955_v11  ;;  %1255 = vmatpush.msra.mxu2 %v1232_v51 }
 0x352   : > { %969 = vmatpush.bf16.msrb.mxu3 %v8399_v14  ;;  %1256 = vmatpush.msra.mxu2 %v1231_v3 }
 0x354   : > { %1257 = vmatpush.msra.mxu2 %v1230_v54 }
 0x355   : > { %6004 = vmatmul.msk.bf16.vlgmr.msrb.gmra.mxu3 %vm497_vm5, %v7478_v15 }
 0x356   : > { %1187 = vmatpush.bf16.msra.mxu3 %v7494_v29  ;;  %1258 = vmatpush.msra.mxu2 %v1229_v4  ;;  %v7512_v29 = vld [vmem:[#allocation2 + $0x1d0] sm:$0xff] }
 0x357   : > { %1518 = vmatpush.bf16.msrb.mxu0 %v7512_v29 }
 0x358   : > { %1259 = vmatpush.msra.mxu2 %v1228_v5 }
 0x35a   : > { %1188 = vmatpush.bf16.msra.mxu3 %v7493_v30  ;;  %1556 = vmatpush.msrb.mxu2 %v1243_v50  ;;  %v7506_v30 = vld [vmem:[#allocation2 + $0x1a0] sm:$0xff] }
 0x35b   : > { %1503 = vmatpush.bf16.msrb.mxu1 %v7506_v30 }
 0x35c   : > { %1557 = vmatpush.msrb.mxu2 %v1242_v52  ;;  %v7501_v52 = vld [vmem:[#allocation2 + $0x178] sm:$0xff] }
 0x35e   : > { %1189 = vmatpush.bf16.msra.mxu3 %v7492_v31  ;;  %1558 = vmatpush.msrb.mxu2 %v1241_v53  ;;  %v7511_v31 = vld [vmem:[#allocation2 + $0x1c8] sm:$0xff] }
 0x35f   : > { %1519 = vmatpush.bf16.msrb.mxu0 %v7511_v31 }
 0x360   : > { %1559 = vmatpush.msrb.mxu2 %v1240_v57  ;;  %v7516_v57 = vld [vmem:[#allocation2 + $0x1f0] sm:$0xff] }
 0x362   : > { %1190 = vmatpush.bf16.msra.mxu3 %v7491_v32  ;;  %1560 = vmatpush.msrb.mxu2 %v1239_v58  ;;  %v7522_v32 = vld [vmem:[#allocation2 + $0x220] sm:$0xff]  ;;  %v7499_v58 = vld [vmem:[#allocation2 + $0x168] sm:$0xff] }
 0x364   : > { %1561 = vmatpush.msrb.mxu2 %v1238_v59  ;;  %v7515_v59 = vld [vmem:[#allocation2 + $0x1e8] sm:$0xff] }
 0x366   : > { %1191 = vmatpush.bf16.msra.mxu3 %v7490_v35  ;;  %1562 = vmatpush.msrb.mxu2 %v1237_v62  ;;  %v7521_v35 = vld [vmem:[#allocation2 + $0x218] sm:$0xff] }
 0x368   : > { %1563 = vmatpush.msrb.mxu2 %v1236_v63 }
 0x36a   : > { %1192 = vmatpush.bf16.msra.mxu3 %v7489_v38  ;;  %1564 = vmatpush.msrb.mxu2 %v1235_v0  ;;  %v7520_v38 = vld [vmem:[#allocation2 + $0x210] sm:$0xff] }
 0x36c   : > { %1565 = vmatpush.msrb.mxu2 %v1234_v1 }
 0x36e   : > { %1193 = vmatpush.bf16.msra.mxu3 %v7488_v41  ;;  %1566 = vmatpush.msrb.mxu2 %v1233_v2  ;;  %v7508_v41 = vld [vmem:[#allocation2 + $0x1b0] sm:$0xff] }
 0x370   : > { %1567 = vmatpush.msrb.mxu2 %v1232_v51 }
 0x372   : > { %1194 = vmatpush.bf16.msra.mxu3 %v7487_v46  ;;  %1568 = vmatpush.msrb.mxu2 %v1231_v3  ;;  %v7507_v46 = vld [vmem:[#allocation2 + $0x1a8] sm:$0xff] }
 0x374   : > { %1569 = vmatpush.msrb.mxu2 %v1230_v54 }
 0x376   : > { %1570 = vmatpush.msrb.mxu2 %v1229_v4  ;;  %1529 = vmatpush.bf16.msrb.mxu3 %v7522_v32  ;;  %v7919_v4 = vld [vmem:[#allocation4 + $0x7] ss:$0 sm:$0xff] }
 0x378   : > { %1571 = vmatpush.msrb.mxu2 %v1228_v5 }
 0x37a   : > { %1530 = vmatpush.bf16.msrb.mxu3 %v7521_v35 }
 0x37e   : > { %1531 = vmatpush.bf16.msrb.mxu3 %v7520_v38 }
 0x3d8   : > { %v971_v19 = vpop.f32.mrf.mxu3 }
 0x3e0   : > { %v973_v20 = vpop.f32.mrf.mxu3 }
 0x3e1   : > { %v976_v21 = vmax.f32 %v971_v19, %v973_v20 }
 0x3e3   : > { %v977_v22 = vpack.c.bf16 %v976_v21, %v976_v21 }
 0x3e5   : > { %1050 = vmatmul.bf16.vlgmr.msra.gmra.mxu1 %v977_v22 }
 0x462   : > { %v1051_v23 = vpop.f32.mrf.mxu1 }
 0x463   : > { %1055 = vrot.lane.b32.xlu1 %v1051_v23, %s8247_s25 }
 0x46a   : > { %v1053_v24 = vpop.f32.mrf.mxu1 }
 0x4d5   : > { %v1056_v33 = vpop.permute.xlu1 %1055 }
 0x4d6   : > { %v1057_v34 = vmax.f32 %v1051_v23, %v1056_v33  ;;  %v7505_v33 = vld [vmem:[#allocation2 + $0x198] sm:$0xff] }
 0x4d7   : > { %1504 = vmatpush.bf16.msrb.mxu1 %v7505_v33 }
 0x4d8   : > { %v1058_v36 = vpack.c.bf16 %v1057_v34, %v1057_v34  ;;  %v7510_v34 = vld [vmem:[#allocation2 + $0x1c0] sm:$0xff] }
 0x4d9   : > { %1520 = vmatpush.bf16.msrb.mxu0 %v7510_v34 }
 0x4da   : > { %v1060_v37 = vunpack.c.l.b16 %v1058_v36  ;;  %v7504_v36 = vld [vmem:[#allocation2 + $0x190] sm:$0xff] }
 0x4db   : > { %1505 = vmatpush.bf16.msrb.mxu1 %v7504_v36 }
 0x4dc   : > { %v1061_v39 = vpack.c.b16 %v1060_v37, %v1060_v37  ;;  %v7509_v37 = vld [vmem:[#allocation2 + $0x1b8] sm:$0xff] }
 0x4dd   : > { %1521 = vmatpush.bf16.msrb.mxu0 %v7509_v37 }
 0x4de   : > { %v1063_v40 = vshrl.u32 %v1061_v39, 16  ;;  %1075 = vrot.lane.b32.xlu1 %v1061_v39, %s8247_s25  ;;  %v1066_v43 = vshll.u32 %v1061_v39, 16 }
 0x4e0   : > { %v1065_v42 = vrot.slane %v1063_v40, 7  ;;  %v7503_v40 = vld [vmem:[#allocation2 + $0x188] sm:$0xff] }
 0x4e1   : > { %1506 = vmatpush.bf16.msrb.mxu1 %v7503_v40  ;;  %1522 = vmatpush.bf16.msrb.mxu0 %v7508_v41 }
 0x4e2   : > { %v1068_v45 = vor.u32 %v1066_v43, %v1065_v42  ;;  %v7519_v43 = vld [vmem:[#allocation2 + $0x208] sm:$0xff] }
 0x4e3   : > { %1532 = vmatpush.bf16.msrb.mxu3 %v7519_v43 }
 0x4e4   : > { %v1070_v47 = vsel %vm8370_vm2, 0, %v1068_v45  ;;  %v7502_v45 = vld [vmem:[#allocation2 + $0x180] sm:$0xff] }
 0x4e5   : > { %v1074_v48 = vsel %vm8405_vm15, %v1070_v47, 0  ;;  %1507 = vmatpush.bf16.msrb.mxu1 %v7502_v45  ;;  %1523 = vmatpush.bf16.msrb.mxu0 %v7507_v46 }
 0x4e6   : > { %v1078_v49 = vrot.slane %v1074_v48, 1 }
 0x4e8   : > { %6085 = vmatmul.msk.bf16.vlgmr.msra.gmra.mxu0 %vm1079_vm1, %v1078_v49 }
 0x4e9   : > { %1508 = vmatpush.bf16.msrb.mxu1 %v7501_v52 }
 0x550   : > { %v1076_v55 = vpop.permute.xlu1 %1075 }
 0x551   : > { %v1082_v56 = vsel %vm1079_vm1, %v1074_v48, %v1076_v55  ;;  %v7518_v48 = vld [vmem:[#allocation2 + $0x200] sm:$0xff]  ;;  %v7517_v55 = vld [vmem:[#allocation2 + $0x1f8] sm:$0xff] }
 0x552   : > { %1195 = vmatmul.bf16.vlgmr.msra.gmra.mxu3 %v1082_v56  ;;  %v7500_v56 = vld [vmem:[#allocation2 + $0x170] sm:$0xff] }
 0x553   : > { %1533 = vmatpush.bf16.msrb.mxu3 %v7518_v48  ;;  %1509 = vmatpush.bf16.msrb.mxu1 %v7500_v56  ;;  %v7529_v56 = vld [vmem:[#allocation9 + $0x70] sm:$0xff] }
 0x557   : > { %1534 = vmatpush.bf16.msrb.mxu3 %v7517_v55  ;;  %1510 = vmatpush.bf16.msrb.mxu1 %v7499_v58  ;;  %v7530_v55 = vld [vmem:[#allocation9 + $0x78] sm:$0xff] }
 0x558   : > { %1696 = vmatpush.bf16.msra.mxu0 %v7530_v55  ;;  %v1898_v55 = vld [vmem:[#allocation6 + $0x178] sm:$0xff] }
 0x55b   : > { %1535 = vmatpush.bf16.msrb.mxu3 %v7516_v57 }
 0x55c   : > { %1697 = vmatpush.bf16.msra.mxu0 %v7529_v56  ;;  %v1897_v56 = vld [vmem:[#allocation6 + $0x170] sm:$0xff] }
 0x55f   : > { %1536 = vmatpush.bf16.msrb.mxu3 %v7515_v59  ;;  %v7528_v59 = vld [vmem:[#allocation9 + $0x68] sm:$0xff] }
 0x560   : > { %1698 = vmatpush.bf16.msra.mxu0 %v7528_v59  ;;  %v1894_v59 = vld [vmem:[#allocation6 + $0x158] sm:$0xff] }
 0x565   : > { %v1209_v60 = vpop.f32.mrf.mxu0 }
 0x56d   : > { %v1211_v61 = vpop.f32.mrf.mxu0 }
 0x5d5   : > { %v1196_v7 = vpop.f32.mrf.mxu3 }
 0x5d6   : > { %v1197_v8 = vadd.f32 %v7918_v6, %v1196_v7  ;;  %v7920_v6 = vld [vmem:[#allocation4 + $0x8] ss:$0 sm:$0xff] }
 0x5d8   : > { %v8415_v9 = vadd.f32 %v1209_v60, %v1197_v8 }
 0x5da   : > { %v1213_v10 = vrot.slane %v8415_v9, 4  ;;  %v1219_v11 = vmul.f32 %v8415_v9, %v8415_v9 }
 0x5dc   : > { %v1214_v13 = vadd.f32 %v1213_v10, %v8415_v9  ;;  %v1220_v15 = vrot.slane %v1219_v11, 4 }
 0x5dd   : > { %v1198_v16 = vpop.f32.mrf.mxu3 }
 0x5de   : > { %v1215_v17 = vrot.slane %v1214_v13, 2  ;;  %v1221_v18 = vadd.f32 %v1220_v15, %v1219_v11 }
 0x5e0   : > { %v1216_v19 = vadd.f32 %v1215_v17, %v1214_v13  ;;  %v1222_v20 = vrot.slane %v1221_v18, 2 }
 0x5e2   : > { %v1217_v21 = vrot.slane %v1216_v19, 1  ;;  %v1223_v22 = vadd.f32 %v1222_v20, %v1221_v18 }
 0x5e4   : > { %v1224_v23 = vrot.slane %v1223_v22, 1  ;;  %v1218_v24 = vadd.f32 %v1217_v21, %v1216_v19 }
 0x5e6   : > { %v1225_v25 = vadd.f32 %v1224_v23, %v1223_v22 }
 0x5e8   : > { %v1226_v26 = vsel %vm398_vm0, %v1218_v24, %v1225_v25  ;;  %v7921_v24 = vld [vmem:[#allocation4 + $0x9] ss:$0 sm:$0xff] }
 0x5e9   : > { %1260 = vmatmul.f32.vlgmr.msra.gmra.mxu2 %v1226_v26 }
 0x5ea   : > { %1899 = vmatpush.msra.mxu2 %v1898_v55 }
 0x5ec   : > { %1900 = vmatpush.msra.mxu2 %v1897_v56 }
 0x66c   : > { %v1261_v39 = vpop.f32.mrf.mxu2 }
 0x66d   : > { %v1264_v42 = vmul.f32 %v1261_v39, %v1261_v39  ;;  %v1270_v1 = vperm.slane %v1261_v39, 0 }
 0x66f   : > { %v1266_v47 = vrot.slane %v1264_v42, 7  ;;  %v1271_v3 = vsub.f32 %v8415_v9, %v1270_v1 }
 0x671   : > { %v1268_v49 = vsub.f32 %v1261_v39, %v1266_v47 }
 0x673   : > { %v1269_v50 = vmax.f32 %v1268_v49, 0.0 }
 0x675   : > { %v1272_v53 = vadd.f32 1e-05, %v1269_v50 }
 0x677   : > { %7959 = vrsqrt.f32 %v1272_v53  ;;  %vm1279_vm5 = vweird.f32 %v1272_v53 }
 0x67d   : > { %v7960_v60 = vpop.eup %7959 }
 0x67e   : > { %v1274_v61 = vmul.f32 %v7960_v60, %v1272_v53  ;;  %vm1280_vm4 = vweird.f32 %v7960_v60 }
 0x67f   : > { %vm1281_vm6 = vmor %vm1279_vm5, %vm1280_vm4 }
 0x680   : > { %v1275_v62 = vmul.f32 %v7960_v60, %v1274_v61 }
 0x682   : > { %v1276_v63 = vmul.f32 0.5, %v1275_v62  ;;  %v7527_v62 = vld [vmem:[#allocation9 + $0x60] sm:$0xff] }
 0x683   : > { %1699 = vmatpush.bf16.msra.mxu0 %v7527_v62  ;;  %v1893_v62 = vld [vmem:[#allocation6 + $0x150] sm:$0xff] }
 0x684   : > { %v1277_v0 = vsub.f32 1.5, %v1276_v63 }
 0x686   : > { %v1278_v2 = vmul.f32 %v7960_v60, %v1277_v0 }
 0x688   : > { %v1282_v51 = vsel %vm1281_vm6, %v7960_v60, %v1278_v2  ;;  %v7526_v2 = vld [vmem:[#allocation9 + $0x58] sm:$0xff] }
 0x689   : > { %v1283_v54 = vperm.slane %v1282_v51, 1  ;;  %1700 = vmatpush.bf16.msra.mxu0 %v7526_v2  ;;  %v1889_v2 = vld [vmem:[#allocation6 + $0x130] sm:$0xff] }
 0x68b   : > { %v1284_v5 = vmul.f32 %v1283_v54, %v1271_v3 }
 0x68d   : > { %v1286_v7 = vmul.f32 %v7919_v4, %v1284_v5  ;;  %v7922_v4 = vld [vmem:[#allocation4 + $0xa] ss:$0 sm:$0xff] }
 0x68f   : > { %v1288_v8 = vadd.f32 %v7920_v6, %v1286_v7  ;;  %v7923_v6 = vld [vmem:[#allocation4 + $0xb] ss:$0 sm:$0xff]  ;;  %v7525_v7 = vld [vmem:[#allocation9 + $0x50] sm:$0xff] }
 0x690   : > { %1701 = vmatpush.bf16.msra.mxu0 %v7525_v7  ;;  %v7924_v7 = vld [vmem:[#allocation4 + $0xc] ss:$0 sm:$0xff] }
 0x691   : > { %v1289_v10 = vmax.f32 %v1288_v8, 0.0 }
 0x693   : > { %v1290_v11 = vpack.c.bf16 %v1289_v10, %v1289_v10 }
 0x695   : > { %v1292_v13 = vunpack.c.l.b16 %v1290_v11  ;;  %1524 = vmatmul.bf16.vlgmr.msrb.gmra.mxu0 %v1290_v11 }
 0x697   : > { %v1293_v15 = vpack.c.b16 %v1292_v13, %v1292_v13 }
 0x699   : > { %v1295_v16 = vshrl.u32 %v1293_v15, 16  ;;  %v1298_v18 = vshll.u32 %v1293_v15, 16 }
 0x69b   : > { %v1297_v17 = vrot.slane %v1295_v16, 7  ;;  %v1603_v16 = vld [vmem:[#allocation7 + $0x8] sm:$0xf] }
 0x69d   : > { %v1300_v19 = vor.u32 %v1298_v18, %v1297_v17  ;;  %v7524_v17 = vld [vmem:[#allocation9 + $0x48] sm:$0xff]  ;;  %v7523_v18 = vld [vmem:[#allocation9 + $0x40] sm:$0xff] }
 0x69e   : > { %1702 = vmatpush.bf16.msra.mxu0 %v7524_v17 }
 0x69f   : > { %v1302_v20 = vsel %vm8370_vm2, 0, %v1300_v19 }
 0x6a0   : > { %v1303_v9 = vsel %vm8405_vm15, %v1302_v20, 0 }
 0x6a1   : > { %v1305_v21 = vrot.slane %v1303_v9, 1  ;;  %1511 = vmatmul.bf16.vlgmr.msrb.gmra.mxu1 %v1303_v9 }
 0x6a2   : > { %1703 = vmatpush.bf16.msra.mxu0 %v7523_v18 }
 0x6a3   : > { %1537 = vmatmul.bf16.vlgmr.msrb.gmra.mxu3 %v1305_v21 }
 0x712   : > { %v1525_v22 = vpop.f32.mrf.mxu0 }
 0x71a   : > { %v1527_v23 = vpop.f32.mrf.mxu0 }
 0x71e   : > { %v1512_v25 = vpop.f32.mrf.mxu1 }
 0x71f   : > { %v1513_v26 = vadd.f32 %v7921_v24, %v1512_v25  ;;  %v7542_v25 = vld [vmem:[#allocation2 + $0x280] sm:$0xff] }
 0x721   : > { %v1526_v27 = vadd.f32 %v1525_v22, %v1513_v26  ;;  %v7541_v26 = vld [vmem:[#allocation2 + $0x278] sm:$0xff] }
 0x726   : > { %v1514_v28 = vpop.f32.mrf.mxu1  ;;  %v1538_v29 = vpop.f32.mrf.mxu3 }
 0x727   : > { %v1539_v30 = vadd.f32 %v1538_v29, %v1526_v27  ;;  %v7540_v27 = vld [vmem:[#allocation2 + $0x270] sm:$0xff]  ;;  %v7539_v28 = vld [vmem:[#allocation2 + $0x268] sm:$0xff]  ;;  %v7538_v29 = vld [vmem:[#allocation2 + $0x260] sm:$0xff] }
 0x728   : > { %1840 = vmatpush.bf16.msra.mxu3 %v7538_v29 }
 0x729   : > { %v1542_v31 = vrot.slane %v1539_v30, 4  ;;  %v1548_v32 = vmul.f32 %v1539_v30, %v1539_v30 }
 0x72b   : > { %v1543_v33 = vadd.f32 %v1542_v31, %v1539_v30  ;;  %v1549_v34 = vrot.slane %v1548_v32, 4  ;;  %v7536_v31 = vld [vmem:[#allocation2 + $0x250] sm:$0xff] }
 0x72d   : > { %v1544_v35 = vrot.slane %v1543_v33, 2  ;;  %v1550_v36 = vadd.f32 %v1549_v34, %v1548_v32  ;;  %v7535_v32 = vld [vmem:[#allocation2 + $0x248] sm:$0xff] }
 0x72e   : > { %v1540_v37 = vpop.f32.mrf.mxu3 }
 0x72f   : > { %v1545_v38 = vadd.f32 %v1544_v35, %v1543_v33  ;;  %v1551_v39 = vrot.slane %v1550_v36, 2  ;;  %v7534_v35 = vld [vmem:[#allocation2 + $0x240] sm:$0xff] }
 0x731   : > { %v1546_v40 = vrot.slane %v1545_v38, 1  ;;  %v1552_v41 = vadd.f32 %v1551_v39, %v1550_v36 }
 0x733   : > { %v1553_v42 = vrot.slane %v1552_v41, 1  ;;  %v1547_v43 = vadd.f32 %v1546_v40, %v1545_v38  ;;  %v7533_v38 = vld [vmem:[#allocation2 + $0x238] sm:$0xff] }
 0x735   : > { %v1554_v45 = vadd.f32 %v1553_v42, %v1552_v41  ;;  %v7532_v41 = vld [vmem:[#allocation2 + $0x230] sm:$0xff] }
 0x737   : > { %v1555_v46 = vsel %vm398_vm0, %v1547_v43, %v1554_v45  ;;  %v7707_v45 = vld [vmem:[#allocation2 + $0x768] sm:$0xff] }
 0x738   : > { %1572 = vmatmul.f32.vlgmr.msrb.gmra.mxu2 %v1555_v46 }
 0x7bb   : > { %v1573_v47 = vpop.f32.mrf.mxu2 }
 0x7bc   : > { %v1576_v48 = vmul.f32 %v1573_v47, %v1573_v47  ;;  %v1582_v0 = vperm.slane %v1573_v47, 0 }
 0x7be   : > { %v1578_v49 = vrot.slane %v1576_v48, 7  ;;  %v1583_v3 = vsub.f32 %v1539_v30, %v1582_v0  ;;  %v7537_v30 = vld [vmem:[#allocation2 + $0x258] sm:$0xff] }
 0x7bf   : > { %1841 = vmatpush.bf16.msra.mxu3 %v7537_v30  ;;  %v1891_v0 = vld [vmem:[#allocation6 + $0x140] sm:$0xff] }
 0x7c0   : > { %v1580_v50 = vsub.f32 %v1573_v47, %v1578_v49  ;;  %v7531_v47 = vld [vmem:[#allocation2 + $0x228] sm:$0xff] }
 0x7c2   : > { %v1581_v52 = vmax.f32 %v1580_v50, 0.0 }
 0x7c3   : > { %1842 = vmatpush.bf16.msra.mxu3 %v7536_v31  ;;  %v7558_v31 = vld [vmem:[#allocation2 + $0x300] sm:$0xff] }
 0x7c4   : > { %v1584_v53 = vadd.f32 1e-05, %v1581_v52  ;;  %2171 = vmatpush.bf16.msrb.mxu0 %v7558_v31 }
 0x7c6   : > { %7961 = vrsqrt.f32 %v1584_v53  ;;  %vm1591_vm8 = vweird.f32 %v1584_v53 }
 0x7c7   : > { %1843 = vmatpush.bf16.msra.mxu3 %v7535_v32  ;;  %v7557_v32 = vld [vmem:[#allocation2 + $0x2f8] sm:$0xff] }
 0x7c8   : > { %2172 = vmatpush.bf16.msrb.mxu0 %v7557_v32 }
 0x7cb   : > { %1844 = vmatpush.bf16.msra.mxu3 %v7534_v35  ;;  %v7555_v35 = vld [vmem:[#allocation2 + $0x2e8] sm:$0xff] }
 0x7cc   : > { %v7962_v57 = vpop.eup %7961 }
 0x7cd   : > { %v1586_v58 = vmul.f32 %v7962_v57, %v1584_v53  ;;  %vm1592_vm7 = vweird.f32 %v7962_v57 }
 0x7ce   : > { %vm1593_vm9 = vmor %vm1591_vm8, %vm1592_vm7 }
 0x7cf   : > { %v1587_v60 = vmul.f32 %v7962_v57, %v1586_v58  ;;  %1845 = vmatpush.bf16.msra.mxu3 %v7533_v38  ;;  %v1895_v58 = vld [vmem:[#allocation6 + $0x160] sm:$0xff]  ;;  %v7554_v38 = vld [vmem:[#allocation2 + $0x2e0] sm:$0xff] }
 0x7d1   : > { %v1588_v61 = vmul.f32 0.5, %v1587_v60 }
 0x7d3   : > { %v1589_v63 = vsub.f32 1.5, %v1588_v61  ;;  %1846 = vmatpush.bf16.msra.mxu3 %v7532_v41  ;;  %v7553_v41 = vld [vmem:[#allocation2 + $0x2d8] sm:$0xff] }
 0x7d5   : > { %v1590_v1 = vmul.f32 %v7962_v57, %v1589_v63  ;;  %v1892_v63 = vld [vmem:[#allocation6 + $0x148] sm:$0xff] }
 0x7d7   : > { %v1594_v51 = vsel %vm1593_vm9, %v7962_v57, %v1590_v1  ;;  %1847 = vmatpush.bf16.msra.mxu3 %v7531_v47  ;;  %v1896_v57 = vld [vmem:[#allocation6 + $0x168] sm:$0xff]  ;;  %v1890_v1 = vld [vmem:[#allocation6 + $0x138] sm:$0xff] }
 0x7d8   : > { %v1595_v54 = vperm.slane %v1594_v51, 1  ;;  %1901 = vmatpush.msra.mxu2 %v1896_v57  ;;  %v1888_v51 = vld [vmem:[#allocation6 + $0x128] sm:$0xff]  ;;  %v7552_v47 = vld [vmem:[#allocation2 + $0x2d0] sm:$0xff] }
 0x7da   : > { %v1596_v5 = vmul.f32 %v1595_v54, %v1583_v3  ;;  %1902 = vmatpush.msra.mxu2 %v1895_v58  ;;  %v1887_v3 = vld [vmem:[#allocation6 + $0x120] sm:$0xff]  ;;  %v1886_v54 = vld [vmem:[#allocation6 + $0x118] sm:$0xff] }
 0x7dc   : > { %v1598_v8 = vmul.f32 %v7922_v4, %v1596_v5  ;;  %1903 = vmatpush.msra.mxu2 %v1894_v59  ;;  %v1885_v4 = vld [vmem:[#allocation6 + $0x110] sm:$0xff]  ;;  %v1884_v5 = vld [vmem:[#allocation6 + $0x108] sm:$0xff] }
 0x7de   : > { %v1600_v10 = vadd.f32 %v7923_v6, %v1598_v8  ;;  %1904 = vmatpush.msra.mxu2 %v1893_v62  ;;  %v1883_v6 = vld [vmem:[#allocation6 + $0x100] sm:$0xff] }
 0x7e0   : > { %v1601_v11 = vmax.f32 %v1600_v10, 0.0  ;;  %1905 = vmatpush.msra.mxu2 %v1892_v63 }
 0x7e2   : > { %v8428_v13 = vpack.c.bf16 %v1601_v11, %v1601_v11  ;;  %1906 = vmatpush.msra.mxu2 %v1891_v0 }
 0x7e4   : > { %v1611_v15 = vsel %vm1609_vm10, %v8428_v13, 0  ;;  %1907 = vmatpush.msra.mxu2 %v1890_v1 }
 0x7e5   : > { %1620 = vmatpush.bf16.msra.mxu1 %v1611_v15 }
 0x7e6   : > { %1908 = vmatpush.msra.mxu2 %v1889_v2 }
 0x7e8   : > { %6182 = vmatmul.msk.bf16.vlgmr.msra.gmra.mxu1 %vm1605_vm11, %v1603_v16  ;;  %1909 = vmatpush.msra.mxu2 %v1888_v51 }
 0x7e9   : > { %1857 = vmatpush.bf16.msrb.mxu1 %v7542_v25 }
 0x7ea   : > { %1910 = vmatpush.msra.mxu2 %v1887_v3 }
 0x7ec   : > { %1911 = vmatpush.msra.mxu2 %v1886_v54 }
 0x7ed   : > { %1858 = vmatpush.bf16.msrb.mxu1 %v7541_v26 }
 0x7ee   : > { %1912 = vmatpush.msra.mxu2 %v1885_v4 }
 0x7f0   : > { %1913 = vmatpush.msra.mxu2 %v1884_v5 }
 0x7f1   : > { %1859 = vmatpush.bf16.msrb.mxu1 %v7540_v27 }
 0x7f2   : > { %1914 = vmatpush.msra.mxu2 %v1883_v6 }
 0x7f4   : > { %2213 = vmatpush.msrb.mxu2 %v1898_v55  ;;  %v7562_v55 = vld [vmem:[#allocation2 + $0x320] sm:$0xff] }
 0x7f5   : > { %1860 = vmatpush.bf16.msrb.mxu1 %v7539_v28 }
 0x7f6   : > { %2214 = vmatpush.msrb.mxu2 %v1897_v56 }
 0x7f8   : > { %2215 = vmatpush.msrb.mxu2 %v1896_v57 }
 0x7fa   : > { %2216 = vmatpush.msrb.mxu2 %v1895_v58  ;;  %v7545_v58 = vld [vmem:[#allocation2 + $0x298] sm:$0xff] }
 0x7fc   : > { %2217 = vmatpush.msrb.mxu2 %v1894_v59 }
 0x7fe   : > { %2218 = vmatpush.msrb.mxu2 %v1893_v62  ;;  %v7560_v62 = vld [vmem:[#allocation2 + $0x310] sm:$0xff] }
 0x800   : > { %2219 = vmatpush.msrb.mxu2 %v1892_v63  ;;  %v7543_v63 = vld [vmem:[#allocation2 + $0x288] sm:$0xff] }
 0x802   : > { %2220 = vmatpush.msrb.mxu2 %v1891_v0  ;;  %v7559_v0 = vld [vmem:[#allocation2 + $0x308] sm:$0xff] }
 0x804   : > { %2221 = vmatpush.msrb.mxu2 %v1890_v1 }
 0x806   : > { %2222 = vmatpush.msrb.mxu2 %v1889_v2 }
 0x808   : > { %2223 = vmatpush.msrb.mxu2 %v1888_v51 }
 0x80a   : > { %2224 = vmatpush.msrb.mxu2 %v1887_v3 }
 0x80c   : > { %2225 = vmatpush.msrb.mxu2 %v1886_v54 }
 0x80e   : > { %2226 = vmatpush.msrb.mxu2 %v1885_v4 }
 0x810   : > { %2227 = vmatpush.msrb.mxu2 %v1884_v5 }
 0x812   : > { %2228 = vmatpush.msrb.mxu2 %v1883_v6 }
 0x865   : > { %v1622_v19 = vpop.f32.mrf.mxu1 }
 0x866   : > { %v1627_v20 = vrot.slane %v1622_v19, 4 }
 0x868   : > { %v1629_v9 = vmax.f32 %v1622_v19, %v1627_v20 }
 0x86a   : > { %v1630_v21 = vpack.c.bf16 %v1629_v9, %v1629_v9 }
 0x86c   : > { %1704 = vmatmul.bf16.vlgmr.msra.gmra.mxu0 %v1630_v21 }
 0x86d   : > { %v1624_v22 = vpop.f32.mrf.mxu1 }
 0x8e9   : > { %v1705_v23 = vpop.f32.mrf.mxu0 }
 0x8ea   : > { %1709 = vrot.lane.b32.xlu2 %v1705_v23, %s8247_s25 }
 0x8f1   : > { %v1707_v24 = vpop.f32.mrf.mxu0 }
 0x944   : > { %v1710_v33 = vpop.permute.xlu2 %1709 }
 0x945   : > { %v1711_v34 = vmax.f32 %v1705_v23, %v1710_v33  ;;  %v7556_v33 = vld [vmem:[#allocation2 + $0x2f0] sm:$0xff] }
 0x946   : > { %2173 = vmatpush.bf16.msrb.mxu0 %v7556_v33 }
 0x947   : > { %v1712_v36 = vpack.c.bf16 %v1711_v34, %v1711_v34  ;;  %v7550_v34 = vld [vmem:[#allocation2 + $0x2c0] sm:$0xff] }
 0x948   : > { %2158 = vmatpush.bf16.msra.mxu1 %v7550_v34 }
 0x949   : > { %v1714_v37 = vunpack.c.l.b16 %v1712_v36  ;;  %v7566_v36 = vld [vmem:[#allocation2 + $0x340] sm:$0xff] }
 0x94a   : > { %2174 = vmatpush.bf16.msrb.mxu0 %v7555_v35  ;;  %2184 = vmatpush.bf16.msrb.mxu3 %v7566_v36 }
 0x94b   : > { %v1715_v39 = vpack.c.b16 %v1714_v37, %v1714_v37  ;;  %v7549_v37 = vld [vmem:[#allocation2 + $0x2b8] sm:$0xff] }
 0x94c   : > { %2159 = vmatpush.bf16.msra.mxu1 %v7549_v37 }
 0x94d   : > { %v1717_v40 = vshrl.u32 %v1715_v39, 16  ;;  %1729 = vrot.lane.b32.xlu2 %v1715_v39, %s8247_s25  ;;  %v1720_v43 = vshll.u32 %v1715_v39, 16  ;;  %v7565_v39 = vld [vmem:[#allocation2 + $0x338] sm:$0xff] }
 0x94e   : > { %2175 = vmatpush.bf16.msrb.mxu0 %v7554_v38  ;;  %2185 = vmatpush.bf16.msrb.mxu3 %v7565_v39 }
 0x94f   : > { %v1719_v42 = vrot.slane %v1717_v40, 7  ;;  %v7548_v40 = vld [vmem:[#allocation2 + $0x2b0] sm:$0xff] }
 0x950   : > { %2160 = vmatpush.bf16.msra.mxu1 %v7548_v40 }
 0x951   : > { %v1722_v46 = vor.u32 %v1720_v43, %v1719_v42  ;;  %v7564_v42 = vld [vmem:[#allocation2 + $0x330] sm:$0xff] }
 0x952   : > { %2176 = vmatpush.bf16.msrb.mxu0 %v7553_v41  ;;  %2186 = vmatpush.bf16.msrb.mxu3 %v7564_v42 }
 0x953   : > { %v1724_v48 = vsel %vm8370_vm2, 0, %v1722_v46  ;;  %v7547_v46 = vld [vmem:[#allocation2 + $0x2a8] sm:$0xff] }
 0x954   : > { %v1728_v49 = vsel %vm8435_vm14, %v1724_v48, 0  ;;  %2161 = vmatpush.bf16.msra.mxu1 %v7547_v46 }
 0x955   : > { %v1732_v50 = vrot.slane %v1728_v49, 1 }
 0x956   : > { %2177 = vmatpush.bf16.msrb.mxu0 %v7552_v47 }
 0x957   : > { %6263 = vmatmul.msk.bf16.vlgmr.msrb.gmra.mxu1 %vm1079_vm1, %v1732_v50  ;;  %v7546_v50 = vld [vmem:[#allocation2 + $0x2a0] sm:$0xff] }
 0x958   : > { %2162 = vmatpush.bf16.msra.mxu1 %v7546_v50 }
 0x95c   : > { %2163 = vmatpush.bf16.msra.mxu1 %v7545_v58 }
 0x9a7   : > { %v1730_v52 = vpop.permute.xlu2 %1729 }
 0x9a8   : > { %v1735_v53 = vsel %vm1079_vm1, %v1728_v49, %v1730_v52  ;;  %v7563_v49 = vld [vmem:[#allocation2 + $0x328] sm:$0xff] }
 0x9a9   : > { %1848 = vmatmul.bf16.vlgmr.msra.gmra.mxu3 %v1735_v53  ;;  %v7551_v52 = vld [vmem:[#allocation2 + $0x2c8] sm:$0xff] }
 0x9aa   : > { %2187 = vmatpush.bf16.msrb.mxu3 %v7563_v49  ;;  %2178 = vmatpush.bf16.msrb.mxu0 %v7551_v52 }
 0x9ae   : > { %2188 = vmatpush.bf16.msrb.mxu3 %v7562_v55 }
 0x9d4   : > { %v1862_v60 = vpop.f32.mrf.mxu1 }
 0x9dc   : > { %v1864_v61 = vpop.f32.mrf.mxu1 }
 0x9dd   : > { %v7544_v61 = vld [vmem:[#allocation2 + $0x290] sm:$0xff] }
 0x9de   : > { %2164 = vmatpush.bf16.msra.mxu1 %v7544_v61 }
 0x9e2   : > { %2165 = vmatpush.bf16.msra.mxu1 %v7543_v63 }
 0xa2c   : > { %v1849_v8 = vpop.f32.mrf.mxu3 }
 0xa2d   : > { %v1850_v10 = vadd.f32 %v7924_v7, %v1849_v8 }
 0xa2f   : > { %v8445_v11 = vadd.f32 %v1862_v60, %v1850_v10  ;;  %v7561_v60 = vld [vmem:[#allocation2 + $0x318] sm:$0xff]  ;;  %v7925_v10 = vld [vmem:[#allocation4 + $0xd] ss:$0 sm:$0xff] }
 0xa30   : > { %2189 = vmatpush.bf16.msrb.mxu3 %v7561_v60 }
 0xa31   : > { %v1866_v15 = vsel %vm1609_vm10, %v8445_v11, 0.0  ;;  %v1873_v16 = vmul.f32 %v8445_v11, %v8445_v11 }
 0xa32   : > { %v1867_v17 = vrot.slane %v1866_v15, 4 }
 0xa33   : > { %v1874_v18 = vsel %vm1609_vm10, %v1873_v16, 0.0  ;;  %v7926_v16 = vld [vmem:[#allocation4 + $0xe] ss:$0 sm:$0xff] }
 0xa34   : > { %v1868_v19 = vadd.f32 %v1867_v17, %v1866_v15  ;;  %v1875_v20 = vrot.slane %v1874_v18, 4  ;;  %v1851_v9 = vpop.f32.mrf.mxu3  ;;  %2190 = vmatpush.bf16.msrb.mxu3 %v7560_v62 }
 0xa36   : > { %v1869_v21 = vrot.slane %v1868_v19, 2  ;;  %v1876_v22 = vadd.f32 %v1875_v20, %v1874_v18 }
 0xa38   : > { %v1870_v23 = vadd.f32 %v1869_v21, %v1868_v19  ;;  %v1877_v24 = vrot.slane %v1876_v22, 2  ;;  %2191 = vmatpush.bf16.msrb.mxu3 %v7559_v0  ;;  %v7574_v0 = vld [vmem:[#allocation9 + $0xb8] sm:$0xff] }
 0xa39   : > { %2353 = vmatpush.bf16.msra.mxu0 %v7574_v0  ;;  %v2555_v0 = vld [vmem:[#allocation6 + $0x1f8] sm:$0xff] }
 0xa3a   : > { %v1871_v25 = vrot.slane %v1870_v23, 1  ;;  %v1878_v26 = vadd.f32 %v1877_v24, %v1876_v22 }
 0xa3c   : > { %v1879_v27 = vrot.slane %v1878_v26, 1  ;;  %v1872_v28 = vadd.f32 %v1871_v25, %v1870_v23 }
 0xa3e   : > { %v1880_v29 = vadd.f32 %v1879_v27, %v1878_v26 }
 0xa40   : > { %v1881_v30 = vsel %vm398_vm0, %v1872_v28, %v1880_v29 }
 0xa41   : > { %1915 = vmatmul.f32.vlgmr.msra.gmra.mxu2 %v1881_v30  ;;  %v7927_v30 = vld [vmem:[#allocation4 + $0xf] ss:$0 sm:$0xff] }
 0xa42   : > { %2556 = vmatpush.msra.mxu2 %v2555_v0 }
 0xac4   : > { %v1916_v43 = vpop.f32.mrf.mxu2 }
 0xac5   : > { %v1919_v48 = vmul.f32 %v1916_v43, %v1916_v43  ;;  %v1925_v4 = vperm.slane %v1916_v43, 0 }
 0xac7   : > { %v1921_v53 = vrot.slane %v1919_v48, 7  ;;  %v1926_v7 = vsub.f32 %v8445_v11, %v1925_v4 }
 0xac9   : > { %v1923_v56 = vsub.f32 %v1916_v43, %v1921_v53 }
 0xacb   : > { %v1924_v57 = vmax.f32 %v1923_v56, 0.0 }
 0xacd   : > { %v1927_v59 = vadd.f32 1e-05, %v1924_v57 }
 0xacf   : > { %7963 = vrsqrt.f32 %v1927_v59  ;;  %vm1934_vm5 = vweird.f32 %v1927_v59 }
 0xad5   : > { %v7964_v1 = vpop.eup %7963 }
 0xad6   : > { %v1929_v2 = vmul.f32 %v7964_v1, %v1927_v59  ;;  %vm1935_vm4 = vweird.f32 %v7964_v1 }
 0xad7   : > { %vm1936_vm6 = vmor %vm1934_vm5, %vm1935_vm4  ;;  %vm2383_vm4 = vsmask.f32 1280 }
 0xad8   : > { %v1930_v51 = vmul.f32 %v7964_v1, %v1929_v2  ;;  %vm8469_vm5 = vmand %vm2266_vm12, %vm2383_vm4 }
 0xada   : > { %v1931_v3 = vmul.f32 0.5, %v1930_v51 }
 0xadc   : > { %v1932_v54 = vsub.f32 1.5, %v1931_v3  ;;  %v7572_v3 = vld [vmem:[#allocation9 + $0xa8] sm:$0xff] }
 0xade   : > { %v1933_v5 = vmul.f32 %v7964_v1, %v1932_v54 }
 0xae0   : > { %v1937_v6 = vsel %vm1936_vm6, %v7964_v1, %v1933_v5  ;;  %v7573_v1 = vld [vmem:[#allocation9 + $0xb0] sm:$0xff]  ;;  %v7571_v5 = vld [vmem:[#allocation9 + $0xa0] sm:$0xff] }
 0xae1   : > { %v1938_v8 = vperm.slane %v1937_v6, 1  ;;  %2354 = vmatpush.bf16.msra.mxu0 %v7573_v1  ;;  %v2554_v1 = vld [vmem:[#allocation6 + $0x1f0] sm:$0xff] }
 0xae2   : > { %2557 = vmatpush.msra.mxu2 %v2554_v1 }
 0xae3   : > { %v1939_v15 = vmul.f32 %v1938_v8, %v1926_v7 }
 0xae5   : > { %v1941_v17 = vmul.f32 %v7925_v10, %v1939_v15  ;;  %2355 = vmatpush.bf16.msra.mxu0 %v7572_v3  ;;  %v7570_v10 = vld [vmem:[#allocation9 + $0x98] sm:$0xff] }
 0xae7   : > { %v1943_v18 = vadd.f32 %v7926_v16, %v1941_v17 }
 0xae9   : > { %v1944_v19 = vmax.f32 %v1943_v18, 0.0  ;;  %2356 = vmatpush.bf16.msra.mxu0 %v7571_v5  ;;  %v7928_v18 = vld [vmem:[#allocation4 + $0x10] ss:$0 sm:$0xff] }
 0xaeb   : > { %v1945_v20 = vpack.c.bf16 %v1944_v19, %v1944_v19 }
 0xaed   : > { %v1947_v9 = vunpack.c.l.b16 %v1945_v20  ;;  %2179 = vmatmul.bf16.vlgmr.msrb.gmra.mxu0 %v1945_v20  ;;  %v7929_v20 = vld [vmem:[#allocation4 + $0x11] ss:$0 sm:$0xff] }
 0xaee   : > { %2357 = vmatpush.bf16.msra.mxu0 %v7570_v10  ;;  %v2548_v10 = vld [vmem:[#allocation6 + $0x1c0] sm:$0xff] }
 0xaef   : > { %v1948_v21 = vpack.c.b16 %v1947_v9, %v1947_v9  ;;  %v7569_v9 = vld [vmem:[#allocation9 + $0x90] sm:$0xff] }
 0xaf1   : > { %v1950_v22 = vshrl.u32 %v1948_v21, 16  ;;  %v1953_v24 = vshll.u32 %v1948_v21, 16 }
 0xaf2   : > { %2358 = vmatpush.bf16.msra.mxu0 %v7569_v9  ;;  %v2541_v9 = vld [vmem:[#allocation6 + $0x188] sm:$0xff] }
 0xaf3   : > { %v1952_v23 = vrot.slane %v1950_v22, 7 }
 0xaf5   : > { %v1955_v25 = vor.u32 %v1953_v24, %v1952_v23 }
 0xaf7   : > { %v1957_v26 = vsel %vm8370_vm2, 0, %v1955_v25 }
 0xaf8   : > { %v1958_v11 = vsel %vm8435_vm14, %v1957_v26, 0  ;;  %v2260_v26 = vld [vmem:[#allocation7 + $0x10] sm:$0x3] }
 0xaf9   : > { %v1960_v27 = vrot.slane %v1958_v11, 1  ;;  %2166 = vmatmul.bf16.vlgmr.msra.gmra.mxu1 %v1958_v11  ;;  %v7568_v11 = vld [vmem:[#allocation9 + $0x88] sm:$0xff] }
 0xafa   : > { %2359 = vmatpush.bf16.msra.mxu0 %v7568_v11 }
 0xafb   : > { %2192 = vmatmul.bf16.vlgmr.msrb.gmra.mxu3 %v1960_v27  ;;  %v7567_v27 = vld [vmem:[#allocation9 + $0x80] sm:$0xff] }
 0xafe   : > { %2360 = vmatpush.bf16.msra.mxu0 %v7567_v27 }
 0xb6a   : > { %v2180_v28 = vpop.f32.mrf.mxu0 }
 0xb72   : > { %v2182_v29 = vpop.f32.mrf.mxu0 }
 0xb76   : > { %v2167_v31 = vpop.f32.mrf.mxu1 }
 0xb77   : > { %v2168_v32 = vadd.f32 %v7927_v30, %v2167_v31 }
 0xb79   : > { %v2181_v33 = vadd.f32 %v2180_v28, %v2168_v32 }
 0xb7e   : > { %v2169_v34 = vpop.f32.mrf.mxu1  ;;  %v2193_v35 = vpop.f32.mrf.mxu3 }
 0xb7f   : > { %v2194_v36 = vadd.f32 %v2193_v35, %v2181_v33  ;;  %v7586_v35 = vld [vmem:[#allocation2 + $0x3a0] sm:$0xff] }
 0xb81   : > { %v2197_v37 = vsel %vm1609_vm10, %v2194_v36, 0.0  ;;  %v2204_v38 = vmul.f32 %v2194_v36, %v2194_v36 }
 0xb82   : > { %v2198_v39 = vrot.slane %v2197_v37, 4 }
 0xb83   : > { %v2205_v40 = vsel %vm1609_vm10, %v2204_v38, 0.0  ;;  %v7583_v38 = vld [vmem:[#allocation2 + $0x388] sm:$0xff] }
 0xb84   : > { %v2199_v41 = vadd.f32 %v2198_v39, %v2197_v37  ;;  %v2206_v42 = vrot.slane %v2205_v40, 4  ;;  %v7584_v37 = vld [vmem:[#allocation2 + $0x390] sm:$0xff]  ;;  %v7582_v39 = vld [vmem:[#allocation2 + $0x380] sm:$0xff] }
 0xb85   : > { %2497 = vmatpush.bf16.msra.mxu3 %v7582_v39 }
 0xb86   : > { %v2200_v43 = vrot.slane %v2199_v41, 2  ;;  %v2207_v46 = vadd.f32 %v2206_v42, %v2205_v40  ;;  %v2195_v47 = vpop.f32.mrf.mxu3  ;;  %v7581_v40 = vld [vmem:[#allocation2 + $0x378] sm:$0xff]  ;;  %v7579_v42 = vld [vmem:[#allocation2 + $0x368] sm:$0xff] }
 0xb87   : > { %v7578_v47 = vld [vmem:[#allocation2 + $0x360] sm:$0xff] }
 0xb88   : > { %v2201_v48 = vadd.f32 %v2200_v43, %v2199_v41  ;;  %v2208_v49 = vrot.slane %v2207_v46, 2  ;;  %v7580_v41 = vld [vmem:[#allocation2 + $0x370] sm:$0xff] }
 0xb89   : > { %2498 = vmatpush.bf16.msra.mxu3 %v7581_v40 }
 0xb8a   : > { %v2202_v50 = vrot.slane %v2201_v48, 1  ;;  %v2209_v52 = vadd.f32 %v2208_v49, %v2207_v46 }
 0xb8c   : > { %v2210_v53 = vrot.slane %v2209_v52, 1  ;;  %v2203_v55 = vadd.f32 %v2202_v50, %v2201_v48  ;;  %v7577_v50 = vld [vmem:[#allocation2 + $0x358] sm:$0xff] }
 0xb8d   : > { %2499 = vmatpush.bf16.msra.mxu3 %v7580_v41 }
 0xb8e   : > { %v2211_v56 = vadd.f32 %v2210_v53, %v2209_v52 }
 0xb90   : > { %v2212_v57 = vsel %vm398_vm0, %v2203_v55, %v2211_v56  ;;  %v7576_v55 = vld [vmem:[#allocation2 + $0x350] sm:$0xff] }
 0xb91   : > { %2229 = vmatmul.f32.vlgmr.msrb.gmra.mxu2 %v2212_v57  ;;  %2500 = vmatpush.bf16.msra.mxu3 %v7579_v42 }
 0xb95   : > { %2501 = vmatpush.bf16.msra.mxu3 %v7578_v47  ;;  %v7600_v47 = vld [vmem:[#allocation2 + $0x410] sm:$0xff] }
 0xb99   : > { %2502 = vmatpush.bf16.msra.mxu3 %v7577_v50  ;;  %v7610_v50 = vld [vmem:[#allocation2 + $0x460] sm:$0xff] }
 0xb9d   : > { %2503 = vmatpush.bf16.msra.mxu3 %v7576_v55  ;;  %v7609_v55 = vld [vmem:[#allocation2 + $0x458] sm:$0xff] }
 0xc14   : > { %v2230_v58 = vpop.f32.mrf.mxu2 }
 0xc15   : > { %v2233_v59 = vmul.f32 %v2230_v58, %v2230_v58  ;;  %v2239_v7 = vperm.slane %v2230_v58, 0 }
 0xc17   : > { %v2235_v60 = vrot.slane %v2233_v59, 7  ;;  %v2240_v16 = vsub.f32 %v2194_v36, %v2239_v7  ;;  %v7585_v36 = vld [vmem:[#allocation2 + $0x398] sm:$0xff]  ;;  %v2550_v7 = vld [vmem:[#allocation6 + $0x1d0] sm:$0xff] }
 0xc19   : > { %v2237_v61 = vsub.f32 %v2230_v58, %v2235_v60  ;;  %v7575_v60 = vld [vmem:[#allocation2 + $0x348] sm:$0xff] }
 0xc1a   : > { %2504 = vmatpush.bf16.msra.mxu3 %v7575_v60  ;;  %v7635_v58 = vld [vmem:[#allocation2 + $0x528] sm:$0xff] }
 0xc1b   : > { %v2238_v62 = vmax.f32 %v2237_v61, 0.0 }
 0xc1d   : > { %v2241_v63 = vadd.f32 1e-05, %v2238_v62 }
 0xc1e   : > { %2841 = vmatpush.bf16.msrb.mxu3 %v7610_v50  ;;  %v7637_v50 = vld [vmem:[#allocation2 + $0x538] sm:$0xff] }
 0xc1f   : > { %7965 = vrsqrt.f32 %v2241_v63  ;;  %vm2248_vm8 = vweird.f32 %v2241_v63 }
 0xc22   : > { %2842 = vmatpush.bf16.msrb.mxu3 %v7609_v55  ;;  %v7933_v55 = vld [vmem:[#allocation4 + $0x15] ss:$0 sm:$0xff] }
 0xc25   : > { %v7966_v2 = vpop.eup %7965 }
 0xc26   : > { %v2243_v51 = vmul.f32 %v7966_v2, %v2241_v63  ;;  %vm2249_vm7 = vweird.f32 %v7966_v2 }
 0xc27   : > { %vm2250_vm9 = vmor %vm2248_vm8, %vm2249_vm7 }
 0xc28   : > { %v2244_v54 = vmul.f32 %v7966_v2, %v2243_v51 }
 0xc2a   : > { %v2245_v4 = vmul.f32 0.5, %v2244_v54  ;;  %v2552_v54 = vld [vmem:[#allocation6 + $0x1e0] sm:$0xff] }
 0xc2c   : > { %v2246_v6 = vsub.f32 1.5, %v2245_v4  ;;  %v2551_v4 = vld [vmem:[#allocation6 + $0x1d8] sm:$0xff] }
 0xc2e   : > { %v2247_v8 = vmul.f32 %v7966_v2, %v2246_v6 }
 0xc30   : > { %v2251_v15 = vsel %vm2250_vm9, %v7966_v2, %v2247_v8  ;;  %v2553_v2 = vld [vmem:[#allocation6 + $0x1e8] sm:$0xff] }
 0xc31   : > { %v2252_v17 = vperm.slane %v2251_v15, 1  ;;  %2558 = vmatpush.msra.mxu2 %v2553_v2  ;;  %v2549_v8 = vld [vmem:[#allocation6 + $0x1c8] sm:$0xff]  ;;  %v2547_v15 = vld [vmem:[#allocation6 + $0x1b8] sm:$0xff] }
 0xc33   : > { %v2253_v19 = vmul.f32 %v2252_v17, %v2240_v16  ;;  %2559 = vmatpush.msra.mxu2 %v2552_v54  ;;  %v2546_v16 = vld [vmem:[#allocation6 + $0x1b0] sm:$0xff]  ;;  %v2545_v17 = vld [vmem:[#allocation6 + $0x1a8] sm:$0xff] }
 0xc35   : > { %v2255_v21 = vmul.f32 %v7928_v18, %v2253_v19  ;;  %2560 = vmatpush.msra.mxu2 %v2551_v4  ;;  %v2544_v18 = vld [vmem:[#allocation6 + $0x1a0] sm:$0xff]  ;;  %v2543_v19 = vld [vmem:[#allocation6 + $0x198] sm:$0xff] }
 0xc37   : > { %v2257_v22 = vadd.f32 %v7929_v20, %v2255_v21  ;;  %2561 = vmatpush.msra.mxu2 %v2550_v7  ;;  %v2542_v20 = vld [vmem:[#allocation6 + $0x190] sm:$0xff]  ;;  %v2540_v21 = vld [vmem:[#allocation6 + $0x180] sm:$0xff] }
 0xc39   : > { %v2258_v23 = vmax.f32 %v2257_v22, 0.0  ;;  %2562 = vmatpush.msra.mxu2 %v2549_v8  ;;  %v7930_v22 = vld [vmem:[#allocation4 + $0x12] ss:$0 sm:$0xff] }
 0xc3b   : > { %v8461_v24 = vpack.c.bf16 %v2258_v23, %v2258_v23  ;;  %2563 = vmatpush.msra.mxu2 %v2548_v10 }
 0xc3d   : > { %v2268_v25 = vsel %vm2266_vm12, %v8461_v24, 0  ;;  %2564 = vmatpush.msra.mxu2 %v2547_v15 }
 0xc3e   : > { %2277 = vmatpush.bf16.msrb.mxu1 %v2268_v25 }
 0xc3f   : > { %2565 = vmatpush.msra.mxu2 %v2546_v16 }
 0xc41   : > { %6360 = vmatmul.msk.bf16.vlgmr.msrb.gmra.mxu1 %vm2262_vm13, %v2260_v26  ;;  %2566 = vmatpush.msra.mxu2 %v2545_v17 }
 0xc42   : > { %2514 = vmatpush.bf16.msra.mxu1 %v7586_v35 }
 0xc43   : > { %2567 = vmatpush.msra.mxu2 %v2544_v18 }
 0xc45   : > { %2568 = vmatpush.msra.mxu2 %v2543_v19 }
 0xc46   : > { %2515 = vmatpush.bf16.msra.mxu1 %v7585_v36 }
 0xc47   : > { %2569 = vmatpush.msra.mxu2 %v2542_v20 }
 0xc49   : > { %2570 = vmatpush.msra.mxu2 %v2541_v9 }
 0xc4a   : > { %2516 = vmatpush.bf16.msra.mxu1 %v7584_v37 }
 0xc4b   : > { %2571 = vmatpush.msra.mxu2 %v2540_v21 }
 0xc4d   : > { %2870 = vmatpush.msrb.mxu2 %v2555_v0  ;;  %v7607_v0 = vld [vmem:[#allocation2 + $0x448] sm:$0xff] }
 0xc4e   : > { %2517 = vmatpush.bf16.msra.mxu1 %v7583_v38 }
 0xc4f   : > { %2871 = vmatpush.msrb.mxu2 %v2554_v1  ;;  %v7590_v1 = vld [vmem:[#allocation2 + $0x3c0] sm:$0xff] }
 0xc51   : > { %2872 = vmatpush.msrb.mxu2 %v2553_v2  ;;  %v7595_v2 = vld [vmem:[#allocation2 + $0x3e8] sm:$0xff] }
 0xc53   : > { %2873 = vmatpush.msrb.mxu2 %v2552_v54 }
 0xc55   : > { %2874 = vmatpush.msrb.mxu2 %v2551_v4 }
 0xc57   : > { %2875 = vmatpush.msrb.mxu2 %v2550_v7  ;;  %v7605_v7 = vld [vmem:[#allocation2 + $0x438] sm:$0xff] }
 0xc59   : > { %2876 = vmatpush.msrb.mxu2 %v2549_v8  ;;  %v7588_v8 = vld [vmem:[#allocation2 + $0x3b0] sm:$0xff] }
 0xc5b   : > { %2877 = vmatpush.msrb.mxu2 %v2548_v10  ;;  %v7604_v10 = vld [vmem:[#allocation2 + $0x430] sm:$0xff] }
 0xc5d   : > { %2878 = vmatpush.msrb.mxu2 %v2547_v15  ;;  %v7587_v15 = vld [vmem:[#allocation2 + $0x3a8] sm:$0xff] }
 0xc5f   : > { %2879 = vmatpush.msrb.mxu2 %v2546_v16  ;;  %v7603_v16 = vld [vmem:[#allocation2 + $0x428] sm:$0xff] }
 0xc61   : > { %2880 = vmatpush.msrb.mxu2 %v2545_v17 }
 0xc63   : > { %2881 = vmatpush.msrb.mxu2 %v2544_v18 }
 0xc65   : > { %2882 = vmatpush.msrb.mxu2 %v2543_v19 }
 0xc67   : > { %2883 = vmatpush.msrb.mxu2 %v2542_v20 }
 0xc69   : > { %2884 = vmatpush.msrb.mxu2 %v2541_v9 }
 0xc6b   : > { %2885 = vmatpush.msrb.mxu2 %v2540_v21 }
 0xcbe   : > { %v2279_v28 = vpop.f32.mrf.mxu1 }
 0xcbf   : > { %v2284_v29 = vrot.slane %v2279_v28, 2 }
 0xcc1   : > { %v2286_v30 = vmax.f32 %v2279_v28, %v2284_v29 }
 0xcc3   : > { %v2287_v31 = vpack.c.bf16 %v2286_v30, %v2286_v30 }
 0xcc5   : > { %2361 = vmatmul.bf16.vlgmr.msra.gmra.mxu0 %v2287_v31 }
 0xcc6   : > { %v2281_v32 = vpop.f32.mrf.mxu1 }
 0xd42   : > { %v2362_v33 = vpop.f32.mrf.mxu0 }
 0xd43   : > { %2366 = vrot.lane.b32.xlu0 %v2362_v33, %s8247_s25 }
 0xd4a   : > { %v2364_v34 = vpop.f32.mrf.mxu0 }
 0xdb5   : > { %v2367_v43 = vpop.permute.xlu0 %2366 }
 0xdb6   : > { %v2368_v46 = vmax.f32 %v2362_v33, %v2367_v43  ;;  %v7602_v43 = vld [vmem:[#allocation2 + $0x420] sm:$0xff] }
 0xdb7   : > { %2828 = vmatpush.bf16.msrb.mxu0 %v7602_v43  ;;  %v7641_v43 = vld [vmem:[#allocation2 + $0x558] sm:$0xff] }
 0xdb8   : > { %v2369_v48 = vpack.c.bf16 %v2368_v46, %v2368_v46  ;;  %v7601_v46 = vld [vmem:[#allocation2 + $0x418] sm:$0xff] }
 0xdba   : > { %v2371_v49 = vunpack.c.l.b16 %v2369_v48  ;;  %v7594_v48 = vld [vmem:[#allocation2 + $0x3e0] sm:$0xff] }
 0xdbb   : > { %2829 = vmatpush.bf16.msrb.mxu0 %v7601_v46  ;;  %2815 = vmatpush.bf16.msrb.mxu1 %v7594_v48  ;;  %v7640_v46 = vld [vmem:[#allocation2 + $0x550] sm:$0xff]  ;;  %v7638_v48 = vld [vmem:[#allocation2 + $0x540] sm:$0xff] }
 0xdbc   : > { %v2372_v52 = vpack.c.b16 %v2371_v49, %v2371_v49  ;;  %v7599_v49 = vld [vmem:[#allocation2 + $0x408] sm:$0xff] }
 0xdbe   : > { %v2374_v53 = vshrl.u32 %v2372_v52, 16  ;;  %2386 = vrot.lane.b32.xlu1 %v2372_v52, %s8247_s25  ;;  %v2377_v57 = vshll.u32 %v2372_v52, 16  ;;  %v7593_v52 = vld [vmem:[#allocation2 + $0x3d8] sm:$0xff] }
 0xdbf   : > { %2830 = vmatpush.bf16.msrb.mxu0 %v7600_v47  ;;  %2816 = vmatpush.bf16.msrb.mxu1 %v7593_v52  ;;  %v7639_v47 = vld [vmem:[#allocation2 + $0x548] sm:$0xff]  ;;  %v7636_v52 = vld [vmem:[#allocation2 + $0x530] sm:$0xff] }
 0xdc0   : > { %v2376_v56 = vrot.slane %v2374_v53, 7  ;;  %v7598_v53 = vld [vmem:[#allocation2 + $0x400] sm:$0xff] }
 0xdc2   : > { %v2379_v59 = vor.u32 %v2377_v57, %v2376_v56  ;;  %v7592_v56 = vld [vmem:[#allocation2 + $0x3d0] sm:$0xff]  ;;  %v7597_v57 = vld [vmem:[#allocation2 + $0x3f8] sm:$0xff] }
 0xdc3   : > { %2831 = vmatpush.bf16.msrb.mxu0 %v7599_v49  ;;  %2817 = vmatpush.bf16.msrb.mxu1 %v7592_v56 }
 0xdc4   : > { %v2381_v61 = vsel %vm8370_vm2, 0, %v2379_v59  ;;  %v7608_v59 = vld [vmem:[#allocation2 + $0x450] sm:$0xff] }
 0xdc5   : > { %v2385_v62 = vsel %vm8469_vm5, %v2381_v61, 0  ;;  %2843 = vmatpush.bf16.msrb.mxu3 %v7608_v59  ;;  %v7591_v61 = vld [vmem:[#allocation2 + $0x3c8] sm:$0xff] }
 0xdc6   : > { %v2389_v63 = vrot.slane %v2385_v62, 1 }
 0xdc7   : > { %2832 = vmatpush.bf16.msrb.mxu0 %v7598_v53  ;;  %2818 = vmatpush.bf16.msrb.mxu1 %v7591_v61 }
 0xdc8   : > { %6441 = vmatmul.msk.bf16.vlgmr.msra.gmra.mxu1 %vm1079_vm1, %v2389_v63 }
 0xdc9   : > { %2844 = vmatpush.bf16.msrb.mxu3 %v7607_v0 }
 0xdcb   : > { %2833 = vmatpush.bf16.msrb.mxu0 %v7597_v57  ;;  %2819 = vmatpush.bf16.msrb.mxu1 %v7590_v1  ;;  %v2956_v1 = vunpack.c.l.b16 %v8461_v24 }
 0xe30   : > { %v2387_v51 = vpop.permute.xlu1 %2386 }
 0xe31   : > { %v2392_v3 = vsel %vm1079_vm1, %v2385_v62, %v2387_v51  ;;  %v7596_v62 = vld [vmem:[#allocation2 + $0x3f0] sm:$0xff] }
 0xe32   : > { %2505 = vmatmul.bf16.vlgmr.msra.gmra.mxu3 %v2392_v3  ;;  %2834 = vmatpush.bf16.msrb.mxu0 %v7596_v62  ;;  %v7606_v3 = vld [vmem:[#allocation2 + $0x440] sm:$0xff] }
 0xe33   : > { %2845 = vmatpush.bf16.msrb.mxu3 %v7606_v3 }
 0xe36   : > { %2835 = vmatpush.bf16.msrb.mxu0 %v7595_v2 }
 0xe37   : > { %2846 = vmatpush.bf16.msrb.mxu3 %v7605_v7 }
 0xe3b   : > { %2847 = vmatpush.bf16.msrb.mxu3 %v7604_v10 }
 0xe3f   : > { %2848 = vmatpush.bf16.msrb.mxu3 %v7603_v16 }
 0xe45   : > { %v2519_v5 = vpop.f32.mrf.mxu1 }
 0xe4d   : > { %v2521_v6 = vpop.f32.mrf.mxu1 }
 0xeb5   : > { %v2506_v23 = vpop.f32.mrf.mxu3 }
 0xeb6   : > { %v2507_v25 = vadd.f32 %v7930_v22, %v2506_v23 }
 0xeb8   : > { %v8479_v26 = vadd.f32 %v2519_v5, %v2507_v25  ;;  %v7589_v5 = vld [vmem:[#allocation2 + $0x3b8] sm:$0xff] }
 0xeb9   : > { %2820 = vmatpush.bf16.msrb.mxu1 %v7589_v5 }
 0xeba   : > { %v2523_v11 = vsel %vm2266_vm12, %v8479_v26, 0.0  ;;  %v2530_v27 = vmul.f32 %v8479_v26, %v8479_v26 }
 0xebb   : > { %v2524_v28 = vrot.slane %v2523_v11, 4 }
 0xebc   : > { %v2531_v29 = vsel %vm2266_vm12, %v2530_v27, 0.0  ;;  %v7931_v27 = vld [vmem:[#allocation4 + $0x13] ss:$0 sm:$0xff] }
 0xebd   : > { %v2525_v30 = vadd.f32 %v2524_v28, %v2523_v11  ;;  %v2532_v31 = vrot.slane %v2531_v29, 4  ;;  %v2508_v32 = vpop.f32.mrf.mxu3  ;;  %2821 = vmatpush.bf16.msrb.mxu1 %v7588_v8 }
 0xebf   : > { %v2526_v33 = vrot.slane %v2525_v30, 2  ;;  %v2533_v34 = vadd.f32 %v2532_v31, %v2531_v29  ;;  %v7932_v29 = vld [vmem:[#allocation4 + $0x14] ss:$0 sm:$0xff] }
 0xec1   : > { %v2527_v35 = vadd.f32 %v2526_v33, %v2525_v30  ;;  %v2534_v36 = vrot.slane %v2533_v34, 2  ;;  %2822 = vmatpush.bf16.msrb.mxu1 %v7587_v15 }
 0xec3   : > { %v2528_v37 = vrot.slane %v2527_v35, 1  ;;  %v2535_v38 = vadd.f32 %v2534_v36, %v2533_v34 }
 0xec5   : > { %v2536_v39 = vrot.slane %v2535_v38, 1  ;;  %v2529_v40 = vadd.f32 %v2528_v37, %v2527_v35 }
 0xec7   : > { %v2537_v41 = vadd.f32 %v2536_v39, %v2535_v38 }
 0xec9   : > { %v2538_v42 = vsel %vm398_vm0, %v2529_v40, %v2537_v41 }
 0xeca   : > { %2572 = vmatmul.f32.vlgmr.msra.gmra.mxu2 %v2538_v42  ;;  %v7642_v42 = vld [vmem:[#allocation2 + $0x560] sm:$0xff] }
 0xecb   : > { %3398 = vmatpush.bf16.msra.mxu2 %v7642_v42  ;;  %v7616_v42 = vld [vmem:[#allocation2 + $0x490] sm:$0xff] }
 0xecf   : > { %3399 = vmatpush.bf16.msra.mxu2 %v7641_v43 }
 0xed3   : > { %3400 = vmatpush.bf16.msra.mxu2 %v7640_v46  ;;  %v7623_v46 = vld [vmem:[#allocation2 + $0x4c8] sm:$0xff] }
 0xed7   : > { %3401 = vmatpush.bf16.msra.mxu2 %v7639_v47 }
 0xedb   : > { %3402 = vmatpush.bf16.msra.mxu2 %v7638_v48  ;;  %v7615_v48 = vld [vmem:[#allocation2 + $0x488] sm:$0xff] }
 0xedf   : > { %3403 = vmatpush.bf16.msra.mxu2 %v7637_v50 }
 0xee3   : > { %3404 = vmatpush.bf16.msra.mxu2 %v7636_v52  ;;  %v7622_v52 = vld [vmem:[#allocation2 + $0x4c0] sm:$0xff] }
 0xee7   : > { %3405 = vmatpush.bf16.msra.mxu2 %v7635_v58  ;;  %v7614_v58 = vld [vmem:[#allocation2 + $0x480] sm:$0xff] }
 0xf4d   : > { %v2573_v60 = vpop.f32.mrf.mxu2 }
 0xf4e   : > { %v2576_v63 = vmul.f32 %v2573_v60, %v2573_v60  ;;  %v2582_v21 = vperm.slane %v2573_v60, 0 }
 0xf50   : > { %v2578_v51 = vrot.slane %v2576_v63, 7  ;;  %v2583_v25 = vsub.f32 %v8479_v26, %v2582_v21 }
 0xf52   : > { %v2580_v54 = vsub.f32 %v2573_v60, %v2578_v51 }
 0xf54   : > { %v2581_v4 = vmax.f32 %v2580_v54, 0.0 }
 0xf56   : > { %v2584_v6 = vadd.f32 1e-05, %v2581_v4  ;;  %v2957_v4 = vpack.c.b16 %v2956_v1, %v2956_v1 }
 0xf58   : > { %7967 = vrsqrt.f32 %v2584_v6  ;;  %vm2591_vm6 = vweird.f32 %v2584_v6  ;;  %v2959_v15 = vshrl.u32 %v2957_v4, 16  ;;  %v2962_v21 = vshll.u32 %v2957_v4, 16  ;;  %v7634_v4 = vld [vmem:[#allocation2 + $0x520] sm:$0xff] }
 0xf5e   : > { %v7968_v17 = vpop.eup %7967 }
 0xf5f   : > { %v2586_v18 = vmul.f32 %v7968_v17, %v2584_v6  ;;  %vm2592_vm1 = vweird.f32 %v7968_v17 }
 0xf60   : > { %vm2593_vm7 = vmor %vm2591_vm6, %vm2592_vm1 }
 0xf61   : > { %v2587_v19 = vmul.f32 %v7968_v17, %v2586_v18 }
 0xf63   : > { %v2588_v20 = vmul.f32 0.5, %v2587_v19  ;;  %v2961_v19 = vrot.slane %v2959_v15, 7  ;;  %v7657_v15 = vld [vmem:[#allocation2 + $0x5d8] sm:$0xff] }
 0xf65   : > { %v2589_v9 = vsub.f32 1.5, %v2588_v20 }
 0xf67   : > { %v2590_v22 = vmul.f32 %v7968_v17, %v2589_v9 }
 0xf69   : > { %v2594_v23 = vsel %vm2593_vm7, %v7968_v17, %v2590_v22 }
 0xf6a   : > { %v2595_v11 = vperm.slane %v2594_v23, 1  ;;  %v2964_v23 = vor.u32 %v2962_v21, %v2961_v19  ;;  %v7650_v19 = vld [vmem:[#allocation2 + $0x5a0] sm:$0xff]  ;;  %v7649_v21 = vld [vmem:[#allocation2 + $0x598] sm:$0xff] }
 0xf6c   : > { %v2596_v28 = vmul.f32 %v2595_v11, %v2583_v25  ;;  %v2966_v25 = vsel %vm8370_vm2, 0, %v2964_v23  ;;  %v7629_v23 = vld [vmem:[#allocation2 + $0x4f8] sm:$0xff] }
 0xf6d   : > { %v8505_v11 = vsel %vm8435_vm14, %v2966_v25, 0  ;;  %v7648_v25 = vld [vmem:[#allocation2 + $0x590] sm:$0xff] }
 0xf6e   : > { %v2598_v30 = vmul.f32 %v7931_v27, %v2596_v28 }
 0xf70   : > { %v2600_v31 = vadd.f32 %v7932_v29, %v2598_v30 }
 0xf72   : > { %v2601_v32 = vmax.f32 %v2600_v31, 0.0 }
 0xf74   : > { %v2602_v33 = vpack.c.bf16 %v2601_v32, %v2601_v32 }
 0xf76   : > { %v2604_v34 = vunpack.c.l.b16 %v2602_v33  ;;  %2836 = vmatmul.bf16.vlgmr.msrb.gmra.mxu0 %v2602_v33 }
 0xf78   : > { %v2605_v35 = vpack.c.b16 %v2604_v34, %v2604_v34  ;;  %v7626_v34 = vld [vmem:[#allocation2 + $0x4e0] sm:$0xff] }
 0xf79   : > { %3372 = vmatpush.bf16.msra.mxu3 %v7626_v34  ;;  %v7651_v34 = vld [vmem:[#allocation2 + $0x5a8] sm:$0xff] }
 0xf7a   : > { %v2607_v36 = vshrl.u32 %v2605_v35, 16  ;;  %v2610_v38 = vshll.u32 %v2605_v35, 16  ;;  %v7618_v35 = vld [vmem:[#allocation2 + $0x4a0] sm:$0xff] }
 0xf7b   : > { %3359 = vmatpush.bf16.msra.mxu0 %v7618_v35  ;;  %v7983_v35 = vld [vmem:[#allocation6 + $0x178] sm:$0xff] }
 0xf7c   : > { %v2609_v37 = vrot.slane %v2607_v36, 7  ;;  %v7625_v36 = vld [vmem:[#allocation2 + $0x4d8] sm:$0xff] }
 0xf7d   : > { %3373 = vmatpush.bf16.msra.mxu3 %v7625_v36  ;;  %v7984_v36 = vld [vmem:[#allocation6 + $0x170] sm:$0xff] }
 0xf7e   : > { %v2612_v39 = vor.u32 %v2610_v38, %v2609_v37  ;;  %v7617_v38 = vld [vmem:[#allocation2 + $0x498] sm:$0xff] }
 0xf7f   : > { %3360 = vmatpush.bf16.msra.mxu0 %v7617_v38  ;;  %v7985_v38 = vld [vmem:[#allocation6 + $0x168] sm:$0xff] }
 0xf80   : > { %v2614_v40 = vsel %vm8370_vm2, 0, %v2612_v39 }
 0xf81   : > { %v2615_v26 = vsel %vm8469_vm5, %v2614_v40, 0  ;;  %vm2918_vm5 = vcmask 15360  }
 0xf82   : > { %v2617_v41 = vrot.slane %v2615_v26, 1  ;;  %2823 = vmatmul.bf16.vlgmr.msrb.gmra.mxu1 %v2615_v26  ;;  %v7624_v26 = vld [vmem:[#allocation2 + $0x4d0] sm:$0xff] }
 0xf83   : > { %3374 = vmatpush.bf16.msra.mxu3 %v7624_v26  ;;  %3361 = vmatpush.bf16.msra.mxu0 %v7616_v42  ;;  %v7987_v26 = vld [vmem:[#allocation6 + $0x158] sm:$0xff]  ;;  %v7988_v42 = vld [vmem:[#allocation6 + $0x150] sm:$0xff] }
 0xf84   : > { %2849 = vmatmul.bf16.vlgmr.msrb.gmra.mxu3 %v2617_v41 }
 0xf87   : > { %3375 = vmatpush.bf16.msra.mxu3 %v7623_v46  ;;  %3362 = vmatpush.bf16.msra.mxu0 %v7615_v48  ;;  %v7990_v46 = vld [vmem:[#allocation6 + $0x140] sm:$0xff] }
 0xf8b   : > { %3376 = vmatpush.bf16.msra.mxu3 %v7622_v52  ;;  %3363 = vmatpush.bf16.msra.mxu0 %v7614_v58 }
 0xff3   : > { %v2837_v49 = vpop.f32.mrf.mxu0 }
 0xffb   : > { %v2839_v53 = vpop.f32.mrf.mxu0 }
 0xfff   : > { %v2824_v56 = vpop.f32.mrf.mxu1 }
0x1000   : > { %v2825_v57 = vadd.f32 %v7933_v55, %v2824_v56 }
0x1002   : > { %v2838_v59 = vadd.f32 %v2837_v49, %v2825_v57  ;;  %v7934_v57 = vld [vmem:[#allocation4 + $0x16] ss:$0 sm:$0xff] }
0x1007   : > { %v2826_v60 = vpop.f32.mrf.mxu1  ;;  %v2850_v61 = vpop.f32.mrf.mxu3 }
0x1008   : > { %v8492_v62 = vadd.f32 %v2850_v61, %v2838_v59  ;;  %v7935_v60 = vld [vmem:[#allocation4 + $0x17] ss:$0 sm:$0xff] }
0x1009   : > { %v7621_v61 = vld [vmem:[#allocation2 + $0x4b8] sm:$0xff] }
0x100a   : > { %v2854_v63 = vsel %vm2266_vm12, %v8492_v62, 0.0  ;;  %v2861_v0 = vmul.f32 %v8492_v62, %v8492_v62  ;;  %3377 = vmatpush.bf16.msra.mxu3 %v7621_v61 }
0x100b   : > { %v2855_v2 = vrot.slane %v2854_v63, 4 }
0x100c   : > { %v2862_v51 = vsel %vm2266_vm12, %v2861_v0, 0.0 }
0x100d   : > { %v2856_v3 = vadd.f32 %v2855_v2, %v2854_v63  ;;  %v2863_v54 = vrot.slane %v2862_v51, 4  ;;  %v7613_v63 = vld [vmem:[#allocation2 + $0x478] sm:$0xff]  ;;  %v7620_v2 = vld [vmem:[#allocation2 + $0x4b0] sm:$0xff] }
0x100e   : > { %3364 = vmatpush.bf16.msra.mxu0 %v7613_v63  ;;  %3378 = vmatpush.bf16.msra.mxu3 %v7620_v2  ;;  %v7996_v63 = vld [vmem:[#allocation6 + $0x110] sm:$0xff] }
0x100f   : > { %v2857_v5 = vrot.slane %v2856_v3, 2  ;;  %v2864_v6 = vadd.f32 %v2863_v54, %v2862_v51  ;;  %v2852_v7 = vpop.f32.mrf.mxu3  ;;  %v7612_v51 = vld [vmem:[#allocation2 + $0x470] sm:$0xff] }
0x1011   : > { %v2858_v8 = vadd.f32 %v2857_v5, %v2856_v3  ;;  %v2865_v10 = vrot.slane %v2864_v6, 2  ;;  %v7619_v5 = vld [vmem:[#allocation2 + $0x4a8] sm:$0xff] }
0x1012   : > { %3365 = vmatpush.bf16.msra.mxu0 %v7612_v51  ;;  %3379 = vmatpush.bf16.msra.mxu3 %v7619_v5  ;;  %v7998_v51 = vld [vmem:[#allocation6 + $0x100] sm:$0xff]  ;;  %v7936_v5 = vld [vmem:[#allocation4 + $0x18] ss:$0 sm:$0xff] }
0x1013   : > { %v2859_v16 = vrot.slane %v2858_v8, 1  ;;  %v2866_v17 = vadd.f32 %v2865_v10, %v2864_v6  ;;  %v7611_v6 = vld [vmem:[#allocation2 + $0x468] sm:$0xff]  ;;  %v7633_v10 = vld [vmem:[#allocation2 + $0x518] sm:$0xff] }
0x1015   : > { %v2867_v18 = vrot.slane %v2866_v17, 1  ;;  %v2860_v20 = vadd.f32 %v2859_v16, %v2858_v8  ;;  %v2916_v8 = vld [vmem:[#allocation10] sm:$0x3] }
0x1016   : > { %3366 = vmatpush.bf16.msra.mxu0 %v7611_v6  ;;  %v7632_v16 = vld [vmem:[#allocation2 + $0x510] sm:$0xff] }
0x1017   : > { %v2868_v9 = vadd.f32 %v2867_v18, %v2866_v17  ;;  %v7656_v17 = vld [vmem:[#allocation2 + $0x5d0] sm:$0xff]  ;;  %v7631_v18 = vld [vmem:[#allocation2 + $0x508] sm:$0xff] }
0x1019   : > { %v2869_v22 = vsel %vm398_vm0, %v2860_v20, %v2868_v9  ;;  %v7655_v20 = vld [vmem:[#allocation2 + $0x5c8] sm:$0xff]  ;;  %v7630_v9 = vld [vmem:[#allocation2 + $0x500] sm:$0xff] }
0x101a   : > { %2886 = vmatmul.f32.vlgmr.msrb.gmra.mxu2 %v2869_v22  ;;  %3411 = vmatpush.bf16.msrb.mxu0 %v7650_v19  ;;  %v7654_v22 = vld [vmem:[#allocation2 + $0x5c0] sm:$0xff] }
0x101e   : > { %3412 = vmatpush.bf16.msrb.mxu0 %v7649_v21 }
0x1022   : > { %3406 = vmatmul.bf16.vlgmr.msra.gmra.mxu2 %v8505_v11  ;;  %3413 = vmatpush.bf16.msrb.mxu0 %v7648_v25 }
0x109d   : > { %v2887_v27 = vpop.f32.mrf.mxu2 }
0x109e   : > { %v2890_v28 = vmul.f32 %v2887_v27, %v2887_v27  ;;  %v2896_v49 = vperm.slane %v2887_v27, 0 }
0x10a0   : > { %v2892_v29 = vrot.slane %v2890_v28, 7  ;;  %v2897_v55 = vsub.f32 %v8492_v62, %v2896_v49  ;;  %v7658_v62 = vld [vmem:[#allocation2 + $0x5e0] sm:$0xff]  ;;  %v7628_v28 = vld [vmem:[#allocation2 + $0x4f0] sm:$0xff] }
0x10a1   : > { %3424 = vmatpush.bf16.msrb.mxu3 %v7658_v62 }
0x10a2   : > { %v2894_v30 = vsub.f32 %v2887_v27, %v2892_v29  ;;  %v7653_v27 = vld [vmem:[#allocation2 + $0x5b8] sm:$0xff]  ;;  %v7647_v29 = vld [vmem:[#allocation2 + $0x588] sm:$0xff] }
0x10a3   : > { %3414 = vmatpush.bf16.msrb.mxu0 %v7647_v29 }
0x10a4   : > { %v2895_v31 = vmax.f32 %v2894_v30, 0.0  ;;  %v7652_v30 = vld [vmem:[#allocation2 + $0x5b0] sm:$0xff] }
0x10a5   : > { %v8508_v32 = vpop.f32.mrf.mxu2  ;;  %3425 = vmatpush.bf16.msrb.mxu3 %v7657_v15 }
0x10a6   : > { %v2898_v33 = vadd.f32 1e-05, %v2895_v31  ;;  %v7627_v31 = vld [vmem:[#allocation2 + $0x4e8] sm:$0xff] }
0x10a8   : > { %7969 = vrsqrt.f32 %v2898_v33  ;;  %vm2905_vm9 = vweird.f32 %v2898_v33 }
0x10a9   : > { %3426 = vmatpush.bf16.msrb.mxu3 %v7656_v17 }
0x10ad   : > { %v3409_v37 = vpop.f32.mrf.mxu2  ;;  %3427 = vmatpush.bf16.msrb.mxu3 %v7655_v20 }
0x10ae   : > { %v7970_v39 = vpop.eup %7969  ;;  %v7645_v37 = vld [vmem:[#allocation2 + $0x578] sm:$0xff] }
0x10af   : > { %v2900_v40 = vmul.f32 %v7970_v39, %v2898_v33  ;;  %vm2906_vm8 = vweird.f32 %v7970_v39  ;;  %v7646_v33 = vld [vmem:[#allocation2 + $0x580] sm:$0xff] }
0x10b0   : > { %vm2907_vm4 = vmor %vm2905_vm9, %vm2906_vm8  ;;  %3415 = vmatpush.bf16.msrb.mxu0 %v7646_v33 }
0x10b1   : > { %v2901_v41 = vmul.f32 %v7970_v39, %v2900_v40  ;;  %3428 = vmatpush.bf16.msrb.mxu3 %v7654_v22  ;;  %v7986_v40 = vld [vmem:[#allocation6 + $0x160] sm:$0xff] }
0x10b3   : > { %v2902_v43 = vmul.f32 0.5, %v2901_v41  ;;  %v7643_v41 = vld [vmem:[#allocation2 + $0x568] sm:$0xff] }
0x10b4   : > { %3416 = vmatpush.bf16.msrb.mxu0 %v7645_v37 }
0x10b5   : > { %v2903_v47 = vsub.f32 1.5, %v2902_v43  ;;  %3429 = vmatpush.bf16.msrb.mxu3 %v7653_v27  ;;  %v7989_v43 = vld [vmem:[#allocation6 + $0x148] sm:$0xff] }
0x10b7   : > { %v2904_v50 = vmul.f32 %v7970_v39, %v2903_v47  ;;  %v7991_v47 = vld [vmem:[#allocation6 + $0x138] sm:$0xff] }
0x10b9   : > { %v2908_v53 = vsel %vm2907_vm4, %v7970_v39, %v2904_v50  ;;  %3430 = vmatpush.bf16.msrb.mxu3 %v7652_v30  ;;  %v7644_v39 = vld [vmem:[#allocation2 + $0x570] sm:$0xff]  ;;  %v7992_v50 = vld [vmem:[#allocation6 + $0x130] sm:$0xff] }
0x10ba   : > { %v2909_v56 = vperm.slane %v2908_v53, 1  ;;  %3417 = vmatpush.bf16.msrb.mxu0 %v7644_v39  ;;  %v7993_v53 = vld [vmem:[#allocation6 + $0x128] sm:$0xff] }
0x10bc   : > { %v2910_v59 = vmul.f32 %v2909_v56, %v2897_v55  ;;  %v7994_v55 = vld [vmem:[#allocation6 + $0x120] sm:$0xff] }
0x10bd   : > { %3431 = vmatpush.bf16.msrb.mxu3 %v7651_v34 }
0x10be   : > { %v2912_v0 = vmul.f32 %v7934_v57, %v2910_v59  ;;  %3418 = vmatpush.bf16.msrb.mxu0 %v7643_v41  ;;  %v7995_v57 = vld [vmem:[#allocation6 + $0x118] sm:$0xff]  ;;  %v7673_v41 = vld [vmem:[#allocation2 + $0x658] sm:$0xff] }
0x10c0   : > { %v2914_v1 = vadd.f32 %v7935_v60, %v2912_v0 }
0x10c2   : > { %v2915_v3 = vmax.f32 %v2914_v1, 0.0  ;;  %v7997_v1 = vld [vmem:[#allocation6 + $0x108] sm:$0xff] }
0x10c4   : > { %v2917_v54 = vpack.c.bf16 %v2915_v3, %v2915_v3 }
0x10c6   : > { %v2923_v7 = vsel %vm398_vm0, %v2917_v54, 0 }
0x10c7   : > { %2932 = vmatpush.bf16.msra.mxu1 %v2923_v7 }
0x10ca   : > { %6538 = vmatmul.msk.bf16.vlgmr.msra.gmra.mxu1 %vm2918_vm5, %v2916_v8 }
0x10cb   : > { %3385 = vmatpush.bf16.msrb.mxu1 %v7634_v4  ;;  %v2969_v4 = vrot.slane %v8505_v11, 1 }
0x10cf   : > { %3386 = vmatpush.bf16.msrb.mxu1 %v7633_v10 }
0x10d3   : > { %3387 = vmatpush.bf16.msrb.mxu1 %v7632_v16 }
0x10d7   : > { %3388 = vmatpush.bf16.msrb.mxu1 %v7631_v18 }
0x10db   : > { %3389 = vmatpush.bf16.msrb.mxu1 %v7630_v9 }
0x10df   : > { %3390 = vmatpush.bf16.msrb.mxu1 %v7629_v23 }
0x10e3   : > { %3391 = vmatpush.bf16.msrb.mxu1 %v7628_v28 }
0x10e7   : > { %3392 = vmatpush.bf16.msrb.mxu1 %v7627_v31 }
0x10eb   : > { %3453 = vmatpush.msra.mxu1 %v7983_v35 }
0x10ed   : > { %3454 = vmatpush.msra.mxu1 %v7984_v36 }
0x10ef   : > { %3455 = vmatpush.msra.mxu1 %v7985_v38 }
0x10f1   : > { %3456 = vmatpush.msra.mxu1 %v7986_v40 }
0x10f3   : > { %3457 = vmatpush.msra.mxu1 %v7987_v26 }
0x10f5   : > { %3458 = vmatpush.msra.mxu1 %v7988_v42 }
0x10f7   : > { %3459 = vmatpush.msra.mxu1 %v7989_v43 }
0x10f9   : > { %3460 = vmatpush.msra.mxu1 %v7990_v46 }
0x10fb   : > { %3461 = vmatpush.msra.mxu1 %v7991_v47 }
0x10fd   : > { %3462 = vmatpush.msra.mxu1 %v7992_v50 }
0x10ff   : > { %3463 = vmatpush.msra.mxu1 %v7993_v53 }
0x1101   : > { %3464 = vmatpush.msra.mxu1 %v7994_v55 }
0x1103   : > { %3465 = vmatpush.msra.mxu1 %v7995_v57 }
0x1105   : > { %3466 = vmatpush.msra.mxu1 %v7996_v63 }
0x1107   : > { %3467 = vmatpush.msra.mxu1 %v7997_v1 }
0x1109   : > { %3468 = vmatpush.msra.mxu1 %v7998_v51 }
0x1147   : > { %v2934_v48 = vpop.f32.mrf.mxu1 }
0x1148   : > { %v2938_v49 = vpack.c.bf16 %v2934_v48, %v2934_v48  ;;  %v7665_v48 = vld [vmem:[#allocation2 + $0x618] sm:$0xff] }
0x114a   : > { %v2940_v52 = vunpack.c.l.b16 %v2938_v49  ;;  %3380 = vmatmul.bf16.vlgmr.msra.gmra.mxu3 %v2938_v49  ;;  %v7670_v49 = vld [vmem:[#allocation2 + $0x640] sm:$0xff] }
0x114c   : > { %v2941_v58 = vpack.c.b16 %v2940_v52, %v2940_v52  ;;  %v7664_v52 = vld [vmem:[#allocation2 + $0x610] sm:$0xff] }
0x114e   : > { %v2943_v56 = vshrl.u32 %v2941_v58, 16  ;;  %v2946_v61 = vshll.u32 %v2941_v58, 16  ;;  %v7680_v58 = vld [vmem:[#allocation2 + $0x690] sm:$0xff] }
0x114f   : > { %v2936_v59 = vpop.f32.mrf.mxu1 }
0x1150   : > { %v2945_v60 = vrot.slane %v2943_v56, 7  ;;  %v7663_v56 = vld [vmem:[#allocation2 + $0x608] sm:$0xff] }
0x1152   : > { %v2948_v0 = vor.u32 %v2946_v61, %v2945_v60  ;;  %v7679_v60 = vld [vmem:[#allocation2 + $0x688] sm:$0xff]  ;;  %v7662_v61 = vld [vmem:[#allocation2 + $0x600] sm:$0xff] }
0x1154   : > { %v2950_v2 = vsel %vm8370_vm2, 0, %v2948_v0 }
0x1155   : > { %v2951_v3 = vsel %vm8435_vm14, %v2950_v2, 0 }
0x1156   : > { %v2953_v54 = vrot.slane %v2951_v3, 1  ;;  %3367 = vmatmul.bf16.vlgmr.msra.gmra.mxu0 %v2951_v3  ;;  %v7661_v3 = vld [vmem:[#allocation2 + $0x5f8] sm:$0xff] }
0x1158   : > { %3393 = vmatmul.bf16.vlgmr.msrb.gmra.mxu1 %v2953_v54 }
0x1159   : > { %3767 = vmatpush.msrb.mxu1 %v7983_v35 }
0x115a   : > { %3432 = vmatmul.bf16.vlgmr.msrb.gmra.mxu3 %v2969_v4  ;;  %v7677_v4 = vld [vmem:[#allocation2 + $0x678] sm:$0xff] }
0x115b   : > { %3768 = vmatpush.msrb.mxu1 %v7984_v36 }
0x115d   : > { %3769 = vmatpush.msrb.mxu1 %v7985_v38 }
0x115f   : > { %3770 = vmatpush.msrb.mxu1 %v7986_v40 }
0x1161   : > { %3771 = vmatpush.msrb.mxu1 %v7987_v26  ;;  %v7674_v26 = vld [vmem:[#allocation2 + $0x660] sm:$0xff] }
0x1162   : > { %3725 = vmatpush.bf16.msra.mxu0 %v7674_v26  ;;  %v7711_v26 = vld [vmem:[#allocation2 + $0x788] sm:$0xff] }
0x1163   : > { %3772 = vmatpush.msrb.mxu1 %v7988_v42  ;;  %v7672_v42 = vld [vmem:[#allocation2 + $0x650] sm:$0xff] }
0x1165   : > { %3773 = vmatpush.msrb.mxu1 %v7989_v43  ;;  %v7666_v43 = vld [vmem:[#allocation2 + $0x620] sm:$0xff] }
0x1166   : > { %3419 = vmatmul.bf16.vlgmr.msrb.gmra.mxu0 %v8461_v24  ;;  %3712 = vmatpush.bf16.msrb.mxu2 %v7666_v43  ;;  %v7709_v43 = vld [vmem:[#allocation2 + $0x778] sm:$0xff] }
0x1167   : > { %3774 = vmatpush.msrb.mxu1 %v7990_v46  ;;  %3726 = vmatpush.bf16.msra.mxu0 %v7673_v41  ;;  %v7671_v46 = vld [vmem:[#allocation2 + $0x648] sm:$0xff] }
0x1169   : > { %3775 = vmatpush.msrb.mxu1 %v7991_v47  ;;  %v7682_v47 = vld [vmem:[#allocation2 + $0x6a0] sm:$0xff] }
0x116a   : > { %3738 = vmatpush.bf16.msra.mxu3 %v7682_v47  ;;  %3713 = vmatpush.bf16.msrb.mxu2 %v7665_v48  ;;  %v7708_v47 = vld [vmem:[#allocation2 + $0x770] sm:$0xff]  ;;  %v7939_v48 = vld [vmem:[#allocation4 + $0x1b] ss:$0 sm:$0xff] }
0x116b   : > { %3776 = vmatpush.msrb.mxu1 %v7992_v50  ;;  %3727 = vmatpush.bf16.msra.mxu0 %v7672_v42  ;;  %v7681_v50 = vld [vmem:[#allocation2 + $0x698] sm:$0xff]  ;;  %v7710_v42 = vld [vmem:[#allocation2 + $0x780] sm:$0xff] }
0x116d   : > { %3777 = vmatpush.msrb.mxu1 %v7993_v53  ;;  %v7669_v53 = vld [vmem:[#allocation2 + $0x638] sm:$0xff] }
0x116e   : > { %3739 = vmatpush.bf16.msra.mxu3 %v7681_v50  ;;  %3714 = vmatpush.bf16.msrb.mxu2 %v7664_v52 }
0x116f   : > { %3778 = vmatpush.msrb.mxu1 %v7994_v55  ;;  %3728 = vmatpush.bf16.msra.mxu0 %v7671_v46 }
0x1171   : > { %3779 = vmatpush.msrb.mxu1 %v7995_v57  ;;  %v7668_v57 = vld [vmem:[#allocation2 + $0x630] sm:$0xff] }
0x1172   : > { %3740 = vmatpush.bf16.msra.mxu3 %v7680_v58  ;;  %3715 = vmatpush.bf16.msrb.mxu2 %v7663_v56 }
0x1173   : > { %3780 = vmatpush.msrb.mxu1 %v7996_v63  ;;  %3729 = vmatpush.bf16.msra.mxu0 %v7670_v49  ;;  %v7667_v63 = vld [vmem:[#allocation2 + $0x628] sm:$0xff] }
0x1175   : > { %3781 = vmatpush.msrb.mxu1 %v7997_v1  ;;  %v7678_v1 = vld [vmem:[#allocation2 + $0x680] sm:$0xff] }
0x1176   : > { %3741 = vmatpush.bf16.msra.mxu3 %v7679_v60  ;;  %3716 = vmatpush.bf16.msrb.mxu2 %v7662_v61 }
0x1177   : > { %3782 = vmatpush.msrb.mxu1 %v7998_v51  ;;  %3730 = vmatpush.bf16.msra.mxu0 %v7669_v53 }
0x117a   : > { %3742 = vmatpush.bf16.msra.mxu3 %v7678_v1  ;;  %3717 = vmatpush.bf16.msrb.mxu2 %v7661_v3 }
0x117b   : > { %3731 = vmatpush.bf16.msra.mxu0 %v7668_v57 }
0x117e   : > { %3743 = vmatpush.bf16.msra.mxu3 %v7677_v4 }
0x117f   : > { %3732 = vmatpush.bf16.msra.mxu0 %v7667_v63 }
0x11cd   : > { %v3381_v11 = vpop.f32.mrf.mxu3 }
0x11d3   : > { %v3368_v62 = vpop.f32.mrf.mxu0 }
0x11d4   : > { %v3369_v8 = vadd.f32 %v7936_v5, %v3368_v62  ;;  %v7676_v5 = vld [vmem:[#allocation2 + $0x670] sm:$0xff]  ;;  %v7659_v62 = vld [vmem:[#allocation2 + $0x5e8] sm:$0xff] }
0x11d5   : > { %v3383_v6 = vpop.f32.mrf.mxu3  ;;  %v3394_v7 = vpop.f32.mrf.mxu1  ;;  %3744 = vmatpush.bf16.msra.mxu3 %v7676_v5 }
0x11d6   : > { %v3382_v10 = vadd.f32 %v3381_v11, %v3369_v8  ;;  %v7660_v11 = vld [vmem:[#allocation2 + $0x5f0] sm:$0xff]  ;;  %v7675_v6 = vld [vmem:[#allocation2 + $0x668] sm:$0xff] }
0x11d7   : > { %3718 = vmatpush.bf16.msrb.mxu2 %v7660_v11 }
0x11d8   : > { %v3395_v24 = vadd.f32 %v3394_v7, %v3382_v10 }
0x11d9   : > { %3745 = vmatpush.bf16.msra.mxu3 %v7675_v6 }
0x11da   : > { %v3408_v18 = vadd.f32 %v8508_v32, %v3395_v24 }
0x11db   : > { %v3370_v15 = vpop.f32.mrf.mxu0  ;;  %3719 = vmatpush.bf16.msrb.mxu2 %v7659_v62 }
0x11dd   : > { %v3396_v16 = vpop.f32.mrf.mxu1  ;;  %v3433_v17 = vpop.f32.mrf.mxu3 }
0x11e3   : > { %v3420_v19 = vpop.f32.mrf.mxu0 }
0x11e4   : > { %v3421_v20 = vadd.f32 %v3420_v19, %v3408_v18 }
0x11e5   : > { %v3435_v9 = vpop.f32.mrf.mxu3 }
0x11e6   : > { %v8519_v21 = vadd.f32 %v3433_v17, %v3421_v20  ;;  %v7937_v9 = vld [vmem:[#allocation4 + $0x19] ss:$0 sm:$0xff] }
0x11e8   : > { %v3437_v22 = vsel %vm1609_vm10, %v8519_v21, 0.0  ;;  %v3444_v23 = vmul.f32 %v8519_v21, %v8519_v21 }
0x11e9   : > { %v3438_v25 = vrot.slane %v3437_v22, 4 }
0x11ea   : > { %v3445_v27 = vsel %vm1609_vm10, %v3444_v23, 0.0  ;;  %v7938_v23 = vld [vmem:[#allocation4 + $0x1a] ss:$0 sm:$0xff] }
0x11eb   : > { %v3439_v28 = vadd.f32 %v3438_v25, %v3437_v22  ;;  %v3446_v29 = vrot.slane %v3445_v27, 4  ;;  %v3422_v30 = vpop.f32.mrf.mxu0 }
0x11ed   : > { %v3440_v31 = vrot.slane %v3439_v28, 2  ;;  %v3447_v33 = vadd.f32 %v3446_v29, %v3445_v27 }
0x11ef   : > { %v3441_v32 = vadd.f32 %v3440_v31, %v3439_v28  ;;  %v3448_v34 = vrot.slane %v3447_v33, 2 }
0x11f1   : > { %v3442_v35 = vrot.slane %v3441_v32, 1  ;;  %v3449_v36 = vadd.f32 %v3448_v34, %v3447_v33 }
0x11f3   : > { %v3450_v37 = vrot.slane %v3449_v36, 1  ;;  %v3443_v38 = vadd.f32 %v3442_v35, %v3441_v32 }
0x11f5   : > { %v3451_v39 = vadd.f32 %v3450_v37, %v3449_v36 }
0x11f7   : > { %v3452_v40 = vsel %vm398_vm0, %v3443_v38, %v3451_v39  ;;  %v7714_v38 = vld [vmem:[#allocation2 + $0x7a0] sm:$0xff]  ;;  %v7713_v39 = vld [vmem:[#allocation2 + $0x798] sm:$0xff] }
0x11f8   : > { %3469 = vmatmul.f32.vlgmr.msra.gmra.mxu1 %v3452_v40  ;;  %v7712_v40 = vld [vmem:[#allocation2 + $0x790] sm:$0xff] }
0x11f9   : > { %4295 = vmatpush.bf16.msra.mxu1 %v7714_v38 }
0x11fd   : > { %4296 = vmatpush.bf16.msra.mxu1 %v7713_v39 }
0x1201   : > { %4297 = vmatpush.bf16.msra.mxu1 %v7712_v40 }
0x1205   : > { %4298 = vmatpush.bf16.msra.mxu1 %v7711_v26  ;;  %v7940_v26 = vld [vmem:[#allocation4 + $0x1c] ss:$0 sm:$0xff] }
0x1209   : > { %4299 = vmatpush.bf16.msra.mxu1 %v7710_v42  ;;  %v7941_v42 = vld [vmem:[#allocation4 + $0x1d] ss:$0 sm:$0xff] }
0x120d   : > { %4300 = vmatpush.bf16.msra.mxu1 %v7709_v43  ;;  %v7687_v43 = vld [vmem:[#allocation2 + $0x6c8] sm:$0xff] }
0x1211   : > { %4301 = vmatpush.bf16.msra.mxu1 %v7708_v47 }
0x1215   : > { %4302 = vmatpush.bf16.msra.mxu1 %v7707_v45  ;;  %v7706_v45 = vld [vmem:[#allocation2 + $0x760] sm:$0xff] }
0x1216   : > { %4282 = vmatpush.bf16.msrb.mxu3 %v7706_v45 }
0x1275   : > { %v3470_v55 = vpop.f32.mrf.mxu1 }
0x1276   : > { %v3473_v59 = vmul.f32 %v3470_v55, %v3470_v55  ;;  %v3479_v17 = vperm.slane %v3470_v55, 0 }
0x1278   : > { %v3475_v0 = vrot.slane %v3473_v59, 7  ;;  %v3480_v19 = vsub.f32 %v8519_v21, %v3479_v17 }
0x127a   : > { %v3477_v2 = vsub.f32 %v3470_v55, %v3475_v0  ;;  %v3853_v55 = vunpack.c.l.b16 %v8428_v13 }
0x127c   : > { %v3478_v51 = vmax.f32 %v3477_v2, 0.0  ;;  %v3854_v2 = vpack.c.b16 %v3853_v55, %v3853_v55  ;;  %v7685_v55 = vld [vmem:[#allocation2 + $0x6b8] sm:$0xff] }
0x127e   : > { %v3481_v54 = vadd.f32 1e-05, %v3478_v51  ;;  %v3856_v11 = vshrl.u32 %v3854_v2, 16 }
0x1280   : > { %7971 = vrsqrt.f32 %v3481_v54  ;;  %vm3488_vm6 = vweird.f32 %v3481_v54 }
0x1286   : > { %v7972_v7 = vpop.eup %7971 }
0x1287   : > { %v3483_v8 = vmul.f32 %v7972_v7, %v3481_v54  ;;  %vm3489_vm1 = vweird.f32 %v7972_v7 }
0x1288   : > { %vm3490_vm7 = vmor %vm3488_vm6, %vm3489_vm1 }
0x1289   : > { %v3484_v10 = vmul.f32 %v7972_v7, %v3483_v8 }
0x128b   : > { %v3485_v15 = vmul.f32 0.5, %v3484_v10 }
0x128d   : > { %v3486_v16 = vsub.f32 1.5, %v3485_v15  ;;  %v3859_v15 = vshll.u32 %v3854_v2, 16  ;;  %v7694_v2 = vld [vmem:[#allocation2 + $0x700] sm:$0xff] }
0x128f   : > { %v3487_v24 = vmul.f32 %v7972_v7, %v3486_v16 }
0x1291   : > { %v3491_v18 = vsel %vm3490_vm7, %v7972_v7, %v3487_v24  ;;  %v3858_v7 = vrot.slane %v3856_v11, 7  ;;  %v7729_v11 = vld [vmem:[#allocation2 + $0x818] sm:$0xff] }
0x1292   : > { %v3492_v20 = vperm.slane %v3491_v18, 1 }
0x1293   : > { %v3861_v17 = vor.u32 %v3859_v15, %v3858_v7  ;;  %v7702_v7 = vld [vmem:[#allocation2 + $0x740] sm:$0xff]  ;;  %v7701_v15 = vld [vmem:[#allocation2 + $0x738] sm:$0xff] }
0x1294   : > { %v3493_v22 = vmul.f32 %v3492_v20, %v3480_v19 }
0x1295   : > { %v3863_v24 = vsel %vm8370_vm2, 0, %v3861_v17  ;;  %v7725_v17 = vld [vmem:[#allocation2 + $0x7f8] sm:$0xff] }
0x1296   : > { %v3495_v25 = vmul.f32 %v7937_v9, %v3493_v22  ;;  %v8540_v18 = vsel %vm8405_vm15, %v3863_v24, 0  ;;  %v7700_v24 = vld [vmem:[#allocation2 + $0x730] sm:$0xff] }
0x1298   : > { %v3497_v27 = vadd.f32 %v7938_v23, %v3495_v25 }
0x129a   : > { %v3498_v28 = vmax.f32 %v3497_v27, 0.0 }
0x129c   : > { %v3499_v29 = vpack.c.bf16 %v3498_v28, %v3498_v28 }
0x129e   : > { %v3501_v30 = vunpack.c.l.b16 %v3499_v29  ;;  %3733 = vmatmul.bf16.vlgmr.msra.gmra.mxu0 %v3499_v29 }
0x12a0   : > { %v3502_v31 = vpack.c.b16 %v3501_v30, %v3501_v30 }
0x12a2   : > { %v3504_v33 = vshrl.u32 %v3502_v31, 16  ;;  %v3507_v34 = vshll.u32 %v3502_v31, 16  ;;  %v7690_v31 = vld [vmem:[#allocation2 + $0x6e0] sm:$0xff] }
0x12a3   : > { %4256 = vmatpush.bf16.msrb.mxu0 %v7690_v31  ;;  %v7716_v31 = vld [vmem:[#allocation2 + $0x7b0] sm:$0xff] }
0x12a4   : > { %v3506_v32 = vrot.slane %v3504_v33, 7 }
0x12a6   : > { %v3509_v35 = vor.u32 %v3507_v34, %v3506_v32  ;;  %v7689_v34 = vld [vmem:[#allocation2 + $0x6d8] sm:$0xff] }
0x12a7   : > { %4257 = vmatpush.bf16.msrb.mxu0 %v7689_v34  ;;  %v7715_v34 = vld [vmem:[#allocation2 + $0x7a8] sm:$0xff] }
0x12a8   : > { %v3511_v36 = vsel %vm8370_vm2, 0, %v3509_v35 }
0x12a9   : > { %v3512_v21 = vsel %vm8435_vm14, %v3511_v36, 0 }
0x12aa   : > { %v3514_v37 = vrot.slane %v3512_v21, 1  ;;  %3720 = vmatmul.bf16.vlgmr.msrb.gmra.mxu2 %v3512_v21 }
0x12ac   : > { %3746 = vmatmul.bf16.vlgmr.msra.gmra.mxu3 %v3514_v37  ;;  %v7688_v37 = vld [vmem:[#allocation2 + $0x6d0] sm:$0xff] }
0x12ad   : > { %4258 = vmatpush.bf16.msrb.mxu0 %v7688_v37  ;;  %v8007_v37 = vld [vmem:[#allocation6 + $0xb8] sm:$0xff] }
0x12b1   : > { %4259 = vmatpush.bf16.msrb.mxu0 %v7687_v43  ;;  %v8010_v43 = vld [vmem:[#allocation6 + $0xa0] sm:$0xff] }
0x131b   : > { %v3734_v41 = vpop.f32.mrf.mxu0 }
0x1323   : > { %v3736_v46 = vpop.f32.mrf.mxu0 }
0x132d   : > { %v3721_v49 = vpop.f32.mrf.mxu2 }
0x132e   : > { %v3722_v50 = vadd.f32 %v7939_v48, %v3721_v49  ;;  %v7686_v48 = vld [vmem:[#allocation2 + $0x6c0] sm:$0xff] }
0x132f   : > { %v3747_v52 = vpop.f32.mrf.mxu3  ;;  %4260 = vmatpush.bf16.msrb.mxu0 %v7686_v48 }
0x1330   : > { %v3735_v53 = vadd.f32 %v3734_v41, %v3722_v50 }
0x1332   : > { %v3748_v58 = vadd.f32 %v3747_v52, %v3735_v53  ;;  %v7698_v52 = vld [vmem:[#allocation2 + $0x720] sm:$0xff]  ;;  %v7705_v53 = vld [vmem:[#allocation2 + $0x758] sm:$0xff] }
0x1333   : > { %4283 = vmatpush.bf16.msrb.mxu3 %v7705_v53  ;;  %4261 = vmatpush.bf16.msrb.mxu0 %v7685_v55  ;;  %v8013_v53 = vld [vmem:[#allocation6 + $0x88] sm:$0xff] }
0x1334   : > { %v3751_v56 = vsel %vm1609_vm10, %v3748_v58, 0.0  ;;  %v3758_v57 = vmul.f32 %v3748_v58, %v3748_v58 }
0x1335   : > { %v3752_v59 = vrot.slane %v3751_v56, 4  ;;  %v3723_v60 = vpop.f32.mrf.mxu2 }
0x1336   : > { %v3759_v61 = vsel %vm1609_vm10, %v3758_v57, 0.0  ;;  %v7697_v57 = vld [vmem:[#allocation2 + $0x718] sm:$0xff]  ;;  %v7684_v60 = vld [vmem:[#allocation2 + $0x6b0] sm:$0xff] }
0x1337   : > { %v3753_v63 = vadd.f32 %v3752_v59, %v3751_v56  ;;  %v3760_v0 = vrot.slane %v3759_v61, 4  ;;  %v3749_v1 = vpop.f32.mrf.mxu3  ;;  %v3814_v56 = vld [vmem:[#allocation10 + $0x8] sm:$0xf]  ;;  %v7704_v59 = vld [vmem:[#allocation2 + $0x750] sm:$0xff]  ;;  %4262 = vmatpush.bf16.msrb.mxu0 %v7684_v60 }
0x1338   : > { %4284 = vmatpush.bf16.msrb.mxu3 %v7704_v59  ;;  %v7695_v1 = vld [vmem:[#allocation2 + $0x708] sm:$0xff]  ;;  %v3866_v59 = vrot.slane %v8540_v18, 1 }
0x1339   : > { %v3754_v51 = vrot.slane %v3753_v63, 2  ;;  %v3761_v3 = vadd.f32 %v3760_v0, %v3759_v61  ;;  %v7696_v61 = vld [vmem:[#allocation2 + $0x710] sm:$0xff]  ;;  %v7683_v0 = vld [vmem:[#allocation2 + $0x6a8] sm:$0xff] }
0x133b   : > { %v3755_v54 = vadd.f32 %v3754_v51, %v3753_v63  ;;  %v3762_v4 = vrot.slane %v3761_v3, 2  ;;  %v7703_v63 = vld [vmem:[#allocation2 + $0x748] sm:$0xff]  ;;  %4263 = vmatpush.bf16.msrb.mxu0 %v7683_v0  ;;  %v7693_v51 = vld [vmem:[#allocation2 + $0x6f8] sm:$0xff] }
0x133c   : > { %4285 = vmatpush.bf16.msrb.mxu3 %v7703_v63 }
0x133d   : > { %v3756_v5 = vrot.slane %v3755_v54, 1  ;;  %v3763_v62 = vadd.f32 %v3762_v4, %v3761_v3  ;;  %v7692_v3 = vld [vmem:[#allocation2 + $0x6f0] sm:$0xff]  ;;  %v7730_v4 = vld [vmem:[#allocation2 + $0x820] sm:$0xff] }
0x133f   : > { %v3764_v6 = vrot.slane %v3763_v62, 1  ;;  %v3757_v8 = vadd.f32 %v3756_v5, %v3755_v54  ;;  %v7691_v54 = vld [vmem:[#allocation2 + $0x6e8] sm:$0xff]  ;;  %v7728_v5 = vld [vmem:[#allocation2 + $0x810] sm:$0xff] }
0x1340   : > { %4286 = vmatpush.bf16.msrb.mxu3 %v7702_v7 }
0x1341   : > { %v3765_v10 = vadd.f32 %v3764_v6, %v3763_v62  ;;  %v7722_v62 = vld [vmem:[#allocation2 + $0x7e0] sm:$0xff]  ;;  %v7727_v6 = vld [vmem:[#allocation2 + $0x808] sm:$0xff] }
0x1342   : > { %4308 = vmatpush.bf16.msra.mxu0 %v7722_v62 }
0x1343   : > { %v3766_v16 = vsel %vm398_vm0, %v3757_v8, %v3765_v10  ;;  %v7721_v8 = vld [vmem:[#allocation2 + $0x7d8] sm:$0xff]  ;;  %v7726_v10 = vld [vmem:[#allocation2 + $0x800] sm:$0xff] }
0x1344   : > { %3783 = vmatmul.f32.vlgmr.msrb.gmra.mxu1 %v3766_v16  ;;  %4287 = vmatpush.bf16.msrb.mxu3 %v7701_v15  ;;  %v7720_v16 = vld [vmem:[#allocation2 + $0x7d0] sm:$0xff] }
0x1346   : > { %4309 = vmatpush.bf16.msra.mxu0 %v7721_v8 }
0x1348   : > { %4288 = vmatpush.bf16.msrb.mxu3 %v7700_v24 }
0x134a   : > { %4310 = vmatpush.bf16.msra.mxu0 %v7720_v16 }
0x134c   : > { %4303 = vmatmul.bf16.vlgmr.msra.gmra.mxu1 %v8540_v18 }
0x13c1   : > { %v3784_v19 = vpop.f32.mrf.mxu1 }
0x13c2   : > { %v3787_v20 = vmul.f32 %v3784_v19, %v3784_v19  ;;  %v3793_v36 = vperm.slane %v3784_v19, 0 }
0x13c4   : > { %v3789_v9 = vrot.slane %v3787_v20, 7  ;;  %v3794_v39 = vsub.f32 %v3748_v58, %v3793_v36  ;;  %v7724_v20 = vld [vmem:[#allocation2 + $0x7f0] sm:$0xff]  ;;  %v8005_v36 = vld [vmem:[#allocation6 + $0xc8] sm:$0xff] }
0x13c6   : > { %v3791_v22 = vsub.f32 %v3784_v19, %v3789_v9  ;;  %v7719_v19 = vld [vmem:[#allocation2 + $0x7c8] sm:$0xff] }
0x13c7   : > { %v7699_v9 = vld [vmem:[#allocation2 + $0x728] sm:$0xff]  ;;  %4311 = vmatpush.bf16.msra.mxu0 %v7719_v19 }
0x13c8   : > { %v3792_v23 = vmax.f32 %v3791_v22, 0.0  ;;  %4289 = vmatpush.bf16.msrb.mxu3 %v7699_v9  ;;  %v7718_v22 = vld [vmem:[#allocation2 + $0x7c0] sm:$0xff] }
0x13c9   : > { %v8543_v25 = vpop.f32.mrf.mxu1 }
0x13ca   : > { %v3795_v27 = vadd.f32 1e-05, %v3792_v23  ;;  %v7723_v23 = vld [vmem:[#allocation2 + $0x7e8] sm:$0xff] }
0x13cb   : > { %4312 = vmatpush.bf16.msra.mxu0 %v7718_v22 }
0x13cc   : > { %7973 = vrsqrt.f32 %v3795_v27  ;;  %vm3802_vm8 = vweird.f32 %v3795_v27 }
0x13d1   : > { %v4306_v28 = vpop.f32.mrf.mxu1 }
0x13d2   : > { %v7974_v29 = vpop.eup %7973  ;;  %v8000_v28 = vld [vmem:[#allocation6 + $0xf0] sm:$0xff] }
0x13d3   : > { %v3797_v30 = vmul.f32 %v7974_v29, %v3795_v27  ;;  %vm3803_vm14 = vweird.f32 %v7974_v29  ;;  %v7999_v27 = vld [vmem:[#allocation6 + $0xf8] sm:$0xff] }
0x13d4   : > { %vm3804_vm9 = vmor %vm3802_vm8, %vm3803_vm14  ;;  %4348 = vmatpush.msra.mxu3 %v7999_v27 }
0x13d5   : > { %v3798_v33 = vmul.f32 %v7974_v29, %v3797_v30  ;;  %v8001_v30 = vld [vmem:[#allocation6 + $0xe8] sm:$0xff] }
0x13d6   : > { %4349 = vmatpush.msra.mxu3 %v8000_v28 }
0x13d7   : > { %v3799_v32 = vmul.f32 0.5, %v3798_v33  ;;  %v8002_v33 = vld [vmem:[#allocation6 + $0xe0] sm:$0xff] }
0x13d8   : > { %4350 = vmatpush.msra.mxu3 %v8001_v30 }
0x13d9   : > { %v3800_v35 = vsub.f32 1.5, %v3799_v32  ;;  %v8003_v32 = vld [vmem:[#allocation6 + $0xd8] sm:$0xff] }
0x13da   : > { %4351 = vmatpush.msra.mxu3 %v8002_v33 }
0x13db   : > { %v3801_v21 = vmul.f32 %v7974_v29, %v3800_v35  ;;  %v8004_v35 = vld [vmem:[#allocation6 + $0xd0] sm:$0xff] }
0x13dc   : > { %4352 = vmatpush.msra.mxu3 %v8003_v32 }
0x13dd   : > { %v3805_v38 = vsel %vm3804_vm9, %v7974_v29, %v3801_v21  ;;  %v7717_v29 = vld [vmem:[#allocation2 + $0x7b8] sm:$0xff] }
0x13de   : > { %v3806_v40 = vperm.slane %v3805_v38, 1  ;;  %4313 = vmatpush.bf16.msra.mxu0 %v7717_v29  ;;  %4353 = vmatpush.msra.mxu3 %v8004_v35  ;;  %v8006_v21 = vld [vmem:[#allocation6 + $0xc0] sm:$0xff]  ;;  %v7746_v29 = vld [vmem:[#allocation2 + $0x8a0] sm:$0xff] }
0x13e0   : > { %v3807_v41 = vmul.f32 %v3806_v40, %v3794_v39  ;;  %4354 = vmatpush.msra.mxu3 %v8005_v36  ;;  %v8008_v40 = vld [vmem:[#allocation6 + $0xb0] sm:$0xff] }
0x13e2   : > { %v3809_v46 = vmul.f32 %v7940_v26, %v3807_v41  ;;  %4314 = vmatpush.bf16.msra.mxu0 %v7716_v31  ;;  %4355 = vmatpush.msra.mxu3 %v8006_v21  ;;  %v8009_v41 = vld [vmem:[#allocation6 + $0xa8] sm:$0xff]  ;;  %v7744_v31 = vld [vmem:[#allocation2 + $0x890] sm:$0xff] }
0x13e4   : > { %v3811_v47 = vadd.f32 %v7941_v42, %v3809_v46  ;;  %4356 = vmatpush.msra.mxu3 %v8007_v37 }
0x13e6   : > { %v3812_v49 = vmax.f32 %v3811_v47, 0.0  ;;  %4315 = vmatpush.bf16.msra.mxu0 %v7715_v34  ;;  %4357 = vmatpush.msra.mxu3 %v8008_v40  ;;  %v8011_v47 = vld [vmem:[#allocation6 + $0x98] sm:$0xff]  ;;  %v7754_v34 = vld [vmem:[#allocation2 + $0x8e0] sm:$0xff] }
0x13e8   : > { %v3815_v50 = vpack.c.bf16 %v3812_v49, %v3812_v49  ;;  %4358 = vmatpush.msra.mxu3 %v8009_v41 }
0x13ea   : > { %v3820_v58 = vsel %vm2266_vm12, %v3815_v50, 0  ;;  %4359 = vmatpush.msra.mxu3 %v8010_v43  ;;  %v8012_v50 = vld [vmem:[#allocation6 + $0x90] sm:$0xff] }
0x13eb   : > { %3829 = vmatpush.bf16.msra.mxu2 %v3820_v58  ;;  %v8014_v58 = vld [vmem:[#allocation6 + $0x80] sm:$0xff] }
0x13ec   : > { %4360 = vmatpush.msra.mxu3 %v8011_v47 }
0x13ee   : > { %6827 = vmatmul.msk.bf16.vlgmr.msra.gmra.mxu2 %vm2262_vm13, %v3814_v56  ;;  %4361 = vmatpush.msra.mxu3 %v8012_v50 }
0x13ef   : > { %4269 = vmatpush.bf16.msrb.mxu2 %v7698_v52 }
0x13f0   : > { %4362 = vmatpush.msra.mxu3 %v8013_v53 }
0x13f2   : > { %4363 = vmatpush.msra.mxu3 %v8014_v58 }
0x13f3   : > { %4270 = vmatpush.bf16.msrb.mxu2 %v7697_v57 }
0x13f7   : > { %4271 = vmatpush.bf16.msrb.mxu2 %v7696_v61  ;;  %v7942_v61 = vld [vmem:[#allocation4 + $0x1e] ss:$0 sm:$0xff] }
0x13fb   : > { %4272 = vmatpush.bf16.msrb.mxu2 %v7695_v1 }
0x13ff   : > { %4273 = vmatpush.bf16.msrb.mxu2 %v7694_v2 }
0x1403   : > { %4274 = vmatpush.bf16.msrb.mxu2 %v7693_v51 }
0x1407   : > { %4275 = vmatpush.bf16.msrb.mxu2 %v7692_v3 }
0x140b   : > { %4276 = vmatpush.bf16.msrb.mxu2 %v7691_v54 }
0x140f   : > { %4321 = vmatpush.bf16.msra.mxu2 %v7730_v4 }
0x1413   : > { %4322 = vmatpush.bf16.msra.mxu2 %v7729_v11 }
0x1417   : > { %4323 = vmatpush.bf16.msra.mxu2 %v7728_v5 }
0x141b   : > { %4324 = vmatpush.bf16.msra.mxu2 %v7727_v6 }
0x141f   : > { %4325 = vmatpush.bf16.msra.mxu2 %v7726_v10 }
0x1423   : > { %4326 = vmatpush.bf16.msra.mxu2 %v7725_v17 }
0x1427   : > { %4327 = vmatpush.bf16.msra.mxu2 %v7724_v20 }
0x142b   : > { %4328 = vmatpush.bf16.msra.mxu2 %v7723_v23 }
0x1471   : > { %v3831_v38 = vpop.f32.mrf.mxu2 }
0x1472   : > { %v3835_v39 = vpack.c.bf16 %v3831_v38, %v3831_v38  ;;  %v7741_v38 = vld [vmem:[#allocation2 + $0x878] sm:$0xff] }
0x1474   : > { %v3837_v26 = vunpack.c.l.b16 %v3835_v39  ;;  %4277 = vmatmul.bf16.vlgmr.msrb.gmra.mxu2 %v3835_v39  ;;  %v7752_v39 = vld [vmem:[#allocation2 + $0x8d0] sm:$0xff] }
0x1475   : > { %4633 = vmatpush.bf16.msrb.mxu2 %v7754_v34 }
0x1476   : > { %v3838_v42 = vpack.c.b16 %v3837_v26, %v3837_v26  ;;  %v7735_v26 = vld [vmem:[#allocation2 + $0x848] sm:$0xff] }
0x1478   : > { %v3840_v46 = vshrl.u32 %v3838_v42, 16  ;;  %v3843_v49 = vshll.u32 %v3838_v42, 16 }
0x1479   : > { %v3833_v45 = vpop.f32.mrf.mxu2 }
0x147a   : > { %v3842_v48 = vrot.slane %v3840_v46, 7  ;;  %v7739_v45 = vld [vmem:[#allocation2 + $0x868] sm:$0xff] }
0x147c   : > { %v3845_v52 = vor.u32 %v3843_v49, %v3842_v48  ;;  %v7750_v49 = vld [vmem:[#allocation2 + $0x8c0] sm:$0xff] }
0x147e   : > { %v3847_v55 = vsel %vm8370_vm2, 0, %v3845_v52  ;;  %v7733_v52 = vld [vmem:[#allocation2 + $0x838] sm:$0xff] }
0x147f   : > { %v3848_v56 = vsel %vm8405_vm15, %v3847_v55, 0  ;;  %v7749_v55 = vld [vmem:[#allocation2 + $0x8b8] sm:$0xff] }
0x1480   : > { %v3850_v57 = vrot.slane %v3848_v56, 1  ;;  %4264 = vmatmul.bf16.vlgmr.msrb.gmra.mxu0 %v3848_v56  ;;  %v7748_v56 = vld [vmem:[#allocation2 + $0x8b0] sm:$0xff] }
0x1481   : > { %4620 = vmatpush.bf16.msrb.mxu0 %v7746_v29  ;;  %v7782_v29 = vld [vmem:[#allocation2 + $0x9b8] sm:$0xff] }
0x1482   : > { %4290 = vmatmul.bf16.vlgmr.msrb.gmra.mxu3 %v3850_v57  ;;  %v7731_v57 = vld [vmem:[#allocation2 + $0x828] sm:$0xff] }
0x1483   : > { %4660 = vmatpush.msrb.mxu3 %v7999_v27 }
0x1484   : > { %4329 = vmatmul.bf16.vlgmr.msra.gmra.mxu2 %v3866_v59  ;;  %v7747_v59 = vld [vmem:[#allocation2 + $0x8a8] sm:$0xff] }
0x1485   : > { %4661 = vmatpush.msrb.mxu3 %v8000_v28 }
0x1487   : > { %4662 = vmatpush.msrb.mxu3 %v8001_v30  ;;  %v7745_v30 = vld [vmem:[#allocation2 + $0x898] sm:$0xff] }
0x1488   : > { %4621 = vmatpush.bf16.msrb.mxu0 %v7745_v30 }
0x1489   : > { %4663 = vmatpush.msrb.mxu3 %v8002_v33  ;;  %v7738_v33 = vld [vmem:[#allocation2 + $0x860] sm:$0xff] }
0x148a   : > { %4607 = vmatpush.bf16.msrb.mxu1 %v7738_v33 }
0x148b   : > { %4664 = vmatpush.msrb.mxu3 %v8003_v32  ;;  %v7743_v32 = vld [vmem:[#allocation2 + $0x888] sm:$0xff] }
0x148c   : > { %4622 = vmatpush.bf16.msrb.mxu0 %v7744_v31  ;;  %v7781_v31 = vld [vmem:[#allocation2 + $0x9b0] sm:$0xff] }
0x148d   : > { %4665 = vmatpush.msrb.mxu3 %v8004_v35  ;;  %v7737_v35 = vld [vmem:[#allocation2 + $0x858] sm:$0xff] }
0x148e   : > { %4608 = vmatpush.bf16.msrb.mxu1 %v7737_v35 }
0x148f   : > { %4666 = vmatpush.msrb.mxu3 %v8005_v36  ;;  %v7742_v36 = vld [vmem:[#allocation2 + $0x880] sm:$0xff] }
0x1490   : > { %4316 = vmatmul.bf16.vlgmr.msra.gmra.mxu0 %v8428_v13 }
0x1491   : > { %4667 = vmatpush.msrb.mxu3 %v8006_v21  ;;  %4623 = vmatpush.bf16.msrb.mxu0 %v7743_v32  ;;  %v7753_v21 = vld [vmem:[#allocation2 + $0x8d8] sm:$0xff]  ;;  %v7945_v32 = vld [vmem:[#allocation4 + $0x21] ss:$0 sm:$0xff] }
0x1492   : > { %4634 = vmatpush.bf16.msrb.mxu2 %v7753_v21 }
0x1493   : > { %4668 = vmatpush.msrb.mxu3 %v8007_v37  ;;  %v7736_v37 = vld [vmem:[#allocation2 + $0x850] sm:$0xff] }
0x1494   : > { %4609 = vmatpush.bf16.msrb.mxu1 %v7736_v37 }
0x1495   : > { %4669 = vmatpush.msrb.mxu3 %v8008_v40  ;;  %4624 = vmatpush.bf16.msrb.mxu0 %v7742_v36 }
0x1496   : > { %4635 = vmatpush.bf16.msrb.mxu2 %v7752_v39 }
0x1497   : > { %4670 = vmatpush.msrb.mxu3 %v8009_v41  ;;  %v7740_v41 = vld [vmem:[#allocation2 + $0x870] sm:$0xff] }
0x1498   : > { %4610 = vmatpush.bf16.msrb.mxu1 %v7735_v26 }
0x1499   : > { %4671 = vmatpush.msrb.mxu3 %v8010_v43  ;;  %4625 = vmatpush.bf16.msrb.mxu0 %v7741_v38  ;;  %v7751_v43 = vld [vmem:[#allocation2 + $0x8c8] sm:$0xff] }
0x149a   : > { %4636 = vmatpush.bf16.msrb.mxu2 %v7751_v43 }
0x149b   : > { %4672 = vmatpush.msrb.mxu3 %v8011_v47  ;;  %v7734_v47 = vld [vmem:[#allocation2 + $0x840] sm:$0xff] }
0x149c   : > { %4611 = vmatpush.bf16.msrb.mxu1 %v7734_v47 }
0x149d   : > { %4673 = vmatpush.msrb.mxu3 %v8012_v50  ;;  %4626 = vmatpush.bf16.msrb.mxu0 %v7740_v41 }
0x149e   : > { %4637 = vmatpush.bf16.msrb.mxu2 %v7750_v49 }
0x149f   : > { %4674 = vmatpush.msrb.mxu3 %v8013_v53 }
0x14a0   : > { %4612 = vmatpush.bf16.msrb.mxu1 %v7733_v52  ;;  %v4761_v52 = vshrl.u32 %v8399_v14, 16 }
0x14a1   : > { %4675 = vmatpush.msrb.mxu3 %v8014_v58  ;;  %4627 = vmatpush.bf16.msrb.mxu0 %v7739_v45  ;;  %v7732_v58 = vld [vmem:[#allocation2 + $0x830] sm:$0xff] }
0x14a2   : > { %4638 = vmatpush.bf16.msrb.mxu2 %v7749_v55 }
0x14a4   : > { %4613 = vmatpush.bf16.msrb.mxu1 %v7732_v58 }
0x14a6   : > { %4639 = vmatpush.bf16.msrb.mxu2 %v7748_v56  ;;  %v8568_v56 = vrot.slane %v4761_v52, 7  ;;  %v7799_v52 = vld [vmem:[#allocation2 + $0xa40] sm:$0xff] }
0x14a8   : > { %4614 = vmatpush.bf16.msrb.mxu1 %v7731_v57  ;;  %v4764_v57 = vshll.u32 %v8399_v14, 16 }
0x14aa   : > { %4640 = vmatpush.bf16.msrb.mxu2 %v7747_v59  ;;  %v4766_v59 = vor.u32 %v4764_v57, %v8568_v56  ;;  %v7772_v57 = vld [vmem:[#allocation2 + $0x968] sm:$0xff] }
0x14f7   : > { %v4278_v18 = vpop.f32.mrf.mxu2 }
0x14fd   : > { %v4265_v60 = vpop.f32.mrf.mxu0 }
0x14fe   : > { %v4266_v0 = vadd.f32 %v7942_v61, %v4265_v60 }
0x14ff   : > { %v4280_v63 = vpop.f32.mrf.mxu2 }
0x1500   : > { %v4279_v51 = vadd.f32 %v4278_v18, %v4266_v0 }
0x1505   : > { %v4267_v1 = vpop.f32.mrf.mxu0  ;;  %v4291_v2 = vpop.f32.mrf.mxu3 }
0x1506   : > { %v4292_v54 = vadd.f32 %v4291_v2, %v4279_v51 }
0x1507   : > { %v4330_v3 = vpop.f32.mrf.mxu2 }
0x1508   : > { %v4305_v13 = vadd.f32 %v8543_v25, %v4292_v54 }
0x150d   : > { %v4293_v4 = vpop.f32.mrf.mxu3  ;;  %v4317_v11 = vpop.f32.mrf.mxu0 }
0x150e   : > { %v4318_v5 = vadd.f32 %v4317_v11, %v4305_v13  ;;  %v7943_v13 = vld [vmem:[#allocation4 + $0x1f] ss:$0 sm:$0xff]  ;;  %v7944_v11 = vld [vmem:[#allocation4 + $0x20] ss:$0 sm:$0xff] }
0x150f   : > { %v4332_v62 = vpop.f32.mrf.mxu2 }
0x1510   : > { %v8554_v6 = vadd.f32 %v4330_v3, %v4318_v5 }
0x1512   : > { %v4334_v7 = vrot.slane %v8554_v6, 4  ;;  %v4340_v8 = vmul.f32 %v8554_v6, %v8554_v6 }
0x1514   : > { %v4335_v10 = vadd.f32 %v4334_v7, %v8554_v6  ;;  %v4341_v15 = vrot.slane %v4340_v8, 4 }
0x1515   : > { %v4319_v16 = vpop.f32.mrf.mxu0 }
0x1516   : > { %v4336_v17 = vrot.slane %v4335_v10, 2  ;;  %v4342_v24 = vadd.f32 %v4341_v15, %v4340_v8 }
0x1518   : > { %v4337_v19 = vadd.f32 %v4336_v17, %v4335_v10  ;;  %v4343_v20 = vrot.slane %v4342_v24, 2 }
0x151a   : > { %v4338_v25 = vrot.slane %v4337_v19, 1  ;;  %v4344_v9 = vadd.f32 %v4343_v20, %v4342_v24 }
0x151c   : > { %v4345_v22 = vrot.slane %v4344_v9, 1  ;;  %v4339_v23 = vadd.f32 %v4338_v25, %v4337_v19 }
0x151e   : > { %v4346_v27 = vadd.f32 %v4345_v22, %v4344_v9  ;;  %v7787_v9 = vld [vmem:[#allocation2 + $0x9e0] sm:$0xff]  ;;  %v7786_v22 = vld [vmem:[#allocation2 + $0x9d8] sm:$0xff] }
0x1520   : > { %v4347_v28 = vsel %vm398_vm0, %v4339_v23, %v4346_v27  ;;  %v7785_v23 = vld [vmem:[#allocation2 + $0x9d0] sm:$0xff]  ;;  %v7784_v27 = vld [vmem:[#allocation2 + $0x9c8] sm:$0xff] }
0x1521   : > { %4364 = vmatmul.f32.vlgmr.msra.gmra.mxu3 %v4347_v28  ;;  %v7783_v28 = vld [vmem:[#allocation2 + $0x9c0] sm:$0xff] }
0x1522   : > { %5207 = vmatpush.bf16.msra.mxu3 %v7787_v9  ;;  %v7766_v9 = vld [vmem:[#allocation2 + $0x938] sm:$0xff] }
0x1526   : > { %5208 = vmatpush.bf16.msra.mxu3 %v7786_v22  ;;  %v7778_v22 = vld [vmem:[#allocation2 + $0x998] sm:$0xff] }
0x152a   : > { %5209 = vmatpush.bf16.msra.mxu3 %v7785_v23 }
0x152e   : > { %5210 = vmatpush.bf16.msra.mxu3 %v7784_v27 }
0x1532   : > { %5211 = vmatpush.bf16.msra.mxu3 %v7783_v28  ;;  %v7765_v28 = vld [vmem:[#allocation2 + $0x930] sm:$0xff] }
0x1536   : > { %5212 = vmatpush.bf16.msra.mxu3 %v7782_v29 }
0x153a   : > { %5213 = vmatpush.bf16.msra.mxu3 %v7781_v31  ;;  %v7763_v31 = vld [vmem:[#allocation2 + $0x920] sm:$0xff] }
0x153e   : > { %5214 = vmatpush.bf16.msra.mxu3 %v7780_v44  ;;  %v7764_v44 = vld [vmem:[#allocation2 + $0x928] sm:$0xff] }
0x15a4   : > { %v4365_v40 = vpop.f32.mrf.mxu3 }
0x15a5   : > { %v4368_v42 = vmul.f32 %v4365_v40, %v4365_v40  ;;  %v4374_v1 = vperm.slane %v4365_v40, 0 }
0x15a7   : > { %v4370_v46 = vrot.slane %v4368_v42, 7  ;;  %v4375_v3 = vsub.f32 %v8554_v6, %v4374_v1 }
0x15a9   : > { %v4372_v48 = vsub.f32 %v4365_v40, %v4370_v46 }
0x15ab   : > { %v4373_v50 = vmax.f32 %v4372_v48, 0.0 }
0x15ad   : > { %v4376_v53 = vadd.f32 1e-05, %v4373_v50 }
0x15af   : > { %7975 = vrsqrt.f32 %v4376_v53  ;;  %vm4383_vm13 = vweird.f32 %v4376_v53 }
0x15b5   : > { %v7976_v18 = vpop.eup %7975 }
0x15b6   : > { %v4378_v60 = vmul.f32 %v7976_v18, %v4376_v53  ;;  %vm4384_vm12 = vweird.f32 %v7976_v18 }
0x15b7   : > { %vm4385_vm4 = vmor %vm4383_vm13, %vm4384_vm12 }
0x15b8   : > { %v4379_v61 = vmul.f32 %v7976_v18, %v4378_v60 }
0x15ba   : > { %v4380_v63 = vmul.f32 0.5, %v4379_v61 }
0x15bc   : > { %v4381_v0 = vsub.f32 1.5, %v4380_v63 }
0x15be   : > { %v4382_v2 = vmul.f32 %v7976_v18, %v4381_v0 }
0x15c0   : > { %v4386_v51 = vsel %vm4385_vm4, %v7976_v18, %v4382_v2  ;;  %v8574_v18 = vsel %vm8370_vm2, 0, %v4766_v59  ;;  %v7791_v59 = vld [vmem:[#allocation2 + $0xa00] sm:$0xff] }
0x15c1   : > { %v4387_v54 = vperm.slane %v4386_v51, 1  ;;  %v7771_v51 = vld [vmem:[#allocation2 + $0x960] sm:$0xff] }
0x15c2   : > { %5179 = vmatpush.bf16.msra.mxu0 %v7771_v51  ;;  %v8017_v51 = vld [vmem:[#allocation6 + $0x68] sm:$0xff] }
0x15c3   : > { %v4388_v4 = vmul.f32 %v4387_v54, %v4375_v3  ;;  %v7770_v3 = vld [vmem:[#allocation2 + $0x958] sm:$0xff] }
0x15c5   : > { %v4390_v5 = vmul.f32 %v7943_v13, %v4388_v4  ;;  %v7769_v4 = vld [vmem:[#allocation2 + $0x950] sm:$0xff] }
0x15c6   : > { %5180 = vmatpush.bf16.msra.mxu0 %v7770_v3  ;;  %v8018_v3 = vld [vmem:[#allocation6 + $0x60] sm:$0xff] }
0x15c7   : > { %v4392_v62 = vadd.f32 %v7944_v11, %v4390_v5 }
0x15c9   : > { %v4393_v7 = vmax.f32 %v4392_v62, 0.0  ;;  %v7768_v62 = vld [vmem:[#allocation2 + $0x948] sm:$0xff] }
0x15ca   : > { %5181 = vmatpush.bf16.msra.mxu0 %v7769_v4 }
0x15cb   : > { %v4394_v8 = vpack.c.bf16 %v4393_v7, %v4393_v7 }
0x15cd   : > { %4628 = vmatmul.bf16.vlgmr.msrb.gmra.mxu0 %v4394_v8  ;;  %v4396_v10 = vunpack.c.l.b16 %v4394_v8 }
0x15ce   : > { %5182 = vmatpush.bf16.msra.mxu0 %v7768_v62  ;;  %v8022_v62 = vld [vmem:[#allocation6 + $0x40] sm:$0xff] }
0x15cf   : > { %v4397_v15 = vpack.c.b16 %v4396_v10, %v4396_v10 }
0x15d1   : > { %v4399_v16 = vshrl.u32 %v4397_v15, 16  ;;  %v4402_v24 = vshll.u32 %v4397_v15, 16  ;;  %v7767_v15 = vld [vmem:[#allocation2 + $0x940] sm:$0xff] }
0x15d2   : > { %5183 = vmatpush.bf16.msra.mxu0 %v7767_v15 }
0x15d3   : > { %v4401_v17 = vrot.slane %v4399_v16, 7  ;;  %v7779_v16 = vld [vmem:[#allocation2 + $0x9a0] sm:$0xff] }
0x15d4   : > { %5193 = vmatpush.bf16.msra.mxu2 %v7779_v16  ;;  %v8024_v16 = vld [vmem:[#allocation6 + $0x30] sm:$0xff] }
0x15d5   : > { %v4404_v19 = vor.u32 %v4402_v24, %v4401_v17 }
0x15d6   : > { %5184 = vmatpush.bf16.msra.mxu0 %v7766_v9  ;;  %v8027_v9 = vld [vmem:[#allocation6 + $0x18] sm:$0xff] }
0x15d7   : > { %v4406_v20 = vsel %vm8370_vm2, 0, %v4404_v19 }
0x15d8   : > { %v4407_v6 = vsel %vm8405_vm15, %v4406_v20, 0  ;;  %v7946_v20 = vld [vmem:[#allocation4 + $0x22] ss:$0 sm:$0xff]  ;;  %5194 = vmatpush.bf16.msra.mxu2 %v7778_v22 }
0x15d9   : > { %v4409_v25 = vrot.slane %v4407_v6, 1  ;;  %4615 = vmatmul.bf16.vlgmr.msrb.gmra.mxu1 %v4407_v6 }
0x15da   : > { %5185 = vmatpush.bf16.msra.mxu0 %v7765_v28 }
0x15db   : > { %4641 = vmatmul.bf16.vlgmr.msrb.gmra.mxu2 %v4409_v25  ;;  %v7947_v25 = vld [vmem:[#allocation4 + $0x23] ss:$0 sm:$0xff] }
0x15de   : > { %5186 = vmatpush.bf16.msra.mxu0 %v7764_v44  ;;  %v8030_v44 = vld [vmem:[#allocation6] sm:$0xff] }
0x164a   : > { %v4629_v30 = vpop.f32.mrf.mxu0 }
0x1652   : > { %v4631_v33 = vpop.f32.mrf.mxu0 }
0x1656   : > { %v4616_v34 = vpop.f32.mrf.mxu1 }
0x1657   : > { %v4617_v35 = vadd.f32 %v7945_v32, %v4616_v34  ;;  %v7755_v32 = vld [vmem:[#allocation10 + $0x10] sm:$0xff]  ;;  %v7762_v34 = vld [vmem:[#allocation2 + $0x918] sm:$0xff] }
0x1659   : > { %v4630_v36 = vadd.f32 %v4629_v30, %v4617_v35  ;;  %v7761_v35 = vld [vmem:[#allocation2 + $0x910] sm:$0xff] }
0x165e   : > { %v4618_v21 = vpop.f32.mrf.mxu1  ;;  %v4642_v37 = vpop.f32.mrf.mxu2 }
0x165f   : > { %v4643_v38 = vadd.f32 %v4642_v37, %v4630_v36  ;;  %v7760_v36 = vld [vmem:[#allocation2 + $0x908] sm:$0xff]  ;;  %v7759_v21 = vld [vmem:[#allocation2 + $0x900] sm:$0xff]  ;;  %v7758_v37 = vld [vmem:[#allocation2 + $0x8f8] sm:$0xff] }
0x1661   : > { %v4646_v39 = vrot.slane %v4643_v38, 4  ;;  %v4652_v40 = vmul.f32 %v4643_v38, %v4643_v38 }
0x1663   : > { %v4647_v26 = vadd.f32 %v4646_v39, %v4643_v38  ;;  %v4653_v41 = vrot.slane %v4652_v40, 4  ;;  %v7757_v39 = vld [vmem:[#allocation2 + $0x8f0] sm:$0xff] }
0x1665   : > { %v4648_v42 = vrot.slane %v4647_v26, 2  ;;  %v4654_v43 = vadd.f32 %v4653_v41, %v4652_v40  ;;  %v7777_v40 = vld [vmem:[#allocation2 + $0x990] sm:$0xff]  ;;  %v7756_v41 = vld [vmem:[#allocation2 + $0x8e8] sm:$0xff] }
0x1666   : > { %v4644_v46 = vpop.f32.mrf.mxu2  ;;  %5195 = vmatpush.bf16.msra.mxu2 %v7777_v40 }
0x1667   : > { %v4649_v47 = vadd.f32 %v4648_v42, %v4647_v26  ;;  %v4655_v45 = vrot.slane %v4654_v43, 2  ;;  %v7802_v26 = vld [vmem:[#allocation2 + $0xa58] sm:$0xff]  ;;  %v7776_v42 = vld [vmem:[#allocation2 + $0x988] sm:$0xff]  ;;  %v7801_v46 = vld [vmem:[#allocation2 + $0xa50] sm:$0xff] }
0x1669   : > { %v4650_v48 = vrot.slane %v4649_v47, 1  ;;  %v4656_v49 = vadd.f32 %v4655_v45, %v4654_v43  ;;  %v7795_v43 = vld [vmem:[#allocation2 + $0xa20] sm:$0xff]  ;;  %v7794_v45 = vld [vmem:[#allocation2 + $0xa18] sm:$0xff] }
0x166a   : > { %5196 = vmatpush.bf16.msra.mxu2 %v7776_v42 }
0x166b   : > { %v4657_v50 = vrot.slane %v4656_v49, 1  ;;  %v4651_v53 = vadd.f32 %v4650_v48, %v4649_v47  ;;  %v7775_v47 = vld [vmem:[#allocation2 + $0x980] sm:$0xff]  ;;  %v7800_v48 = vld [vmem:[#allocation2 + $0xa48] sm:$0xff] }
0x166d   : > { %v4658_v55 = vadd.f32 %v4657_v50, %v4656_v49  ;;  %v7774_v49 = vld [vmem:[#allocation2 + $0x978] sm:$0xff]  ;;  %v7793_v50 = vld [vmem:[#allocation2 + $0xa10] sm:$0xff] }
0x166e   : > { %5197 = vmatpush.bf16.msra.mxu2 %v7775_v47 }
0x166f   : > { %v4659_v58 = vsel %vm398_vm0, %v4651_v53, %v4658_v55  ;;  %v7773_v53 = vld [vmem:[#allocation2 + $0x970] sm:$0xff]  ;;  %v7792_v55 = vld [vmem:[#allocation2 + $0xa08] sm:$0xff] }
0x1670   : > { %4676 = vmatmul.f32.vlgmr.msrb.gmra.mxu3 %v4659_v58  ;;  %v7798_v58 = vld [vmem:[#allocation2 + $0xa38] sm:$0xff] }
0x1672   : > { %5198 = vmatpush.bf16.msra.mxu2 %v7774_v49 }
0x1676   : > { %5199 = vmatpush.bf16.msra.mxu2 %v7773_v53 }
0x1678   : > { %5215 = vmatmul.bf16.vlgmr.msra.gmra.mxu3 %v8574_v18 }
0x167a   : > { %5200 = vmatpush.bf16.msra.mxu2 %v7772_v57 }
0x16f3   : > { %v4677_v60 = vpop.f32.mrf.mxu3 }
0x16f4   : > { %v4680_v61 = vmul.f32 %v4677_v60, %v4677_v60  ;;  %v4686_v8 = vperm.slane %v4677_v60, 0 }
0x16f6   : > { %v4682_v63 = vrot.slane %v4680_v61, 7  ;;  %v4687_v24 = vsub.f32 %v4643_v38, %v4686_v8  ;;  %v7803_v38 = vld [vmem:[#allocation2 + $0xa60] sm:$0xff]  ;;  %v8015_v61 = vld [vmem:[#allocation6 + $0x78] sm:$0xff] }
0x16f7   : > { %5235 = vmatpush.bf16.msrb.mxu0 %v7803_v38  ;;  %5266 = vmatpush.msrb.mxu2 %v8015_v61  ;;  %v8023_v8 = vld [vmem:[#allocation6 + $0x38] sm:$0xff]  ;;  %v7948_v38 = vld [vmem:[#allocation4 + $0x24] ss:$0 sm:$0xff] }
0x16f8   : > { %v4684_v0 = vsub.f32 %v4677_v60, %v4682_v63  ;;  %v7797_v60 = vld [vmem:[#allocation2 + $0xa30] sm:$0xff]  ;;  %v7790_v63 = vld [vmem:[#allocation2 + $0x9f8] sm:$0xff] }
0x16fa   : > { %v4685_v1 = vmax.f32 %v4684_v0, 0.0  ;;  %v7796_v0 = vld [vmem:[#allocation2 + $0xa28] sm:$0xff] }
0x16fb   : > { %5236 = vmatpush.bf16.msrb.mxu0 %v7802_v26  ;;  %v5216_v42 = vpop.f32.mrf.mxu3 }
0x16fc   : > { %v4688_v2 = vadd.f32 1e-05, %v4685_v1  ;;  %v8016_v1 = vld [vmem:[#allocation6 + $0x70] sm:$0xff] }
0x16fd   : > { %5267 = vmatpush.msrb.mxu2 %v8016_v1 }
0x16fe   : > { %7977 = vrsqrt.f32 %v4688_v2  ;;  %vm4695_vm5 = vweird.f32 %v4688_v2 }
0x16ff   : > { %5237 = vmatpush.bf16.msrb.mxu0 %v7801_v46  ;;  %5268 = vmatpush.msrb.mxu2 %v8017_v51 }
0x1701   : > { %5269 = vmatpush.msrb.mxu2 %v8018_v3 }
0x1703   : > { %5238 = vmatpush.bf16.msrb.mxu0 %v7800_v48 }
0x1704   : > { %v7978_v54 = vpop.eup %7977 }
0x1705   : > { %v4690_v13 = vmul.f32 %v7978_v54, %v4688_v2  ;;  %vm4696_vm15 = vweird.f32 %v7978_v54  ;;  %v7789_v2 = vld [vmem:[#allocation2 + $0x9f0] sm:$0xff] }
0x1706   : > { %vm4697_vm1 = vmor %vm4695_vm5, %vm4696_vm15 }
0x1707   : > { %v4691_v11 = vmul.f32 %v7978_v54, %v4690_v13  ;;  %5239 = vmatpush.bf16.msrb.mxu0 %v7799_v52  ;;  %v8019_v13 = vld [vmem:[#allocation6 + $0x58] sm:$0xff] }
0x1708   : > { %5270 = vmatpush.msrb.mxu2 %v8019_v13 }
0x1709   : > { %v4692_v5 = vmul.f32 0.5, %v4691_v11  ;;  %v8020_v11 = vld [vmem:[#allocation6 + $0x50] sm:$0xff] }
0x170a   : > { %5271 = vmatpush.msrb.mxu2 %v8020_v11 }
0x170b   : > { %v4693_v7 = vsub.f32 1.5, %v4692_v5  ;;  %5240 = vmatpush.bf16.msrb.mxu0 %v7798_v58  ;;  %v8021_v5 = vld [vmem:[#allocation6 + $0x48] sm:$0xff] }
0x170c   : > { %5272 = vmatpush.msrb.mxu2 %v8021_v5 }
0x170d   : > { %v4694_v10 = vmul.f32 %v7978_v54, %v4693_v7 }
0x170e   : > { %5273 = vmatpush.msrb.mxu2 %v8022_v62 }
0x170f   : > { %v4698_v17 = vsel %vm4697_vm1, %v7978_v54, %v4694_v10  ;;  %5241 = vmatpush.bf16.msrb.mxu0 %v7797_v60  ;;  %v7788_v54 = vld [vmem:[#allocation2 + $0x9e8] sm:$0xff] }
0x1710   : > { %v4699_v19 = vperm.slane %v4698_v17, 1  ;;  %5274 = vmatpush.msrb.mxu2 %v8023_v8 }
0x1712   : > { %v4700_v6 = vmul.f32 %v4699_v19, %v4687_v24  ;;  %5275 = vmatpush.msrb.mxu2 %v8024_v16  ;;  %v8025_v19 = vld [vmem:[#allocation6 + $0x28] sm:$0xff] }
0x1713   : > { %5242 = vmatpush.bf16.msrb.mxu0 %v7796_v0 }
0x1714   : > { %v4702_v23 = vmul.f32 %v7946_v20, %v4700_v6  ;;  %5276 = vmatpush.msrb.mxu2 %v8025_v19  ;;  %v8026_v6 = vld [vmem:[#allocation6 + $0x20] sm:$0xff] }
0x1716   : > { %v4704_v27 = vadd.f32 %v7947_v25, %v4702_v23  ;;  %5277 = vmatpush.msrb.mxu2 %v8026_v6 }
0x1718   : > { %v4705_v29 = vmax.f32 %v4704_v27, 0.0  ;;  %5278 = vmatpush.msrb.mxu2 %v8027_v9  ;;  %v8028_v27 = vld [vmem:[#allocation6 + $0x10] sm:$0xff] }
0x171a   : > { %v4709_v30 = vpack.c.bf16 %v4705_v29, %v4705_v29  ;;  %5279 = vmatpush.msrb.mxu2 %v8028_v27 }
0x171c   : > { %v4719_v33 = vsel %vm1609_vm10, %v4709_v30, 0  ;;  %v8029_v30 = vld [vmem:[#allocation6 + $0x8] sm:$0xff] }
0x171d   : > { %4728 = vmatpush.bf16.msra.mxu1 %v4719_v33  ;;  %5280 = vmatpush.msrb.mxu2 %v8029_v30 }
0x171f   : > { %5281 = vmatpush.msrb.mxu2 %v8030_v44 }
0x1720   : > { %7120 = vmatmul.msk.bf16.vlgmr.msra.gmra.mxu1 %vm1605_vm11, %v7755_v32 }
0x1721   : > { %5165 = vmatpush.bf16.msrb.mxu1 %v7763_v31 }
0x1725   : > { %5166 = vmatpush.bf16.msrb.mxu1 %v7762_v34 }
0x1729   : > { %5167 = vmatpush.bf16.msrb.mxu1 %v7761_v35  ;;  %v4770_v35 = vsel %vm8370_vm2, %v8568_v56, 0 }
0x172d   : > { %5168 = vmatpush.bf16.msrb.mxu1 %v7760_v36  ;;  %v4773_v36 = vrot.slane %v8574_v18, 1 }
0x1731   : > { %5169 = vmatpush.bf16.msrb.mxu1 %v7759_v21  ;;  %v4774_v21 = vrot.slane %v4770_v35, 1  ;;  %v7807_v35 = vld [vmem:[#allocation2 + $0xa80] sm:$0xff] }
0x1735   : > { %5170 = vmatpush.bf16.msrb.mxu1 %v7758_v37  ;;  %v4775_v37 = vsel %vm407_vm3, %v4773_v36, %v4774_v21  ;;  %v7813_v36 = vld [vmem:[#allocation2 + $0xab0] sm:$0xff] }
0x1739   : > { %5171 = vmatpush.bf16.msrb.mxu1 %v7757_v39 }
0x173d   : > { %5172 = vmatpush.bf16.msrb.mxu1 %v7756_v41 }
0x1741   : > { %5221 = vmatpush.bf16.msra.mxu1 %v7795_v43 }
0x1745   : > { %5222 = vmatpush.bf16.msra.mxu1 %v7794_v45 }
0x1749   : > { %5223 = vmatpush.bf16.msra.mxu1 %v7793_v50 }
0x174d   : > { %5224 = vmatpush.bf16.msra.mxu1 %v7792_v55  ;;  %v5218_v55 = vpop.f32.mrf.mxu3 }
0x1751   : > { %5225 = vmatpush.bf16.msra.mxu1 %v7791_v59 }
0x1755   : > { %5226 = vmatpush.bf16.msra.mxu1 %v7790_v63 }
0x1759   : > { %5227 = vmatpush.bf16.msra.mxu1 %v7789_v2 }
0x175d   : > { %5228 = vmatpush.bf16.msra.mxu1 %v7788_v54 }
0x179d   : > { %v4730_v4 = vpop.f32.mrf.mxu1 }
0x179e   : > { %v4735_v7 = vpack.c.bf16 %v4730_v4, %v4730_v4 }
0x17a0   : > { %v4739_v17 = vunpack.c.l.b16 %v4735_v7 }
0x17a5   : > { %v4732_v10 = vpop.f32.mrf.mxu1 }
0x17a6   : > { %v4736_v15 = vpack.c.bf16 %v4732_v10, %v4732_v10 }
0x17a8   : > { %v4740_v24 = vunpack.c.l.b16 %v4736_v15 }
0x17aa   : > { %v4741_v20 = vpack.c.b16 %v4740_v24, %v4739_v17  ;;  %v7819_v24 = vld [vmem:[#allocation2 + $0xae0] sm:$0xff] }
0x17ac   : > { %v4743_v25 = vshrl.u32 %v4741_v20, 16  ;;  %5187 = vmatmul.bf16.vlgmr.msra.gmra.mxu0 %v4741_v20  ;;  %v4746_v23 = vshll.u32 %v4741_v20, 16  ;;  %v7811_v20 = vld [vmem:[#allocation2 + $0xaa0] sm:$0xff] }
0x17ad   : > { %5538 = vmatpush.bf16.msrb.mxu3 %v7811_v20  ;;  %v7951_v20 = vld [vmem:[#allocation4 + $0x27] ss:$0 sm:$0xff] }
0x17ae   : > { %v4745_v22 = vrot.slane %v4743_v25, 7  ;;  %v7827_v25 = vld [vmem:[#allocation2 + $0xb20] sm:$0xff] }
0x17af   : > { %5566 = vmatpush.bf16.msra.mxu0 %v7827_v25 }
0x17b0   : > { %v4748_v28 = vor.u32 %v4746_v23, %v4745_v22  ;;  %v4752_v29 = vsel %vm8370_vm2, %v4745_v22, 0  ;;  %v7816_v22 = vld [vmem:[#allocation2 + $0xac8] sm:$0xff]  ;;  %v7826_v23 = vld [vmem:[#allocation2 + $0xb18] sm:$0xff] }
0x17b1   : > { %v4757_v32 = vrot.slane %v4752_v29, 1  ;;  %v7825_v29 = vld [vmem:[#allocation2 + $0xb10] sm:$0xff] }
0x17b2   : > { %v4751_v31 = vsel %vm8370_vm2, 0, %v4748_v28  ;;  %v7815_v28 = vld [vmem:[#allocation2 + $0xac0] sm:$0xff] }
0x17b3   : > { %v4756_v33 = vrot.slane %v4751_v31, 1  ;;  %5173 = vmatmul.bf16.vlgmr.msrb.gmra.mxu1 %v4751_v31  ;;  %5567 = vmatpush.bf16.msra.mxu0 %v7826_v23 }
0x17b4   : > { %5552 = vmatpush.bf16.msrb.mxu1 %v7819_v24 }
0x17b5   : > { %v4758_v34 = vsel %vm407_vm3, %v4756_v33, %v4757_v32  ;;  %v7824_v32 = vld [vmem:[#allocation2 + $0xb08] sm:$0xff] }
0x17b6   : > { %5201 = vmatmul.bf16.vlgmr.msra.gmra.mxu2 %v4758_v34 }
0x17b7   : > { %5597 = vmatpush.msra.mxu2 %v8015_v61  ;;  %5568 = vmatpush.bf16.msra.mxu0 %v7825_v29 }
0x17b9   : > { %5598 = vmatpush.msra.mxu2 %v8016_v1 }
0x17bb   : > { %5599 = vmatpush.msra.mxu2 %v8017_v51  ;;  %5569 = vmatpush.bf16.msra.mxu0 %v7824_v32 }
0x17bc   : > { %5243 = vmatmul.bf16.vlgmr.msrb.gmra.mxu0 %v4775_v37  ;;  %v7823_v37 = vld [vmem:[#allocation2 + $0xb00] sm:$0xff] }
0x17bd   : > { %5600 = vmatpush.msra.mxu2 %v8018_v3 }
0x17bf   : > { %5601 = vmatpush.msra.mxu2 %v8019_v13  ;;  %5570 = vmatpush.bf16.msra.mxu0 %v7823_v37 }
0x17c1   : > { %5602 = vmatpush.msra.mxu2 %v8020_v11 }
0x17c3   : > { %5229 = vmatmul.bf16.vlgmr.msra.gmra.mxu1 %v8399_v14  ;;  %5603 = vmatpush.msra.mxu2 %v8021_v5 }
0x17c5   : > { %5604 = vmatpush.msra.mxu2 %v8022_v62 }
0x17c7   : > { %5605 = vmatpush.msra.mxu2 %v8023_v8 }
0x17c9   : > { %5606 = vmatpush.msra.mxu2 %v8024_v16 }
0x17cb   : > { %5607 = vmatpush.msra.mxu2 %v8025_v19  ;;  %v7818_v19 = vld [vmem:[#allocation2 + $0xad8] sm:$0xff] }
0x17cc   : > { %5553 = vmatpush.bf16.msrb.mxu1 %v7818_v19 }
0x17cd   : > { %5608 = vmatpush.msra.mxu2 %v8026_v6  ;;  %v7817_v6 = vld [vmem:[#allocation2 + $0xad0] sm:$0xff] }
0x17cf   : > { %5609 = vmatpush.msra.mxu2 %v8027_v9  ;;  %v7810_v9 = vld [vmem:[#allocation2 + $0xa98] sm:$0xff] }
0x17d0   : > { %5554 = vmatpush.bf16.msrb.mxu1 %v7817_v6  ;;  %5539 = vmatpush.bf16.msrb.mxu3 %v7810_v9 }
0x17d1   : > { %5610 = vmatpush.msra.mxu2 %v8028_v27  ;;  %v7809_v27 = vld [vmem:[#allocation2 + $0xa90] sm:$0xff] }
0x17d3   : > { %5611 = vmatpush.msra.mxu2 %v8029_v30  ;;  %v7808_v30 = vld [vmem:[#allocation2 + $0xa88] sm:$0xff] }
0x17d4   : > { %5555 = vmatpush.bf16.msrb.mxu1 %v7816_v22  ;;  %5540 = vmatpush.bf16.msrb.mxu3 %v7809_v27 }
0x17d5   : > { %5612 = vmatpush.msra.mxu2 %v8030_v44  ;;  %v7814_v44 = vld [vmem:[#allocation2 + $0xab8] sm:$0xff] }
0x17d8   : > { %5556 = vmatpush.bf16.msrb.mxu1 %v7815_v28  ;;  %5541 = vmatpush.bf16.msrb.mxu3 %v7808_v30 }
0x17dc   : > { %5557 = vmatpush.bf16.msrb.mxu1 %v7814_v44  ;;  %5542 = vmatpush.bf16.msrb.mxu3 %v7807_v35 }
0x17e0   : > { %5558 = vmatpush.bf16.msrb.mxu1 %v7813_v36 }
0x1829   : > { %v5188_v56 = vpop.f32.mrf.mxu0 }
0x1830   : > { %v5174_v18 = vpop.f32.mrf.mxu1 }
0x1831   : > { %v5190_v39 = vpop.f32.mrf.mxu0  ;;  %v5175_v26 = vadd.f32 %v7948_v38, %v5174_v18  ;;  %v7806_v18 = vld [vmem:[#allocation2 + $0xa78] sm:$0xff] }
0x1832   : > { %5543 = vmatpush.bf16.msrb.mxu3 %v7806_v18 }
0x1833   : > { %v5189_v14 = vadd.f32 %v5188_v56, %v5175_v26  ;;  %v7805_v26 = vld [vmem:[#allocation2 + $0xa70] sm:$0xff] }
0x1836   : > { %5544 = vmatpush.bf16.msrb.mxu3 %v7805_v26 }
0x1838   : > { %v5176_v40 = vpop.f32.mrf.mxu1 }
0x1839   : > { %v5202_v41 = vpop.f32.mrf.mxu2  ;;  %v5177_v43 = vadd.f32 %v7948_v38, %v5176_v40  ;;  %v5244_v47 = vpop.f32.mrf.mxu0  ;;  %v7812_v38 = vld [vmem:[#allocation2 + $0xaa8] sm:$0xff]  ;;  %v7822_v40 = vld [vmem:[#allocation2 + $0xaf8] sm:$0xff] }
0x183a   : > { %v5203_v46 = vadd.f32 %v5202_v41, %v5189_v14  ;;  %5559 = vmatpush.bf16.msrb.mxu1 %v7812_v38  ;;  %5571 = vmatpush.bf16.msra.mxu0 %v7822_v40  ;;  %v7821_v41 = vld [vmem:[#allocation2 + $0xaf0] sm:$0xff] }
0x183b   : > { %v5191_v48 = vadd.f32 %v5190_v39, %v5177_v43 }
0x183c   : > { %v5217_v50 = vadd.f32 %v5216_v42, %v5203_v46  ;;  %v7804_v42 = vld [vmem:[#allocation2 + $0xa68] sm:$0xff] }
0x183d   : > { %5545 = vmatpush.bf16.msrb.mxu3 %v7804_v42  ;;  %v7820_v46 = vld [vmem:[#allocation2 + $0xae8] sm:$0xff] }
0x183e   : > { %5572 = vmatpush.bf16.msra.mxu0 %v7821_v41 }
0x1840   : > { %v5230_v45 = vpop.f32.mrf.mxu1 }
0x1841   : > { %v5204_v49 = vpop.f32.mrf.mxu2  ;;  %v5231_v53 = vadd.f32 %v5230_v45, %v5217_v50  ;;  %v5246_v61 = vpop.f32.mrf.mxu0 }
0x1842   : > { %v5205_v52 = vadd.f32 %v5204_v49, %v5191_v48  ;;  %5573 = vmatpush.bf16.msra.mxu0 %v7820_v46  ;;  %v7835_v46 = vld [vmem:[#allocation2 + $0xb60] sm:$0xff] }
0x1843   : > { %v8590_v59 = vadd.f32 %v5244_v47, %v5231_v53  ;;  %5715 = vmatpush.bf16.msra.mxu3 %v7835_v46 }
0x1844   : > { %v5219_v58 = vadd.f32 %v5218_v55, %v5205_v52 }
0x1845   : > { %v5256_v0 = vmul.f32 %v8590_v59, %v8590_v59 }
0x1848   : > { %v5232_v57 = vpop.f32.mrf.mxu1 }
0x1849   : > { %v5233_v60 = vadd.f32 %v5232_v57, %v5219_v58  ;;  %v7949_v57 = vld [vmem:[#allocation4 + $0x25] ss:$0 sm:$0xff] }
0x184b   : > { %v8592_v63 = vadd.f32 %v5246_v61, %v5233_v60 }
0x184d   : > { %v5249_v1 = vadd.f32 %v8592_v63, %v8590_v59  ;;  %v5257_v2 = vmul.f32 %v8592_v63, %v8592_v63 }
0x184f   : > { %v5250_v51 = vrot.slane %v5249_v1, 4  ;;  %v5258_v3 = vadd.f32 %v5257_v2, %v5256_v0  ;;  %v7950_v0 = vld [vmem:[#allocation4 + $0x26] ss:$0 sm:$0xff] }
0x1851   : > { %v5251_v54 = vadd.f32 %v5250_v51, %v5249_v1  ;;  %v5259_v13 = vrot.slane %v5258_v3, 4 }
0x1853   : > { %v5252_v4 = vrot.slane %v5251_v54, 2  ;;  %v5260_v11 = vadd.f32 %v5259_v13, %v5258_v3 }
0x1855   : > { %v5253_v5 = vadd.f32 %v5252_v4, %v5251_v54  ;;  %v5261_v62 = vrot.slane %v5260_v11, 2 }
0x1857   : > { %v5254_v7 = vrot.slane %v5253_v5, 1  ;;  %v5262_v8 = vadd.f32 %v5261_v62, %v5260_v11 }
0x1859   : > { %v5263_v10 = vrot.slane %v5262_v8, 1  ;;  %v5255_v15 = vadd.f32 %v5254_v7, %v5253_v5 }
0x185b   : > { %v5264_v16 = vadd.f32 %v5263_v10, %v5262_v8 }
0x185d   : > { %v5265_v17 = vsel %vm398_vm0, %v5255_v15, %v5264_v16 }
0x185e   : > { %5282 = vmatmul.f32.vlgmr.msrb.gmra.mxu2 %v5265_v17 }
0x18e1   : > { %v5283_v31 = vpop.f32.mrf.mxu2 }
0x18e2   : > { %v5286_v33 = vmul.f32 %v5283_v31, %v5283_v31  ;;  %v5292_v49 = vperm.slane %v5283_v31, 0 }
0x18e4   : > { %v5288_v34 = vrot.slane %v5286_v33, 7  ;;  %v5293_v53 = vsub.f32 %v8590_v59, %v5292_v49  ;;  %v5294_v55 = vsub.f32 %v8592_v63, %v5292_v49  ;;  %v7831_v49 = vld [vmem:[#allocation2 + $0xb40] sm:$0xff] }
0x18e6   : > { %v5290_v21 = vsub.f32 %v5283_v31, %v5288_v34 }
0x18e8   : > { %v5291_v56 = vmax.f32 %v5290_v21, 0.0 }
0x18ea   : > { %v5295_v39 = vadd.f32 1e-05, %v5291_v56 }
0x18ec   : > { %7979 = vrsqrt.f32 %v5295_v39  ;;  %vm5302_vm11 = vweird.f32 %v5295_v39 }
0x18f2   : > { %v7980_v43 = vpop.eup %7979 }
0x18f3   : > { %v5297_v14 = vmul.f32 %v7980_v43, %v5295_v39  ;;  %vm5303_vm10 = vweird.f32 %v7980_v43 }
0x18f4   : > { %vm5304_vm6 = vmor %vm5302_vm11, %vm5303_vm10 }
0x18f5   : > { %v5298_v47 = vmul.f32 %v7980_v43, %v5297_v14 }
0x18f7   : > { %v5299_v45 = vmul.f32 0.5, %v5298_v47  ;;  %v7834_v47 = vld [vmem:[#allocation2 + $0xb58] sm:$0xff] }
0x18f8   : > { %5716 = vmatpush.bf16.msra.mxu3 %v7834_v47 }
0x18f9   : > { %v5300_v48 = vsub.f32 1.5, %v5299_v45  ;;  %v7833_v45 = vld [vmem:[#allocation2 + $0xb50] sm:$0xff] }
0x18fb   : > { %v5301_v50 = vmul.f32 %v7980_v43, %v5300_v48  ;;  %v7832_v48 = vld [vmem:[#allocation2 + $0xb48] sm:$0xff] }
0x18fc   : > { %5717 = vmatpush.bf16.msra.mxu3 %v7833_v45 }
0x18fd   : > { %v5305_v52 = vsel %vm5304_vm6, %v7980_v43, %v5301_v50  ;;  %v7830_v50 = vld [vmem:[#allocation2 + $0xb38] sm:$0xff] }
0x18fe   : > { %v5306_v58 = vperm.slane %v5305_v52, 1 }
0x1900   : > { %v5307_v60 = vmul.f32 %v5306_v58, %v5293_v53  ;;  %v5308_v61 = vmul.f32 %v5306_v58, %v5294_v55  ;;  %5718 = vmatpush.bf16.msra.mxu3 %v7832_v48  ;;  %v7829_v53 = vld [vmem:[#allocation2 + $0xb30] sm:$0xff] }
0x1902   : > { %v5310_v1 = vmul.f32 %v7949_v57, %v5307_v60  ;;  %v5311_v2 = vmul.f32 %v7949_v57, %v5308_v61  ;;  %v7828_v57 = vld [vmem:[#allocation2 + $0xb28] sm:$0xff] }
0x1904   : > { %v5313_v51 = vadd.f32 %v7950_v0, %v5310_v1  ;;  %v5314_v3 = vadd.f32 %v7950_v0, %v5311_v2  ;;  %5719 = vmatpush.bf16.msra.mxu3 %v7831_v49 }
0x1906   : > { %v5315_v54 = vmax.f32 %v5313_v51, 0.0  ;;  %v5316_v13 = vmax.f32 %v5314_v3, 0.0 }
0x1908   : > { %v5317_v4 = vpack.c.bf16 %v5315_v54, %v5315_v54  ;;  %v5318_v11 = vpack.c.bf16 %v5316_v13, %v5316_v13  ;;  %5720 = vmatpush.bf16.msra.mxu3 %v7830_v50 }
0x190a   : > { %v5321_v5 = vunpack.c.l.b16 %v5317_v4  ;;  %v5322_v62 = vunpack.c.l.b16 %v5318_v11 }
0x190c   : > { %v5323_v7 = vpack.c.b16 %v5322_v62, %v5321_v5  ;;  %5721 = vmatpush.bf16.msra.mxu3 %v7829_v53 }
0x190e   : > { %5560 = vmatmul.bf16.vlgmr.msrb.gmra.mxu1 %v5323_v7  ;;  %v5325_v59 = vshrl.u32 %v5323_v7, 16  ;;  %v5328_v63 = vshll.u32 %v5323_v7, 16 }
0x1910   : > { %v5327_v8 = vrot.slane %v5325_v59, 7  ;;  %5722 = vmatpush.bf16.msra.mxu3 %v7828_v57  ;;  %v7952_v59 = vld [vmem:[#allocation4 + $0x28] ss:$0 sm:$0xff] }
0x1912   : > { %v5330_v10 = vor.u32 %v5328_v63, %v5327_v8  ;;  %v5334_v15 = vsel %vm8370_vm2, %v5327_v8, 0 }
0x1913   : > { %v5339_v24 = vrot.slane %v5334_v15, 1 }
0x1914   : > { %v5333_v16 = vsel %vm8370_vm2, 0, %v5330_v10  ;;  %v7953_v10 = vld [vmem:[#allocation4 + $0x29] ss:$0 sm:$0xff] }
0x1915   : > { %v5338_v17 = vrot.slane %v5333_v16, 1  ;;  %5546 = vmatmul.bf16.vlgmr.msrb.gmra.mxu3 %v5333_v16 }
0x1917   : > { %v5340_v19 = vsel %vm407_vm3, %v5338_v17, %v5339_v24 }
0x1918   : > { %5574 = vmatmul.bf16.vlgmr.msra.gmra.mxu0 %v5340_v19 }
0x198b   : > { %v5561_v6 = vpop.f32.mrf.mxu1 }
0x1993   : > { %v5563_v29 = vpop.f32.mrf.mxu1 }
0x1995   : > { %v5575_v9 = vpop.f32.mrf.mxu0 }
0x1998   : > { %v5547_v25 = vpop.f32.mrf.mxu3 }
0x1999   : > { %v5548_v22 = vadd.f32 %v7951_v20, %v5547_v25  ;;  %v7954_v25 = vld [vmem:[#allocation4 + $0x2a] ss:$0 sm:$0xff] }
0x199b   : > { %v5562_v23 = vadd.f32 %v5561_v6, %v5548_v22 }
0x199d   : > { %v5576_v30 = vadd.f32 %v5575_v9, %v5562_v23  ;;  %v5577_v44 = vpop.f32.mrf.mxu0 }
0x199f   : > { %v5587_v33 = vmul.f32 %v5576_v30, %v5576_v30 }
0x19a0   : > { %v5549_v27 = vpop.f32.mrf.mxu3 }
0x19a1   : > { %v5550_v28 = vadd.f32 %v7951_v20, %v5549_v27 }
0x19a3   : > { %v5564_v31 = vadd.f32 %v5563_v29, %v5550_v28 }
0x19a5   : > { %v5578_v12 = vadd.f32 %v5577_v44, %v5564_v31 }
0x19a7   : > { %v5580_v32 = vadd.f32 %v5578_v12, %v5576_v30  ;;  %v5588_v34 = vmul.f32 %v5578_v12, %v5578_v12 }
0x19a9   : > { %v5581_v35 = vrot.slane %v5580_v32, 4  ;;  %v5589_v36 = vadd.f32 %v5588_v34, %v5587_v33 }
0x19ab   : > { %v5582_v21 = vadd.f32 %v5581_v35, %v5580_v32  ;;  %v5590_v37 = vrot.slane %v5589_v36, 4 }
0x19ad   : > { %v5583_v56 = vrot.slane %v5582_v21, 2  ;;  %v5591_v18 = vadd.f32 %v5590_v37, %v5589_v36 }
0x19af   : > { %v5584_v38 = vadd.f32 %v5583_v56, %v5582_v21  ;;  %v5592_v39 = vrot.slane %v5591_v18, 2 }
0x19b1   : > { %v5585_v40 = vrot.slane %v5584_v38, 1  ;;  %v5593_v26 = vadd.f32 %v5592_v39, %v5591_v18 }
0x19b3   : > { %v5594_v41 = vrot.slane %v5593_v26, 1  ;;  %v5586_v42 = vadd.f32 %v5585_v40, %v5584_v38 }
0x19b5   : > { %v5595_v43 = vadd.f32 %v5594_v41, %v5593_v26 }
0x19b7   : > { %v5596_v14 = vsel %vm398_vm0, %v5586_v42, %v5595_v43 }
0x19b8   : > { %5613 = vmatmul.f32.vlgmr.msra.gmra.mxu2 %v5596_v14 }
0x1a3b   : > { %v5614_v52 = vpop.f32.mrf.mxu2 }
0x1a3c   : > { %v5617_v55 = vmul.f32 %v5614_v52, %v5614_v52  ;;  %v5623_v13 = vperm.slane %v5614_v52, 0 }
0x1a3e   : > { %v5619_v58 = vrot.slane %v5617_v55, 7  ;;  %v5624_v5 = vsub.f32 %v5576_v30, %v5623_v13  ;;  %v5625_v62 = vsub.f32 %v5578_v12, %v5623_v13 }
0x1a40   : > { %v5621_v60 = vsub.f32 %v5614_v52, %v5619_v58 }
0x1a42   : > { %v5622_v61 = vmax.f32 %v5621_v60, 0.0 }
0x1a44   : > { %v5626_v0 = vadd.f32 1e-05, %v5622_v61 }
0x1a46   : > { %7981 = vrsqrt.f32 %v5626_v0  ;;  %vm5633_vm2 = vweird.f32 %v5626_v0 }
0x1a4c   : > { %v7982_v1 = vpop.eup %7981 }
0x1a4d   : > { %v5628_v2 = vmul.f32 %v7982_v1, %v5626_v0  ;;  %vm5634_vm0 = vweird.f32 %v7982_v1 }
0x1a4e   : > { %vm5635_vm3 = vmor %vm5633_vm2, %vm5634_vm0 }
0x1a4f   : > { %v5629_v51 = vmul.f32 %v7982_v1, %v5628_v2 }
0x1a51   : > { %v5630_v3 = vmul.f32 0.5, %v5629_v51 }
0x1a53   : > { %v5631_v54 = vsub.f32 1.5, %v5630_v3 }
0x1a55   : > { %v5632_v4 = vmul.f32 %v7982_v1, %v5631_v54 }
0x1a57   : > { %v5636_v11 = vsel %vm5635_vm3, %v7982_v1, %v5632_v4 }
0x1a58   : > { %v5637_v7 = vperm.slane %v5636_v11, 1 }
0x1a5a   : > { %v5638_v8 = vmul.f32 %v5637_v7, %v5624_v5  ;;  %v5639_v63 = vmul.f32 %v5637_v7, %v5625_v62 }
0x1a5c   : > { %v5641_v15 = vmul.f32 %v7952_v59, %v5638_v8  ;;  %v5642_v16 = vmul.f32 %v7952_v59, %v5639_v63 }
0x1a5e   : > { %v5644_v17 = vadd.f32 %v7953_v10, %v5641_v15  ;;  %v5645_v24 = vadd.f32 %v7953_v10, %v5642_v16 }
0x1a60   : > { %v5646_v19 = vmax.f32 %v5644_v17, 0.0  ;;  %v5647_v20 = vmax.f32 %v5645_v24, 0.0 }
0x1a62   : > { %v5665_v6 = vpack.c.bf16 %v5647_v20, %v5646_v19 }
0x1a64   : > { %5723 = vmatmul.bf16.vlgmr.msra.gmra.mxu3 %v5665_v6 }
0x1ae7   : > { %v5724_v9 = vpop.f32.mrf.mxu3 }
0x1ae8   : > { %v5725_v22 = vadd.f32 %v7954_v25, %v5724_v9 }
0x1aea   : > { %5729 = vst [vmem:[%s378_s27] sm:$0xff] %v5725_v22 }
0x1aef   : > { %v5726_v23 = vpop.f32.mrf.mxu3 }
0x1af0   : > { %v5727_v27 = vadd.f32 %v7954_v25, %v5726_v23 }
0x1af2   : > { %5730 = vst [vmem:[%s378_s27 + $0x8] sm:$0xff] %v5727_v27 }
0x1af3 PF: > { %s21_s24 = sadd.s32 1, %s8233_s24  }
0x1af4   : > { %p18_p7 = scmp.ge.s32.totalorder %s21_s24, 4  }
0x1af6   :  { %20 = sbr.rel (!%p18_p7) target bundleno = 4 (0x4), region = 112 }
0x1afb   :  { %5752 = vsyncpa [#allocation3], 1 }
0x1afc   :  { %5754 = vsyncpa [#allocation3 + $0x1], 1 }
0x1afd   :  { %5755 = vsyncpa [#allocation5], 1 }
0x1afe   :  { %5756 = vsyncpa [#allocation8], 1 }
0x1aff   :  { %5757 = vsyncpa [#allocation11], 1 }

</bundles_post_ra>
